<compile_context>
chip_gen: v6e
topology: v6e:2x2x1
jax: 0.10.0
libtpu: 0.0.40
codegen_flags: <defaults>
</compile_context>

<pallas_src>
import jax
import jax.numpy as jnp
from jax.experimental import pallas as pl
from jax.experimental.pallas import tpu as pltpu

# ---- model hyper-params (args.num_featrues = 16, args.num_classes = 4) ----
NUM_FEATURES = 16
NUM_CLASSES = 4
HIDDEN = 100            # LSTM hidden_size
PROJ = 1                # LSTM proj_size
CONV_OUT = 32
KSIZE = 3
SEQ_IN = NUM_FEATURES + KSIZE - 1   # conv1d 'valid' => T_out = NUM_FEATURES

HP = 128                # HIDDEN zero-padded to one full vreg lane width
G = 4 * HP              # padded gate width (i,f,g,o stacked)


def cnn_lstm_kernel(xwin_ref, a_ref, beff_ref, whh_ref, whr_ref, wc_ref, bc_ref,
                    out_ref):
    xwin = xwin_ref[...]          # (B, T, 3)   im2col windows of the raw input
    A = a_ref[...]                # (3, G)      conv folded into W_ih (gate-padded)
    b_eff = beff_ref[...]         # (1, G)      conv_b@W_ih + b_ih + b_hh (gate-padded)
    whh = whh_ref[...]            # (1, G)      W_hh row (proj_size=1), gate-padded
    whr = whr_ref[...]            # (1, HP)     W_hr row, zero-padded to 128
    Wc = wc_ref[...]              # (T, 4)      folded linear1@linear2@linear3
    bc = bc_ref[...]              # (1, 4)      folded bias
    B = xwin.shape[0]
    T = NUM_FEATURES

    # ---- Conv1d fused into the LSTM input projection, hoisted out of the recurrence ----
    # gx[b, t, :] = sum_k x[b, t+k] * A[k, :] + b_eff      (3 VPU broadcast-FMAs)
    gx = (xwin[:, :, 0:1] * A[0:1, :][None]
          + xwin[:, :, 1:2] * A[1:2, :][None]
          + xwin[:, :, 2:3] * A[2:3, :][None]
          + b_eff[None])                                   # (B, T, G)

    # ---- LSTM(input=32, hidden=100->128 padded, proj_size=1), batch_first ----
    h = jnp.zeros((B, PROJ), jnp.float32)
    c = jnp.zeros((B, HP), jnp.float32)
    logits = jnp.zeros((B, NUM_CLASSES), jnp.float32)

    for t in range(T):            # static unroll: full LLO visibility, no MXU in chain
        gates = gx[:, t, :] + h * whh               # (B, G); K=1 matmul -> broadcast mul
        i_g = jax.nn.sigmoid(gates[:, 0:HP])        # lane-aligned whole-vreg slices
        f_g = jax.nn.sigmoid(gates[:, HP:2 * HP])
        g_g = jnp.tanh(gates[:, 2 * HP:3 * HP])
        o_g = jax.nn.sigmoid(gates[:, 3 * HP:4 * HP])
        c = f_g * c + i_g * g_g                     # padded lanes stay exactly 0
        # proj_size=1 projection: VPU multiply + XLU row-reduce (N=1 matmul avoided)
        h = jnp.sum((o_g * jnp.tanh(c)) * whr, axis=-1, keepdims=True)   # (B, 1)
        # folded linear stack accumulated per step (dropout = identity in eval)
        logits = logits + h * Wc[t:t + 1, :]        # (B, 4)

    logits = logits + bc

    # ---- softmax over dim=1 (classes) ----
    m = jnp.max(logits, axis=-1, keepdims=True)
    e = jnp.exp(logits - m)
    out_ref[...] = e / jnp.sum(e, axis=-1, keepdims=True)


def init_params(key):
    """Deterministic synthetic parameters with PyTorch-like init ranges/layouts."""
    ks = jax.random.split(key, 13)

    def u(k, shape, fan_in):
        bound = 1.0 / float(fan_in) ** 0.5
        return jax.random.uniform(k, shape, jnp.float32, -bound, bound)

    return dict(
        conv_w=u(ks[0], (CONV_OUT, 1, KSIZE), 1 * KSIZE),          # Conv1d.weight
        conv_b=u(ks[1], (CONV_OUT,), 1 * KSIZE),                   # Conv1d.bias
        w_ih=u(ks[2], (4 * HIDDEN, CONV_OUT), HIDDEN),             # weight_ih_l0
        w_hh=u(ks[3], (4 * HIDDEN, PROJ), HIDDEN),                 # weight_hh_l0
        b_ih=u(ks[4], (4 * HIDDEN,), HIDDEN),                      # bias_ih_l0
        b_hh=u(ks[5], (4 * HIDDEN,), HIDDEN),                      # bias_hh_l0
        w_hr=u(ks[6], (PROJ, HIDDEN), HIDDEN),                     # weight_hr_l0
        w1=u(ks[7], (NUM_FEATURES // 2, NUM_FEATURES), NUM_FEATURES),
        b1=u(ks[8], (NUM_FEATURES // 2,), NUM_FEATURES),
        w2=u(ks[9], (NUM_FEATURES // 4, NUM_FEATURES // 2), NUM_FEATURES // 2),
        b2=u(ks[10], (NUM_FEATURES // 4,), NUM_FEATURES // 2),
        w3=u(ks[11], (NUM_CLASSES, NUM_FEATURES // 4), NUM_FEATURES // 4),
        b3=u(ks[12], (NUM_CLASSES,), NUM_FEATURES // 4),
    )


def cnn_lstm_forward(x, p):
    """x: (B, 1, SEQ_IN) float32, as in PyTorch NCW layout."""
    B = x.shape[0]
    T = NUM_FEATURES
    x2 = x.reshape(B, SEQ_IN).astype(jnp.float32)

    # im2col windows (layout plumbing only): x_win[b, t, k] = x[b, t + k]
    x_win = jnp.stack([x2[:, k:k + T] for k in range(KSIZE)], axis=-1)   # (B, T, 3)

    # ---- zero-pad each LSTM gate block from HIDDEN=100 to HP=128 (numerically inert) ----
    def pad_gate_cols(w):   # (..., 4*HIDDEN) -> (..., 4*HP), per-gate zero pad
        w4 = w.reshape(w.shape[:-1] + (4, HIDDEN))
        w4 = jnp.pad(w4, [(0, 0)] * (w4.ndim - 1) + [(0, HP - HIDDEN)])
        return w4.reshape(w.shape[:-1] + (G,))

    w_ih_p = pad_gate_cols(jnp.transpose(p["w_ih"]))                     # (32, 512)
    w_hh_p = pad_gate_cols(jnp.transpose(p["w_hh"]))                     # (1, 512)
    b_lstm_p = pad_gate_cols((p["b_ih"] + p["b_hh"])[None, :])           # (1, 512)
    w_hr_row = jnp.pad(p["w_hr"], ((0, 0), (0, HP - HIDDEN)))            # (1, 128)

    # ---- fold Conv1d into the LSTM input projection ----
    conv_w_t = jnp.transpose(p["conv_w"][:, 0, :])                       # (3, 32)
    A = conv_w_t @ w_ih_p                                                # (3, 512)
    b_eff = p["conv_b"][None, :] @ w_ih_p + b_lstm_p                     # (1, 512)

    # ---- fold linear1 -> linear2 -> linear3 (dropouts are identity in eval) ----
    w1t = jnp.transpose(p["w1"])   # (16, 8)
    w2t = jnp.transpose(p["w2"])   # (8, 4)
    w3t = jnp.transpose(p["w3"])   # (4, 4)
    Wc = w1t @ w2t @ w3t                                                 # (16, 4)
    bc = (p["b1"][None, :] @ w2t + p["b2"][None, :]) @ w3t + p["b3"][None, :]  # (1, 4)

    args = (x_win, A, b_eff, w_hh_p, w_hr_row, Wc, bc)
    vmem = pl.BlockSpec(memory_space=pltpu.MemorySpace.VMEM)

    # TODO(synk): for large B, add a ("parallel",) batch grid axis with 128-row blocks
    # (shards across v7x's 2 TensorCores); at B=2 a single ungridded call is cheapest.
    return pl.pallas_call(
        cnn_lstm_kernel,
        out_shape=jax.ShapeDtypeStruct((B, NUM_CLASSES), jnp.float32),
        in_specs=[vmem] * len(args),
        out_specs=vmem,
    )(*args)


def reference_forward(x, p):
    """Pure-JAX reference with the original (unfolded, unpadded) math."""
    B = x.shape[0]
    T = NUM_FEATURES
    xs = x.reshape(B, SEQ_IN).astype(jnp.float32)
    win = jnp.stack([xs[:, k:k + T] for k in range(KSIZE)], axis=-1)     # (B, T, 3)
    conv = win @ jnp.transpose(p["conv_w"][:, 0, :]) + p["conv_b"]       # (B, T, 32)

    w_ih, w_hh, w_hr = p["w_ih"], p["w_hh"], p["w_hr"]
    b = p["b_ih"] + p["b_hh"]
    h = jnp.zeros((B, PROJ), jnp.float32)
    c = jnp.zeros((B, HIDDEN), jnp.float32)
    ys = []
    for t in range(T):
        gates = conv[:, t, :] @ w_ih.T + h @ w_hh.T + b
        i_g = jax.nn.sigmoid(gates[:, 0:HIDDEN])
        f_g = jax.nn.sigmoid(gates[:, HIDDEN:2 * HIDDEN])
        g_g = jnp.tanh(gates[:, 2 * HIDDEN:3 * HIDDEN])
        o_g = jax.nn.sigmoid(gates[:, 3 * HIDDEN:4 * HIDDEN])
        c = f_g * c + i_g * g_g
        h = (o_g * jnp.tanh(c)) @ w_hr.T
        ys.append(h)
    y = jnp.concatenate(ys, axis=1)                                      # (B, 16)
    y = y @ p["w1"].T + p["b1"]
    y = y @ p["w2"].T + p["b2"]
    y = y @ p["w3"].T + p["b3"]
    return jax.nn.softmax(y, axis=1)


if __name__ == "__main__":
    key = jax.random.PRNGKey(0)
    k_param, k_x = jax.random.split(key)
    params = init_params(k_param)
    # PyTorch-style input: (batch=2, channels=1, length=NUM_FEATURES+2)
    x = jax.random.normal(k_x, (2, 1, SEQ_IN), dtype=jnp.float32)

    out = jax.jit(cnn_lstm_forward)(x, params)
    out = jax.block_until_ready(out)
    ref = jax.block_until_ready(jax.jit(reference_forward)(x, params))

    assert out.shape == (2, NUM_CLASSES)
    assert bool(jnp.all(jnp.isfinite(out)))
    assert bool(jnp.allclose(jnp.sum(out, axis=1), 1.0, atol=1e-5))
    assert bool(jnp.allclose(out, ref, atol=1e-4, rtol=1e-4))
    print("KERNEL_OK")
</pallas_src>

<mosaic_0001>
module attributes {stable_mosaic.version = 11 : i64} {
  func.func @cnn_lstm_kernel(%arg0: memref<2x16x3xf32, #tpu.memory_space<vmem>>, %arg1: memref<3x512xf32, #tpu.memory_space<vmem>>, %arg2: memref<1x512xf32, #tpu.memory_space<vmem>>, %arg3: memref<1x512xf32, #tpu.memory_space<vmem>>, %arg4: memref<1x128xf32, #tpu.memory_space<vmem>>, %arg5: memref<16x4xf32, #tpu.memory_space<vmem>>, %arg6: memref<1x4xf32, #tpu.memory_space<vmem>>, %arg7: memref<2x4xf32, #tpu.memory_space<vmem>>) attributes {dimension_semantics = [], scalar_prefetch = 0 : i64, scratch_operands = 0 : i64, tpu.core_type = #tpu.core_type<tc>} {
    %c0 = arith.constant 0 : index
    %c0_0 = arith.constant 0 : index
    %c0_1 = arith.constant 0 : index
    %0 = vector.load %arg0[%c0, %c0_0, %c0_1] : memref<2x16x3xf32, #tpu.memory_space<vmem>>, vector<2x16x3xf32>
    %c0_2 = arith.constant 0 : index
    %c0_3 = arith.constant 0 : index
    %1 = vector.load %arg1[%c0_2, %c0_3] : memref<3x512xf32, #tpu.memory_space<vmem>>, vector<3x512xf32>
    %c0_4 = arith.constant 0 : index
    %c0_5 = arith.constant 0 : index
    %2 = vector.load %arg2[%c0_4, %c0_5] : memref<1x512xf32, #tpu.memory_space<vmem>>, vector<1x512xf32>
    %c0_6 = arith.constant 0 : index
    %c0_7 = arith.constant 0 : index
    %3 = vector.load %arg3[%c0_6, %c0_7] : memref<1x512xf32, #tpu.memory_space<vmem>>, vector<1x512xf32>
    %c0_8 = arith.constant 0 : index
    %c0_9 = arith.constant 0 : index
    %4 = vector.load %arg4[%c0_8, %c0_9] : memref<1x128xf32, #tpu.memory_space<vmem>>, vector<1x128xf32>
    %c0_10 = arith.constant 0 : index
    %c0_11 = arith.constant 0 : index
    %5 = vector.load %arg5[%c0_10, %c0_11] : memref<16x4xf32, #tpu.memory_space<vmem>>, vector<16x4xf32>
    %c0_12 = arith.constant 0 : index
    %c0_13 = arith.constant 0 : index
    %6 = vector.load %arg6[%c0_12, %c0_13] : memref<1x4xf32, #tpu.memory_space<vmem>>, vector<1x4xf32>
    %7 = vector.extract_strided_slice %0 {offsets = [0, 0, 0], sizes = [2, 16, 1], strides = [1, 1, 1]} : vector<2x16x3xf32> to vector<2x16x1xf32>
    %8 = vector.extract_strided_slice %1 {offsets = [0, 0], sizes = [1, 512], strides = [1, 1]} : vector<3x512xf32> to vector<1x512xf32>
    %9 = vector.shape_cast %8 : vector<1x512xf32> to vector<1x1x512xf32>
    %10 = vector.broadcast %7 : vector<2x16x1xf32> to vector<2x16x512xf32>
    %11 = vector.broadcast %9 : vector<1x1x512xf32> to vector<2x16x512xf32>
    %12 = arith.mulf %10, %11 : vector<2x16x512xf32>
    %13 = vector.extract_strided_slice %0 {offsets = [0, 0, 1], sizes = [2, 16, 1], strides = [1, 1, 1]} : vector<2x16x3xf32> to vector<2x16x1xf32>
    %14 = vector.extract_strided_slice %1 {offsets = [1, 0], sizes = [1, 512], strides = [1, 1]} : vector<3x512xf32> to vector<1x512xf32>
    %15 = vector.shape_cast %14 : vector<1x512xf32> to vector<1x1x512xf32>
    %16 = vector.broadcast %13 : vector<2x16x1xf32> to vector<2x16x512xf32>
    %17 = vector.broadcast %15 : vector<1x1x512xf32> to vector<2x16x512xf32>
    %18 = arith.mulf %16, %17 : vector<2x16x512xf32>
    %19 = arith.addf %12, %18 : vector<2x16x512xf32>
    %20 = vector.extract_strided_slice %0 {offsets = [0, 0, 2], sizes = [2, 16, 1], strides = [1, 1, 1]} : vector<2x16x3xf32> to vector<2x16x1xf32>
    %21 = vector.extract_strided_slice %1 {offsets = [2, 0], sizes = [1, 512], strides = [1, 1]} : vector<3x512xf32> to vector<1x512xf32>
    %22 = vector.shape_cast %21 : vector<1x512xf32> to vector<1x1x512xf32>
    %23 = vector.broadcast %20 : vector<2x16x1xf32> to vector<2x16x512xf32>
    %24 = vector.broadcast %22 : vector<1x1x512xf32> to vector<2x16x512xf32>
    %25 = arith.mulf %23, %24 : vector<2x16x512xf32>
    %26 = arith.addf %19, %25 : vector<2x16x512xf32>
    %27 = vector.shape_cast %2 : vector<1x512xf32> to vector<1x1x512xf32>
    %28 = vector.broadcast %27 : vector<1x1x512xf32> to vector<2x16x512xf32>
    %29 = arith.addf %26, %28 : vector<2x16x512xf32>
    %cst = arith.constant 0.000000e+00 : f32
    %30 = vector.broadcast %cst : f32 to vector<2x1xf32>
    %cst_14 = arith.constant 0.000000e+00 : f32
    %31 = vector.broadcast %cst_14 : f32 to vector<2x128xf32>
    %cst_15 = arith.constant 0.000000e+00 : f32
    %32 = vector.broadcast %cst_15 : f32 to vector<2x4xf32>
    %33 = vector.extract_strided_slice %29 {offsets = [0, 0, 0], sizes = [2, 1, 512], strides = [1, 1, 1]} : vector<2x16x512xf32> to vector<2x1x512xf32>
    %34 = vector.shape_cast %33 : vector<2x1x512xf32> to vector<2x512xf32>
    %35 = vector.broadcast %30 : vector<2x1xf32> to vector<2x512xf32>
    %36 = vector.broadcast %3 : vector<1x512xf32> to vector<2x512xf32>
    %37 = arith.mulf %35, %36 : vector<2x512xf32>
    %38 = arith.addf %34, %37 : vector<2x512xf32>
    %39 = vector.extract_strided_slice %38 {offsets = [0, 0], sizes = [2, 128], strides = [1, 1]} : vector<2x512xf32> to vector<2x128xf32>
    %40 = arith.negf %39 : vector<2x128xf32>
    %41 = math.exp %40 : vector<2x128xf32>
    %cst_16 = arith.constant 1.000000e+00 : f32
    %42 = vector.broadcast %cst_16 : f32 to vector<2x128xf32>
    %43 = arith.addf %42, %41 : vector<2x128xf32>
    %44 = arith.divf %42, %43 : vector<2x128xf32>
    %45 = vector.extract_strided_slice %38 {offsets = [0, 128], sizes = [2, 128], strides = [1, 1]} : vector<2x512xf32> to vector<2x128xf32>
    %46 = arith.negf %45 : vector<2x128xf32>
    %47 = math.exp %46 : vector<2x128xf32>
    %cst_17 = arith.constant 1.000000e+00 : f32
    %48 = vector.broadcast %cst_17 : f32 to vector<2x128xf32>
    %49 = arith.addf %48, %47 : vector<2x128xf32>
    %50 = arith.divf %48, %49 : vector<2x128xf32>
    %51 = vector.extract_strided_slice %38 {offsets = [0, 256], sizes = [2, 128], strides = [1, 1]} : vector<2x512xf32> to vector<2x128xf32>
    %52 = math.tanh %51 : vector<2x128xf32>
    %53 = vector.extract_strided_slice %38 {offsets = [0, 384], sizes = [2, 128], strides = [1, 1]} : vector<2x512xf32> to vector<2x128xf32>
    %54 = arith.negf %53 : vector<2x128xf32>
    %55 = math.exp %54 : vector<2x128xf32>
    %cst_18 = arith.constant 1.000000e+00 : f32
    %56 = vector.broadcast %cst_18 : f32 to vector<2x128xf32>
    %57 = arith.addf %56, %55 : vector<2x128xf32>
    %58 = arith.divf %56, %57 : vector<2x128xf32>
    %59 = arith.mulf %50, %31 : vector<2x128xf32>
    %60 = arith.mulf %44, %52 : vector<2x128xf32>
    %61 = arith.addf %59, %60 : vector<2x128xf32>
    %62 = math.tanh %61 : vector<2x128xf32>
    %63 = arith.mulf %58, %62 : vector<2x128xf32>
    %64 = vector.broadcast %4 : vector<1x128xf32> to vector<2x128xf32>
    %65 = arith.mulf %63, %64 : vector<2x128xf32>
    %cst_19 = arith.constant dense<0.000000e+00> : vector<2xf32>
    %66 = vector.multi_reduction <add>, %65, %cst_19 [1] : vector<2x128xf32> to vector<2xf32>
    %67 = vector.shape_cast %66 : vector<2xf32> to vector<2x1xf32>
    %68 = vector.extract_strided_slice %5 {offsets = [0, 0], sizes = [1, 4], strides = [1, 1]} : vector<16x4xf32> to vector<1x4xf32>
    %69 = vector.broadcast %67 : vector<2x1xf32> to vector<2x4xf32>
    %70 = vector.broadcast %68 : vector<1x4xf32> to vector<2x4xf32>
    %71 = arith.mulf %69, %70 : vector<2x4xf32>
    %72 = arith.addf %32, %71 : vector<2x4xf32>
    %73 = vector.extract_strided_slice %29 {offsets = [0, 1, 0], sizes = [2, 1, 512], strides = [1, 1, 1]} : vector<2x16x512xf32> to vector<2x1x512xf32>
    %74 = vector.shape_cast %73 : vector<2x1x512xf32> to vector<2x512xf32>
    %75 = vector.broadcast %67 : vector<2x1xf32> to vector<2x512xf32>
    %76 = vector.broadcast %3 : vector<1x512xf32> to vector<2x512xf32>
    %77 = arith.mulf %75, %76 : vector<2x512xf32>
    %78 = arith.addf %74, %77 : vector<2x512xf32>
    %79 = vector.extract_strided_slice %78 {offsets = [0, 0], sizes = [2, 128], strides = [1, 1]} : vector<2x512xf32> to vector<2x128xf32>
    %80 = arith.negf %79 : vector<2x128xf32>
    %81 = math.exp %80 : vector<2x128xf32>
    %cst_20 = arith.constant 1.000000e+00 : f32
    %82 = vector.broadcast %cst_20 : f32 to vector<2x128xf32>
    %83 = arith.addf %82, %81 : vector<2x128xf32>
    %84 = arith.divf %82, %83 : vector<2x128xf32>
    %85 = vector.extract_strided_slice %78 {offsets = [0, 128], sizes = [2, 128], strides = [1, 1]} : vector<2x512xf32> to vector<2x128xf32>
    %86 = arith.negf %85 : vector<2x128xf32>
    %87 = math.exp %86 : vector<2x128xf32>
    %cst_21 = arith.constant 1.000000e+00 : f32
    %88 = vector.broadcast %cst_21 : f32 to vector<2x128xf32>
    %89 = arith.addf %88, %87 : vector<2x128xf32>
    %90 = arith.divf %88, %89 : vector<2x128xf32>
    %91 = vector.extract_strided_slice %78 {offsets = [0, 256], sizes = [2, 128], strides = [1, 1]} : vector<2x512xf32> to vector<2x128xf32>
    %92 = math.tanh %91 : vector<2x128xf32>
    %93 = vector.extract_strided_slice %78 {offsets = [0, 384], sizes = [2, 128], strides = [1, 1]} : vector<2x512xf32> to vector<2x128xf32>
    %94 = arith.negf %93 : vector<2x128xf32>
    %95 = math.exp %94 : vector<2x128xf32>
    %cst_22 = arith.constant 1.000000e+00 : f32
    %96 = vector.broadcast %cst_22 : f32 to vector<2x128xf32>
    %97 = arith.addf %96, %95 : vector<2x128xf32>
    %98 = arith.divf %96, %97 : vector<2x128xf32>
    %99 = arith.mulf %90, %61 : vector<2x128xf32>
    %100 = arith.mulf %84, %92 : vector<2x128xf32>
    %101 = arith.addf %99, %100 : vector<2x128xf32>
    %102 = math.tanh %101 : vector<2x128xf32>
    %103 = arith.mulf %98, %102 : vector<2x128xf32>
    %104 = vector.broadcast %4 : vector<1x128xf32> to vector<2x128xf32>
    %105 = arith.mulf %103, %104 : vector<2x128xf32>
    %cst_23 = arith.constant dense<0.000000e+00> : vector<2xf32>
    %106 = vector.multi_reduction <add>, %105, %cst_23 [1] : vector<2x128xf32> to vector<2xf32>
    %107 = vector.shape_cast %106 : vector<2xf32> to vector<2x1xf32>
    %108 = vector.extract_strided_slice %5 {offsets = [1, 0], sizes = [1, 4], strides = [1, 1]} : vector<16x4xf32> to vector<1x4xf32>
    %109 = vector.broadcast %107 : vector<2x1xf32> to vector<2x4xf32>
    %110 = vector.broadcast %108 : vector<1x4xf32> to vector<2x4xf32>
    %111 = arith.mulf %109, %110 : vector<2x4xf32>
    %112 = arith.addf %72, %111 : vector<2x4xf32>
    %113 = vector.extract_strided_slice %29 {offsets = [0, 2, 0], sizes = [2, 1, 512], strides = [1, 1, 1]} : vector<2x16x512xf32> to vector<2x1x512xf32>
    %114 = vector.shape_cast %113 : vector<2x1x512xf32> to vector<2x512xf32>
    %115 = vector.broadcast %107 : vector<2x1xf32> to vector<2x512xf32>
    %116 = vector.broadcast %3 : vector<1x512xf32> to vector<2x512xf32>
    %117 = arith.mulf %115, %116 : vector<2x512xf32>
    %118 = arith.addf %114, %117 : vector<2x512xf32>
    %119 = vector.extract_strided_slice %118 {offsets = [0, 0], sizes = [2, 128], strides = [1, 1]} : vector<2x512xf32> to vector<2x128xf32>
    %120 = arith.negf %119 : vector<2x128xf32>
    %121 = math.exp %120 : vector<2x128xf32>
    %cst_24 = arith.constant 1.000000e+00 : f32
    %122 = vector.broadcast %cst_24 : f32 to vector<2x128xf32>
    %123 = arith.addf %122, %121 : vector<2x128xf32>
    %124 = arith.divf %122, %123 : vector<2x128xf32>
    %125 = vector.extract_strided_slice %118 {offsets = [0, 128], sizes = [2, 128], strides = [1, 1]} : vector<2x512xf32> to vector<2x128xf32>
    %126 = arith.negf %125 : vector<2x128xf32>
    %127 = math.exp %126 : vector<2x128xf32>
    %cst_25 = arith.constant 1.000000e+00 : f32
    %128 = vector.broadcast %cst_25 : f32 to vector<2x128xf32>
    %129 = arith.addf %128, %127 : vector<2x128xf32>
    %130 = arith.divf %128, %129 : vector<2x128xf32>
    %131 = vector.extract_strided_slice %118 {offsets = [0, 256], sizes = [2, 128], strides = [1, 1]} : vector<2x512xf32> to vector<2x128xf32>
    %132 = math.tanh %131 : vector<2x128xf32>
    %133 = vector.extract_strided_slice %118 {offsets = [0, 384], sizes = [2, 128], strides = [1, 1]} : vector<2x512xf32> to vector<2x128xf32>
    %134 = arith.negf %133 : vector<2x128xf32>
    %135 = math.exp %134 : vector<2x128xf32>
    %cst_26 = arith.constant 1.000000e+00 : f32
    %136 = vector.broadcast %cst_26 : f32 to vector<2x128xf32>
    %137 = arith.addf %136, %135 : vector<2x128xf32>
    %138 = arith.divf %136, %137 : vector<2x128xf32>
    %139 = arith.mulf %130, %101 : vector<2x128xf32>
    %140 = arith.mulf %124, %132 : vector<2x128xf32>
    %141 = arith.addf %139, %140 : vector<2x128xf32>
    %142 = math.tanh %141 : vector<2x128xf32>
    %143 = arith.mulf %138, %142 : vector<2x128xf32>
    %144 = vector.broadcast %4 : vector<1x128xf32> to vector<2x128xf32>
    %145 = arith.mulf %143, %144 : vector<2x128xf32>
    %cst_27 = arith.constant dense<0.000000e+00> : vector<2xf32>
    %146 = vector.multi_reduction <add>, %145, %cst_27 [1] : vector<2x128xf32> to vector<2xf32>
    %147 = vector.shape_cast %146 : vector<2xf32> to vector<2x1xf32>
    %148 = vector.extract_strided_slice %5 {offsets = [2, 0], sizes = [1, 4], strides = [1, 1]} : vector<16x4xf32> to vector<1x4xf32>
    %149 = vector.broadcast %147 : vector<2x1xf32> to vector<2x4xf32>
    %150 = vector.broadcast %148 : vector<1x4xf32> to vector<2x4xf32>
    %151 = arith.mulf %149, %150 : vector<2x4xf32>
    %152 = arith.addf %112, %151 : vector<2x4xf32>
    %153 = vector.extract_strided_slice %29 {offsets = [0, 3, 0], sizes = [2, 1, 512], strides = [1, 1, 1]} : vector<2x16x512xf32> to vector<2x1x512xf32>
    %154 = vector.shape_cast %153 : vector<2x1x512xf32> to vector<2x512xf32>
    %155 = vector.broadcast %147 : vector<2x1xf32> to vector<2x512xf32>
    %156 = vector.broadcast %3 : vector<1x512xf32> to vector<2x512xf32>
    %157 = arith.mulf %155, %156 : vector<2x512xf32>
    %158 = arith.addf %154, %157 : vector<2x512xf32>
    %159 = vector.extract_strided_slice %158 {offsets = [0, 0], sizes = [2, 128], strides = [1, 1]} : vector<2x512xf32> to vector<2x128xf32>
    %160 = arith.negf %159 : vector<2x128xf32>
    %161 = math.exp %160 : vector<2x128xf32>
    %cst_28 = arith.constant 1.000000e+00 : f32
    %162 = vector.broadcast %cst_28 : f32 to vector<2x128xf32>
    %163 = arith.addf %162, %161 : vector<2x128xf32>
    %164 = arith.divf %162, %163 : vector<2x128xf32>
    %165 = vector.extract_strided_slice %158 {offsets = [0, 128], sizes = [2, 128], strides = [1, 1]} : vector<2x512xf32> to vector<2x128xf32>
    %166 = arith.negf %165 : vector<2x128xf32>
    %167 = math.exp %166 : vector<2x128xf32>
    %cst_29 = arith.constant 1.000000e+00 : f32
    %168 = vector.broadcast %cst_29 : f32 to vector<2x128xf32>
    %169 = arith.addf %168, %167 : vector<2x128xf32>
    %170 = arith.divf %168, %169 : vector<2x128xf32>
    %171 = vector.extract_strided_slice %158 {offsets = [0, 256], sizes = [2, 128], strides = [1, 1]} : vector<2x512xf32> to vector<2x128xf32>
    %172 = math.tanh %171 : vector<2x128xf32>
    %173 = vector.extract_strided_slice %158 {offsets = [0, 384], sizes = [2, 128], strides = [1, 1]} : vector<2x512xf32> to vector<2x128xf32>
    %174 = arith.negf %173 : vector<2x128xf32>
    %175 = math.exp %174 : vector<2x128xf32>
    %cst_30 = arith.constant 1.000000e+00 : f32
    %176 = vector.broadcast %cst_30 : f32 to vector<2x128xf32>
    %177 = arith.addf %176, %175 : vector<2x128xf32>
    %178 = arith.divf %176, %177 : vector<2x128xf32>
    %179 = arith.mulf %170, %141 : vector<2x128xf32>
    %180 = arith.mulf %164, %172 : vector<2x128xf32>
    %181 = arith.addf %179, %180 : vector<2x128xf32>
    %182 = math.tanh %181 : vector<2x128xf32>
    %183 = arith.mulf %178, %182 : vector<2x128xf32>
    %184 = vector.broadcast %4 : vector<1x128xf32> to vector<2x128xf32>
    %185 = arith.mulf %183, %184 : vector<2x128xf32>
    %cst_31 = arith.constant dense<0.000000e+00> : vector<2xf32>
    %186 = vector.multi_reduction <add>, %185, %cst_31 [1] : vector<2x128xf32> to vector<2xf32>
    %187 = vector.shape_cast %186 : vector<2xf32> to vector<2x1xf32>
    %188 = vector.extract_strided_slice %5 {offsets = [3, 0], sizes = [1, 4], strides = [1, 1]} : vector<16x4xf32> to vector<1x4xf32>
    %189 = vector.broadcast %187 : vector<2x1xf32> to vector<2x4xf32>
    %190 = vector.broadcast %188 : vector<1x4xf32> to vector<2x4xf32>
    %191 = arith.mulf %189, %190 : vector<2x4xf32>
    %192 = arith.addf %152, %191 : vector<2x4xf32>
    %193 = vector.extract_strided_slice %29 {offsets = [0, 4, 0], sizes = [2, 1, 512], strides = [1, 1, 1]} : vector<2x16x512xf32> to vector<2x1x512xf32>
    %194 = vector.shape_cast %193 : vector<2x1x512xf32> to vector<2x512xf32>
    %195 = vector.broadcast %187 : vector<2x1xf32> to vector<2x512xf32>
    %196 = vector.broadcast %3 : vector<1x512xf32> to vector<2x512xf32>
    %197 = arith.mulf %195, %196 : vector<2x512xf32>
    %198 = arith.addf %194, %197 : vector<2x512xf32>
    %199 = vector.extract_strided_slice %198 {offsets = [0, 0], sizes = [2, 128], strides = [1, 1]} : vector<2x512xf32> to vector<2x128xf32>
    %200 = arith.negf %199 : vector<2x128xf32>
    %201 = math.exp %200 : vector<2x128xf32>
    %cst_32 = arith.constant 1.000000e+00 : f32
    %202 = vector.broadcast %cst_32 : f32 to vector<2x128xf32>
    %203 = arith.addf %202, %201 : vector<2x128xf32>
    %204 = arith.divf %202, %203 : vector<2x128xf32>
    %205 = vector.extract_strided_slice %198 {offsets = [0, 128], sizes = [2, 128], strides = [1, 1]} : vector<2x512xf32> to vector<2x128xf32>
    %206 = arith.negf %205 : vector<2x128xf32>
    %207 = math.exp %206 : vector<2x128xf32>
    %cst_33 = arith.constant 1.000000e+00 : f32
    %208 = vector.broadcast %cst_33 : f32 to vector<2x128xf32>
    %209 = arith.addf %208, %207 : vector<2x128xf32>
    %210 = arith.divf %208, %209 : vector<2x128xf32>
    %211 = vector.extract_strided_slice %198 {offsets = [0, 256], sizes = [2, 128], strides = [1, 1]} : vector<2x512xf32> to vector<2x128xf32>
    %212 = math.tanh %211 : vector<2x128xf32>
    %213 = vector.extract_strided_slice %198 {offsets = [0, 384], sizes = [2, 128], strides = [1, 1]} : vector<2x512xf32> to vector<2x128xf32>
    %214 = arith.negf %213 : vector<2x128xf32>
    %215 = math.exp %214 : vector<2x128xf32>
    %cst_34 = arith.constant 1.000000e+00 : f32
    %216 = vector.broadcast %cst_34 : f32 to vector<2x128xf32>
    %217 = arith.addf %216, %215 : vector<2x128xf32>
    %218 = arith.divf %216, %217 : vector<2x128xf32>
    %219 = arith.mulf %210, %181 : vector<2x128xf32>
    %220 = arith.mulf %204, %212 : vector<2x128xf32>
    %221 = arith.addf %219, %220 : vector<2x128xf32>
    %222 = math.tanh %221 : vector<2x128xf32>
    %223 = arith.mulf %218, %222 : vector<2x128xf32>
    %224 = vector.broadcast %4 : vector<1x128xf32> to vector<2x128xf32>
    %225 = arith.mulf %223, %224 : vector<2x128xf32>
    %cst_35 = arith.constant dense<0.000000e+00> : vector<2xf32>
    %226 = vector.multi_reduction <add>, %225, %cst_35 [1] : vector<2x128xf32> to vector<2xf32>
    %227 = vector.shape_cast %226 : vector<2xf32> to vector<2x1xf32>
    %228 = vector.extract_strided_slice %5 {offsets = [4, 0], sizes = [1, 4], strides = [1, 1]} : vector<16x4xf32> to vector<1x4xf32>
    %229 = vector.broadcast %227 : vector<2x1xf32> to vector<2x4xf32>
    %230 = vector.broadcast %228 : vector<1x4xf32> to vector<2x4xf32>
    %231 = arith.mulf %229, %230 : vector<2x4xf32>
    %232 = arith.addf %192, %231 : vector<2x4xf32>
    %233 = vector.extract_strided_slice %29 {offsets = [0, 5, 0], sizes = [2, 1, 512], strides = [1, 1, 1]} : vector<2x16x512xf32> to vector<2x1x512xf32>
    %234 = vector.shape_cast %233 : vector<2x1x512xf32> to vector<2x512xf32>
    %235 = vector.broadcast %227 : vector<2x1xf32> to vector<2x512xf32>
    %236 = vector.broadcast %3 : vector<1x512xf32> to vector<2x512xf32>
    %237 = arith.mulf %235, %236 : vector<2x512xf32>
    %238 = arith.addf %234, %237 : vector<2x512xf32>
    %239 = vector.extract_strided_slice %238 {offsets = [0, 0], sizes = [2, 128], strides = [1, 1]} : vector<2x512xf32> to vector<2x128xf32>
    %240 = arith.negf %239 : vector<2x128xf32>
    %241 = math.exp %240 : vector<2x128xf32>
    %cst_36 = arith.constant 1.000000e+00 : f32
    %242 = vector.broadcast %cst_36 : f32 to vector<2x128xf32>
    %243 = arith.addf %242, %241 : vector<2x128xf32>
    %244 = arith.divf %242, %243 : vector<2x128xf32>
    %245 = vector.extract_strided_slice %238 {offsets = [0, 128], sizes = [2, 128], strides = [1, 1]} : vector<2x512xf32> to vector<2x128xf32>
    %246 = arith.negf %245 : vector<2x128xf32>
    %247 = math.exp %246 : vector<2x128xf32>
    %cst_37 = arith.constant 1.000000e+00 : f32
    %248 = vector.broadcast %cst_37 : f32 to vector<2x128xf32>
    %249 = arith.addf %248, %247 : vector<2x128xf32>
    %250 = arith.divf %248, %249 : vector<2x128xf32>
    %251 = vector.extract_strided_slice %238 {offsets = [0, 256], sizes = [2, 128], strides = [1, 1]} : vector<2x512xf32> to vector<2x128xf32>
    %252 = math.tanh %251 : vector<2x128xf32>
    %253 = vector.extract_strided_slice %238 {offsets = [0, 384], sizes = [2, 128], strides = [1, 1]} : vector<2x512xf32> to vector<2x128xf32>
    %254 = arith.negf %253 : vector<2x128xf32>
    %255 = math.exp %254 : vector<2x128xf32>
    %cst_38 = arith.constant 1.000000e+00 : f32
    %256 = vector.broadcast %cst_38 : f32 to vector<2x128xf32>
    %257 = arith.addf %256, %255 : vector<2x128xf32>
    %258 = arith.divf %256, %257 : vector<2x128xf32>
    %259 = arith.mulf %250, %221 : vector<2x128xf32>
    %260 = arith.mulf %244, %252 : vector<2x128xf32>
    %261 = arith.addf %259, %260 : vector<2x128xf32>
    %262 = math.tanh %261 : vector<2x128xf32>
    %263 = arith.mulf %258, %262 : vector<2x128xf32>
    %264 = vector.broadcast %4 : vector<1x128xf32> to vector<2x128xf32>
    %265 = arith.mulf %263, %264 : vector<2x128xf32>
    %cst_39 = arith.constant dense<0.000000e+00> : vector<2xf32>
    %266 = vector.multi_reduction <add>, %265, %cst_39 [1] : vector<2x128xf32> to vector<2xf32>
    %267 = vector.shape_cast %266 : vector<2xf32> to vector<2x1xf32>
    %268 = vector.extract_strided_slice %5 {offsets = [5, 0], sizes = [1, 4], strides = [1, 1]} : vector<16x4xf32> to vector<1x4xf32>
    %269 = vector.broadcast %267 : vector<2x1xf32> to vector<2x4xf32>
    %270 = vector.broadcast %268 : vector<1x4xf32> to vector<2x4xf32>
    %271 = arith.mulf %269, %270 : vector<2x4xf32>
    %272 = arith.addf %232, %271 : vector<2x4xf32>
    %273 = vector.extract_strided_slice %29 {offsets = [0, 6, 0], sizes = [2, 1, 512], strides = [1, 1, 1]} : vector<2x16x512xf32> to vector<2x1x512xf32>
    %274 = vector.shape_cast %273 : vector<2x1x512xf32> to vector<2x512xf32>
    %275 = vector.broadcast %267 : vector<2x1xf32> to vector<2x512xf32>
    %276 = vector.broadcast %3 : vector<1x512xf32> to vector<2x512xf32>
    %277 = arith.mulf %275, %276 : vector<2x512xf32>
    %278 = arith.addf %274, %277 : vector<2x512xf32>
    %279 = vector.extract_strided_slice %278 {offsets = [0, 0], sizes = [2, 128], strides = [1, 1]} : vector<2x512xf32> to vector<2x128xf32>
    %280 = arith.negf %279 : vector<2x128xf32>
    %281 = math.exp %280 : vector<2x128xf32>
    %cst_40 = arith.constant 1.000000e+00 : f32
    %282 = vector.broadcast %cst_40 : f32 to vector<2x128xf32>
    %283 = arith.addf %282, %281 : vector<2x128xf32>
    %284 = arith.divf %282, %283 : vector<2x128xf32>
    %285 = vector.extract_strided_slice %278 {offsets = [0, 128], sizes = [2, 128], strides = [1, 1]} : vector<2x512xf32> to vector<2x128xf32>
    %286 = arith.negf %285 : vector<2x128xf32>
    %287 = math.exp %286 : vector<2x128xf32>
    %cst_41 = arith.constant 1.000000e+00 : f32
    %288 = vector.broadcast %cst_41 : f32 to vector<2x128xf32>
    %289 = arith.addf %288, %287 : vector<2x128xf32>
    %290 = arith.divf %288, %289 : vector<2x128xf32>
    %291 = vector.extract_strided_slice %278 {offsets = [0, 256], sizes = [2, 128], strides = [1, 1]} : vector<2x512xf32> to vector<2x128xf32>
    %292 = math.tanh %291 : vector<2x128xf32>
    %293 = vector.extract_strided_slice %278 {offsets = [0, 384], sizes = [2, 128], strides = [1, 1]} : vector<2x512xf32> to vector<2x128xf32>
    %294 = arith.negf %293 : vector<2x128xf32>
    %295 = math.exp %294 : vector<2x128xf32>
    %cst_42 = arith.constant 1.000000e+00 : f32
    %296 = vector.broadcast %cst_42 : f32 to vector<2x128xf32>
    %297 = arith.addf %296, %295 : vector<2x128xf32>
    %298 = arith.divf %296, %297 : vector<2x128xf32>
    %299 = arith.mulf %290, %261 : vector<2x128xf32>
    %300 = arith.mulf %284, %292 : vector<2x128xf32>
    %301 = arith.addf %299, %300 : vector<2x128xf32>
    %302 = math.tanh %301 : vector<2x128xf32>
    %303 = arith.mulf %298, %302 : vector<2x128xf32>
    %304 = vector.broadcast %4 : vector<1x128xf32> to vector<2x128xf32>
    %305 = arith.mulf %303, %304 : vector<2x128xf32>
    %cst_43 = arith.constant dense<0.000000e+00> : vector<2xf32>
    %306 = vector.multi_reduction <add>, %305, %cst_43 [1] : vector<2x128xf32> to vector<2xf32>
    %307 = vector.shape_cast %306 : vector<2xf32> to vector<2x1xf32>
    %308 = vector.extract_strided_slice %5 {offsets = [6, 0], sizes = [1, 4], strides = [1, 1]} : vector<16x4xf32> to vector<1x4xf32>
    %309 = vector.broadcast %307 : vector<2x1xf32> to vector<2x4xf32>
    %310 = vector.broadcast %308 : vector<1x4xf32> to vector<2x4xf32>
    %311 = arith.mulf %309, %310 : vector<2x4xf32>
    %312 = arith.addf %272, %311 : vector<2x4xf32>
    %313 = vector.extract_strided_slice %29 {offsets = [0, 7, 0], sizes = [2, 1, 512], strides = [1, 1, 1]} : vector<2x16x512xf32> to vector<2x1x512xf32>
    %314 = vector.shape_cast %313 : vector<2x1x512xf32> to vector<2x512xf32>
    %315 = vector.broadcast %307 : vector<2x1xf32> to vector<2x512xf32>
    %316 = vector.broadcast %3 : vector<1x512xf32> to vector<2x512xf32>
    %317 = arith.mulf %315, %316 : vector<2x512xf32>
    %318 = arith.addf %314, %317 : vector<2x512xf32>
    %319 = vector.extract_strided_slice %318 {offsets = [0, 0], sizes = [2, 128], strides = [1, 1]} : vector<2x512xf32> to vector<2x128xf32>
    %320 = arith.negf %319 : vector<2x128xf32>
    %321 = math.exp %320 : vector<2x128xf32>
    %cst_44 = arith.constant 1.000000e+00 : f32
    %322 = vector.broadcast %cst_44 : f32 to vector<2x128xf32>
    %323 = arith.addf %322, %321 : vector<2x128xf32>
    %324 = arith.divf %322, %323 : vector<2x128xf32>
    %325 = vector.extract_strided_slice %318 {offsets = [0, 128], sizes = [2, 128], strides = [1, 1]} : vector<2x512xf32> to vector<2x128xf32>
    %326 = arith.negf %325 : vector<2x128xf32>
    %327 = math.exp %326 : vector<2x128xf32>
    %cst_45 = arith.constant 1.000000e+00 : f32
    %328 = vector.broadcast %cst_45 : f32 to vector<2x128xf32>
    %329 = arith.addf %328, %327 : vector<2x128xf32>
    %330 = arith.divf %328, %329 : vector<2x128xf32>
    %331 = vector.extract_strided_slice %318 {offsets = [0, 256], sizes = [2, 128], strides = [1, 1]} : vector<2x512xf32> to vector<2x128xf32>
    %332 = math.tanh %331 : vector<2x128xf32>
    %333 = vector.extract_strided_slice %318 {offsets = [0, 384], sizes = [2, 128], strides = [1, 1]} : vector<2x512xf32> to vector<2x128xf32>
    %334 = arith.negf %333 : vector<2x128xf32>
    %335 = math.exp %334 : vector<2x128xf32>
    %cst_46 = arith.constant 1.000000e+00 : f32
    %336 = vector.broadcast %cst_46 : f32 to vector<2x128xf32>
    %337 = arith.addf %336, %335 : vector<2x128xf32>
    %338 = arith.divf %336, %337 : vector<2x128xf32>
    %339 = arith.mulf %330, %301 : vector<2x128xf32>
    %340 = arith.mulf %324, %332 : vector<2x128xf32>
    %341 = arith.addf %339, %340 : vector<2x128xf32>
    %342 = math.tanh %341 : vector<2x128xf32>
    %343 = arith.mulf %338, %342 : vector<2x128xf32>
    %344 = vector.broadcast %4 : vector<1x128xf32> to vector<2x128xf32>
    %345 = arith.mulf %343, %344 : vector<2x128xf32>
    %cst_47 = arith.constant dense<0.000000e+00> : vector<2xf32>
    %346 = vector.multi_reduction <add>, %345, %cst_47 [1] : vector<2x128xf32> to vector<2xf32>
    %347 = vector.shape_cast %346 : vector<2xf32> to vector<2x1xf32>
    %348 = vector.extract_strided_slice %5 {offsets = [7, 0], sizes = [1, 4], strides = [1, 1]} : vector<16x4xf32> to vector<1x4xf32>
    %349 = vector.broadcast %347 : vector<2x1xf32> to vector<2x4xf32>
    %350 = vector.broadcast %348 : vector<1x4xf32> to vector<2x4xf32>
    %351 = arith.mulf %349, %350 : vector<2x4xf32>
    %352 = arith.addf %312, %351 : vector<2x4xf32>
    %353 = vector.extract_strided_slice %29 {offsets = [0, 8, 0], sizes = [2, 1, 512], strides = [1, 1, 1]} : vector<2x16x512xf32> to vector<2x1x512xf32>
    %354 = vector.shape_cast %353 : vector<2x1x512xf32> to vector<2x512xf32>
    %355 = vector.broadcast %347 : vector<2x1xf32> to vector<2x512xf32>
    %356 = vector.broadcast %3 : vector<1x512xf32> to vector<2x512xf32>
    %357 = arith.mulf %355, %356 : vector<2x512xf32>
    %358 = arith.addf %354, %357 : vector<2x512xf32>
    %359 = vector.extract_strided_slice %358 {offsets = [0, 0], sizes = [2, 128], strides = [1, 1]} : vector<2x512xf32> to vector<2x128xf32>
    %360 = arith.negf %359 : vector<2x128xf32>
    %361 = math.exp %360 : vector<2x128xf32>
    %cst_48 = arith.constant 1.000000e+00 : f32
    %362 = vector.broadcast %cst_48 : f32 to vector<2x128xf32>
    %363 = arith.addf %362, %361 : vector<2x128xf32>
    %364 = arith.divf %362, %363 : vector<2x128xf32>
    %365 = vector.extract_strided_slice %358 {offsets = [0, 128], sizes = [2, 128], strides = [1, 1]} : vector<2x512xf32> to vector<2x128xf32>
    %366 = arith.negf %365 : vector<2x128xf32>
    %367 = math.exp %366 : vector<2x128xf32>
    %cst_49 = arith.constant 1.000000e+00 : f32
    %368 = vector.broadcast %cst_49 : f32 to vector<2x128xf32>
    %369 = arith.addf %368, %367 : vector<2x128xf32>
    %370 = arith.divf %368, %369 : vector<2x128xf32>
    %371 = vector.extract_strided_slice %358 {offsets = [0, 256], sizes = [2, 128], strides = [1, 1]} : vector<2x512xf32> to vector<2x128xf32>
    %372 = math.tanh %371 : vector<2x128xf32>
    %373 = vector.extract_strided_slice %358 {offsets = [0, 384], sizes = [2, 128], strides = [1, 1]} : vector<2x512xf32> to vector<2x128xf32>
    %374 = arith.negf %373 : vector<2x128xf32>
    %375 = math.exp %374 : vector<2x128xf32>
    %cst_50 = arith.constant 1.000000e+00 : f32
    %376 = vector.broadcast %cst_50 : f32 to vector<2x128xf32>
    %377 = arith.addf %376, %375 : vector<2x128xf32>
    %378 = arith.divf %376, %377 : vector<2x128xf32>
    %379 = arith.mulf %370, %341 : vector<2x128xf32>
    %380 = arith.mulf %364, %372 : vector<2x128xf32>
    %381 = arith.addf %379, %380 : vector<2x128xf32>
    %382 = math.tanh %381 : vector<2x128xf32>
    %383 = arith.mulf %378, %382 : vector<2x128xf32>
    %384 = vector.broadcast %4 : vector<1x128xf32> to vector<2x128xf32>
    %385 = arith.mulf %383, %384 : vector<2x128xf32>
    %cst_51 = arith.constant dense<0.000000e+00> : vector<2xf32>
    %386 = vector.multi_reduction <add>, %385, %cst_51 [1] : vector<2x128xf32> to vector<2xf32>
    %387 = vector.shape_cast %386 : vector<2xf32> to vector<2x1xf32>
    %388 = vector.extract_strided_slice %5 {offsets = [8, 0], sizes = [1, 4], strides = [1, 1]} : vector<16x4xf32> to vector<1x4xf32>
    %389 = vector.broadcast %387 : vector<2x1xf32> to vector<2x4xf32>
    %390 = vector.broadcast %388 : vector<1x4xf32> to vector<2x4xf32>
    %391 = arith.mulf %389, %390 : vector<2x4xf32>
    %392 = arith.addf %352, %391 : vector<2x4xf32>
    %393 = vector.extract_strided_slice %29 {offsets = [0, 9, 0], sizes = [2, 1, 512], strides = [1, 1, 1]} : vector<2x16x512xf32> to vector<2x1x512xf32>
    %394 = vector.shape_cast %393 : vector<2x1x512xf32> to vector<2x512xf32>
    %395 = vector.broadcast %387 : vector<2x1xf32> to vector<2x512xf32>
    %396 = vector.broadcast %3 : vector<1x512xf32> to vector<2x512xf32>
    %397 = arith.mulf %395, %396 : vector<2x512xf32>
    %398 = arith.addf %394, %397 : vector<2x512xf32>
    %399 = vector.extract_strided_slice %398 {offsets = [0, 0], sizes = [2, 128], strides = [1, 1]} : vector<2x512xf32> to vector<2x128xf32>
    %400 = arith.negf %399 : vector<2x128xf32>
    %401 = math.exp %400 : vector<2x128xf32>
    %cst_52 = arith.constant 1.000000e+00 : f32
    %402 = vector.broadcast %cst_52 : f32 to vector<2x128xf32>
    %403 = arith.addf %402, %401 : vector<2x128xf32>
    %404 = arith.divf %402, %403 : vector<2x128xf32>
    %405 = vector.extract_strided_slice %398 {offsets = [0, 128], sizes = [2, 128], strides = [1, 1]} : vector<2x512xf32> to vector<2x128xf32>
    %406 = arith.negf %405 : vector<2x128xf32>
    %407 = math.exp %406 : vector<2x128xf32>
    %cst_53 = arith.constant 1.000000e+00 : f32
    %408 = vector.broadcast %cst_53 : f32 to vector<2x128xf32>
    %409 = arith.addf %408, %407 : vector<2x128xf32>
    %410 = arith.divf %408, %409 : vector<2x128xf32>
    %411 = vector.extract_strided_slice %398 {offsets = [0, 256], sizes = [2, 128], strides = [1, 1]} : vector<2x512xf32> to vector<2x128xf32>
    %412 = math.tanh %411 : vector<2x128xf32>
    %413 = vector.extract_strided_slice %398 {offsets = [0, 384], sizes = [2, 128], strides = [1, 1]} : vector<2x512xf32> to vector<2x128xf32>
    %414 = arith.negf %413 : vector<2x128xf32>
    %415 = math.exp %414 : vector<2x128xf32>
    %cst_54 = arith.constant 1.000000e+00 : f32
    %416 = vector.broadcast %cst_54 : f32 to vector<2x128xf32>
    %417 = arith.addf %416, %415 : vector<2x128xf32>
    %418 = arith.divf %416, %417 : vector<2x128xf32>
    %419 = arith.mulf %410, %381 : vector<2x128xf32>
    %420 = arith.mulf %404, %412 : vector<2x128xf32>
    %421 = arith.addf %419, %420 : vector<2x128xf32>
    %422 = math.tanh %421 : vector<2x128xf32>
    %423 = arith.mulf %418, %422 : vector<2x128xf32>
    %424 = vector.broadcast %4 : vector<1x128xf32> to vector<2x128xf32>
    %425 = arith.mulf %423, %424 : vector<2x128xf32>
    %cst_55 = arith.constant dense<0.000000e+00> : vector<2xf32>
    %426 = vector.multi_reduction <add>, %425, %cst_55 [1] : vector<2x128xf32> to vector<2xf32>
    %427 = vector.shape_cast %426 : vector<2xf32> to vector<2x1xf32>
    %428 = vector.extract_strided_slice %5 {offsets = [9, 0], sizes = [1, 4], strides = [1, 1]} : vector<16x4xf32> to vector<1x4xf32>
    %429 = vector.broadcast %427 : vector<2x1xf32> to vector<2x4xf32>
    %430 = vector.broadcast %428 : vector<1x4xf32> to vector<2x4xf32>
    %431 = arith.mulf %429, %430 : vector<2x4xf32>
    %432 = arith.addf %392, %431 : vector<2x4xf32>
    %433 = vector.extract_strided_slice %29 {offsets = [0, 10, 0], sizes = [2, 1, 512], strides = [1, 1, 1]} : vector<2x16x512xf32> to vector<2x1x512xf32>
    %434 = vector.shape_cast %433 : vector<2x1x512xf32> to vector<2x512xf32>
    %435 = vector.broadcast %427 : vector<2x1xf32> to vector<2x512xf32>
    %436 = vector.broadcast %3 : vector<1x512xf32> to vector<2x512xf32>
    %437 = arith.mulf %435, %436 : vector<2x512xf32>
    %438 = arith.addf %434, %437 : vector<2x512xf32>
    %439 = vector.extract_strided_slice %438 {offsets = [0, 0], sizes = [2, 128], strides = [1, 1]} : vector<2x512xf32> to vector<2x128xf32>
    %440 = arith.negf %439 : vector<2x128xf32>
    %441 = math.exp %440 : vector<2x128xf32>
    %cst_56 = arith.constant 1.000000e+00 : f32
    %442 = vector.broadcast %cst_56 : f32 to vector<2x128xf32>
    %443 = arith.addf %442, %441 : vector<2x128xf32>
    %444 = arith.divf %442, %443 : vector<2x128xf32>
    %445 = vector.extract_strided_slice %438 {offsets = [0, 128], sizes = [2, 128], strides = [1, 1]} : vector<2x512xf32> to vector<2x128xf32>
    %446 = arith.negf %445 : vector<2x128xf32>
    %447 = math.exp %446 : vector<2x128xf32>
    %cst_57 = arith.constant 1.000000e+00 : f32
    %448 = vector.broadcast %cst_57 : f32 to vector<2x128xf32>
    %449 = arith.addf %448, %447 : vector<2x128xf32>
    %450 = arith.divf %448, %449 : vector<2x128xf32>
    %451 = vector.extract_strided_slice %438 {offsets = [0, 256], sizes = [2, 128], strides = [1, 1]} : vector<2x512xf32> to vector<2x128xf32>
    %452 = math.tanh %451 : vector<2x128xf32>
    %453 = vector.extract_strided_slice %438 {offsets = [0, 384], sizes = [2, 128], strides = [1, 1]} : vector<2x512xf32> to vector<2x128xf32>
    %454 = arith.negf %453 : vector<2x128xf32>
    %455 = math.exp %454 : vector<2x128xf32>
    %cst_58 = arith.constant 1.000000e+00 : f32
    %456 = vector.broadcast %cst_58 : f32 to vector<2x128xf32>
    %457 = arith.addf %456, %455 : vector<2x128xf32>
    %458 = arith.divf %456, %457 : vector<2x128xf32>
    %459 = arith.mulf %450, %421 : vector<2x128xf32>
    %460 = arith.mulf %444, %452 : vector<2x128xf32>
    %461 = arith.addf %459, %460 : vector<2x128xf32>
    %462 = math.tanh %461 : vector<2x128xf32>
    %463 = arith.mulf %458, %462 : vector<2x128xf32>
    %464 = vector.broadcast %4 : vector<1x128xf32> to vector<2x128xf32>
    %465 = arith.mulf %463, %464 : vector<2x128xf32>
    %cst_59 = arith.constant dense<0.000000e+00> : vector<2xf32>
    %466 = vector.multi_reduction <add>, %465, %cst_59 [1] : vector<2x128xf32> to vector<2xf32>
    %467 = vector.shape_cast %466 : vector<2xf32> to vector<2x1xf32>
    %468 = vector.extract_strided_slice %5 {offsets = [10, 0], sizes = [1, 4], strides = [1, 1]} : vector<16x4xf32> to vector<1x4xf32>
    %469 = vector.broadcast %467 : vector<2x1xf32> to vector<2x4xf32>
    %470 = vector.broadcast %468 : vector<1x4xf32> to vector<2x4xf32>
    %471 = arith.mulf %469, %470 : vector<2x4xf32>
    %472 = arith.addf %432, %471 : vector<2x4xf32>
    %473 = vector.extract_strided_slice %29 {offsets = [0, 11, 0], sizes = [2, 1, 512], strides = [1, 1, 1]} : vector<2x16x512xf32> to vector<2x1x512xf32>
    %474 = vector.shape_cast %473 : vector<2x1x512xf32> to vector<2x512xf32>
    %475 = vector.broadcast %467 : vector<2x1xf32> to vector<2x512xf32>
    %476 = vector.broadcast %3 : vector<1x512xf32> to vector<2x512xf32>
    %477 = arith.mulf %475, %476 : vector<2x512xf32>
    %478 = arith.addf %474, %477 : vector<2x512xf32>
    %479 = vector.extract_strided_slice %478 {offsets = [0, 0], sizes = [2, 128], strides = [1, 1]} : vector<2x512xf32> to vector<2x128xf32>
    %480 = arith.negf %479 : vector<2x128xf32>
    %481 = math.exp %480 : vector<2x128xf32>
    %cst_60 = arith.constant 1.000000e+00 : f32
    %482 = vector.broadcast %cst_60 : f32 to vector<2x128xf32>
    %483 = arith.addf %482, %481 : vector<2x128xf32>
    %484 = arith.divf %482, %483 : vector<2x128xf32>
    %485 = vector.extract_strided_slice %478 {offsets = [0, 128], sizes = [2, 128], strides = [1, 1]} : vector<2x512xf32> to vector<2x128xf32>
    %486 = arith.negf %485 : vector<2x128xf32>
    %487 = math.exp %486 : vector<2x128xf32>
    %cst_61 = arith.constant 1.000000e+00 : f32
    %488 = vector.broadcast %cst_61 : f32 to vector<2x128xf32>
    %489 = arith.addf %488, %487 : vector<2x128xf32>
    %490 = arith.divf %488, %489 : vector<2x128xf32>
    %491 = vector.extract_strided_slice %478 {offsets = [0, 256], sizes = [2, 128], strides = [1, 1]} : vector<2x512xf32> to vector<2x128xf32>
    %492 = math.tanh %491 : vector<2x128xf32>
    %493 = vector.extract_strided_slice %478 {offsets = [0, 384], sizes = [2, 128], strides = [1, 1]} : vector<2x512xf32> to vector<2x128xf32>
    %494 = arith.negf %493 : vector<2x128xf32>
    %495 = math.exp %494 : vector<2x128xf32>
    %cst_62 = arith.constant 1.000000e+00 : f32
    %496 = vector.broadcast %cst_62 : f32 to vector<2x128xf32>
    %497 = arith.addf %496, %495 : vector<2x128xf32>
    %498 = arith.divf %496, %497 : vector<2x128xf32>
    %499 = arith.mulf %490, %461 : vector<2x128xf32>
    %500 = arith.mulf %484, %492 : vector<2x128xf32>
    %501 = arith.addf %499, %500 : vector<2x128xf32>
    %502 = math.tanh %501 : vector<2x128xf32>
    %503 = arith.mulf %498, %502 : vector<2x128xf32>
    %504 = vector.broadcast %4 : vector<1x128xf32> to vector<2x128xf32>
    %505 = arith.mulf %503, %504 : vector<2x128xf32>
    %cst_63 = arith.constant dense<0.000000e+00> : vector<2xf32>
    %506 = vector.multi_reduction <add>, %505, %cst_63 [1] : vector<2x128xf32> to vector<2xf32>
    %507 = vector.shape_cast %506 : vector<2xf32> to vector<2x1xf32>
    %508 = vector.extract_strided_slice %5 {offsets = [11, 0], sizes = [1, 4], strides = [1, 1]} : vector<16x4xf32> to vector<1x4xf32>
    %509 = vector.broadcast %507 : vector<2x1xf32> to vector<2x4xf32>
    %510 = vector.broadcast %508 : vector<1x4xf32> to vector<2x4xf32>
    %511 = arith.mulf %509, %510 : vector<2x4xf32>
    %512 = arith.addf %472, %511 : vector<2x4xf32>
    %513 = vector.extract_strided_slice %29 {offsets = [0, 12, 0], sizes = [2, 1, 512], strides = [1, 1, 1]} : vector<2x16x512xf32> to vector<2x1x512xf32>
    %514 = vector.shape_cast %513 : vector<2x1x512xf32> to vector<2x512xf32>
    %515 = vector.broadcast %507 : vector<2x1xf32> to vector<2x512xf32>
    %516 = vector.broadcast %3 : vector<1x512xf32> to vector<2x512xf32>
    %517 = arith.mulf %515, %516 : vector<2x512xf32>
    %518 = arith.addf %514, %517 : vector<2x512xf32>
    %519 = vector.extract_strided_slice %518 {offsets = [0, 0], sizes = [2, 128], strides = [1, 1]} : vector<2x512xf32> to vector<2x128xf32>
    %520 = arith.negf %519 : vector<2x128xf32>
    %521 = math.exp %520 : vector<2x128xf32>
    %cst_64 = arith.constant 1.000000e+00 : f32
    %522 = vector.broadcast %cst_64 : f32 to vector<2x128xf32>
    %523 = arith.addf %522, %521 : vector<2x128xf32>
    %524 = arith.divf %522, %523 : vector<2x128xf32>
    %525 = vector.extract_strided_slice %518 {offsets = [0, 128], sizes = [2, 128], strides = [1, 1]} : vector<2x512xf32> to vector<2x128xf32>
    %526 = arith.negf %525 : vector<2x128xf32>
    %527 = math.exp %526 : vector<2x128xf32>
    %cst_65 = arith.constant 1.000000e+00 : f32
    %528 = vector.broadcast %cst_65 : f32 to vector<2x128xf32>
    %529 = arith.addf %528, %527 : vector<2x128xf32>
    %530 = arith.divf %528, %529 : vector<2x128xf32>
    %531 = vector.extract_strided_slice %518 {offsets = [0, 256], sizes = [2, 128], strides = [1, 1]} : vector<2x512xf32> to vector<2x128xf32>
    %532 = math.tanh %531 : vector<2x128xf32>
    %533 = vector.extract_strided_slice %518 {offsets = [0, 384], sizes = [2, 128], strides = [1, 1]} : vector<2x512xf32> to vector<2x128xf32>
    %534 = arith.negf %533 : vector<2x128xf32>
    %535 = math.exp %534 : vector<2x128xf32>
    %cst_66 = arith.constant 1.000000e+00 : f32
    %536 = vector.broadcast %cst_66 : f32 to vector<2x128xf32>
    %537 = arith.addf %536, %535 : vector<2x128xf32>
    %538 = arith.divf %536, %537 : vector<2x128xf32>
    %539 = arith.mulf %530, %501 : vector<2x128xf32>
    %540 = arith.mulf %524, %532 : vector<2x128xf32>
    %541 = arith.addf %539, %540 : vector<2x128xf32>
    %542 = math.tanh %541 : vector<2x128xf32>
    %543 = arith.mulf %538, %542 : vector<2x128xf32>
    %544 = vector.broadcast %4 : vector<1x128xf32> to vector<2x128xf32>
    %545 = arith.mulf %543, %544 : vector<2x128xf32>
    %cst_67 = arith.constant dense<0.000000e+00> : vector<2xf32>
    %546 = vector.multi_reduction <add>, %545, %cst_67 [1] : vector<2x128xf32> to vector<2xf32>
    %547 = vector.shape_cast %546 : vector<2xf32> to vector<2x1xf32>
    %548 = vector.extract_strided_slice %5 {offsets = [12, 0], sizes = [1, 4], strides = [1, 1]} : vector<16x4xf32> to vector<1x4xf32>
    %549 = vector.broadcast %547 : vector<2x1xf32> to vector<2x4xf32>
    %550 = vector.broadcast %548 : vector<1x4xf32> to vector<2x4xf32>
    %551 = arith.mulf %549, %550 : vector<2x4xf32>
    %552 = arith.addf %512, %551 : vector<2x4xf32>
    %553 = vector.extract_strided_slice %29 {offsets = [0, 13, 0], sizes = [2, 1, 512], strides = [1, 1, 1]} : vector<2x16x512xf32> to vector<2x1x512xf32>
    %554 = vector.shape_cast %553 : vector<2x1x512xf32> to vector<2x512xf32>
    %555 = vector.broadcast %547 : vector<2x1xf32> to vector<2x512xf32>
    %556 = vector.broadcast %3 : vector<1x512xf32> to vector<2x512xf32>
    %557 = arith.mulf %555, %556 : vector<2x512xf32>
    %558 = arith.addf %554, %557 : vector<2x512xf32>
    %559 = vector.extract_strided_slice %558 {offsets = [0, 0], sizes = [2, 128], strides = [1, 1]} : vector<2x512xf32> to vector<2x128xf32>
    %560 = arith.negf %559 : vector<2x128xf32>
    %561 = math.exp %560 : vector<2x128xf32>
    %cst_68 = arith.constant 1.000000e+00 : f32
    %562 = vector.broadcast %cst_68 : f32 to vector<2x128xf32>
    %563 = arith.addf %562, %561 : vector<2x128xf32>
    %564 = arith.divf %562, %563 : vector<2x128xf32>
    %565 = vector.extract_strided_slice %558 {offsets = [0, 128], sizes = [2, 128], strides = [1, 1]} : vector<2x512xf32> to vector<2x128xf32>
    %566 = arith.negf %565 : vector<2x128xf32>
    %567 = math.exp %566 : vector<2x128xf32>
    %cst_69 = arith.constant 1.000000e+00 : f32
    %568 = vector.broadcast %cst_69 : f32 to vector<2x128xf32>
    %569 = arith.addf %568, %567 : vector<2x128xf32>
    %570 = arith.divf %568, %569 : vector<2x128xf32>
    %571 = vector.extract_strided_slice %558 {offsets = [0, 256], sizes = [2, 128], strides = [1, 1]} : vector<2x512xf32> to vector<2x128xf32>
    %572 = math.tanh %571 : vector<2x128xf32>
    %573 = vector.extract_strided_slice %558 {offsets = [0, 384], sizes = [2, 128], strides = [1, 1]} : vector<2x512xf32> to vector<2x128xf32>
    %574 = arith.negf %573 : vector<2x128xf32>
    %575 = math.exp %574 : vector<2x128xf32>
    %cst_70 = arith.constant 1.000000e+00 : f32
    %576 = vector.broadcast %cst_70 : f32 to vector<2x128xf32>
    %577 = arith.addf %576, %575 : vector<2x128xf32>
    %578 = arith.divf %576, %577 : vector<2x128xf32>
    %579 = arith.mulf %570, %541 : vector<2x128xf32>
    %580 = arith.mulf %564, %572 : vector<2x128xf32>
    %581 = arith.addf %579, %580 : vector<2x128xf32>
    %582 = math.tanh %581 : vector<2x128xf32>
    %583 = arith.mulf %578, %582 : vector<2x128xf32>
    %584 = vector.broadcast %4 : vector<1x128xf32> to vector<2x128xf32>
    %585 = arith.mulf %583, %584 : vector<2x128xf32>
    %cst_71 = arith.constant dense<0.000000e+00> : vector<2xf32>
    %586 = vector.multi_reduction <add>, %585, %cst_71 [1] : vector<2x128xf32> to vector<2xf32>
    %587 = vector.shape_cast %586 : vector<2xf32> to vector<2x1xf32>
    %588 = vector.extract_strided_slice %5 {offsets = [13, 0], sizes = [1, 4], strides = [1, 1]} : vector<16x4xf32> to vector<1x4xf32>
    %589 = vector.broadcast %587 : vector<2x1xf32> to vector<2x4xf32>
    %590 = vector.broadcast %588 : vector<1x4xf32> to vector<2x4xf32>
    %591 = arith.mulf %589, %590 : vector<2x4xf32>
    %592 = arith.addf %552, %591 : vector<2x4xf32>
    %593 = vector.extract_strided_slice %29 {offsets = [0, 14, 0], sizes = [2, 1, 512], strides = [1, 1, 1]} : vector<2x16x512xf32> to vector<2x1x512xf32>
    %594 = vector.shape_cast %593 : vector<2x1x512xf32> to vector<2x512xf32>
    %595 = vector.broadcast %587 : vector<2x1xf32> to vector<2x512xf32>
    %596 = vector.broadcast %3 : vector<1x512xf32> to vector<2x512xf32>
    %597 = arith.mulf %595, %596 : vector<2x512xf32>
    %598 = arith.addf %594, %597 : vector<2x512xf32>
    %599 = vector.extract_strided_slice %598 {offsets = [0, 0], sizes = [2, 128], strides = [1, 1]} : vector<2x512xf32> to vector<2x128xf32>
    %600 = arith.negf %599 : vector<2x128xf32>
    %601 = math.exp %600 : vector<2x128xf32>
    %cst_72 = arith.constant 1.000000e+00 : f32
    %602 = vector.broadcast %cst_72 : f32 to vector<2x128xf32>
    %603 = arith.addf %602, %601 : vector<2x128xf32>
    %604 = arith.divf %602, %603 : vector<2x128xf32>
    %605 = vector.extract_strided_slice %598 {offsets = [0, 128], sizes = [2, 128], strides = [1, 1]} : vector<2x512xf32> to vector<2x128xf32>
    %606 = arith.negf %605 : vector<2x128xf32>
    %607 = math.exp %606 : vector<2x128xf32>
    %cst_73 = arith.constant 1.000000e+00 : f32
    %608 = vector.broadcast %cst_73 : f32 to vector<2x128xf32>
    %609 = arith.addf %608, %607 : vector<2x128xf32>
    %610 = arith.divf %608, %609 : vector<2x128xf32>
    %611 = vector.extract_strided_slice %598 {offsets = [0, 256], sizes = [2, 128], strides = [1, 1]} : vector<2x512xf32> to vector<2x128xf32>
    %612 = math.tanh %611 : vector<2x128xf32>
    %613 = vector.extract_strided_slice %598 {offsets = [0, 384], sizes = [2, 128], strides = [1, 1]} : vector<2x512xf32> to vector<2x128xf32>
    %614 = arith.negf %613 : vector<2x128xf32>
    %615 = math.exp %614 : vector<2x128xf32>
    %cst_74 = arith.constant 1.000000e+00 : f32
    %616 = vector.broadcast %cst_74 : f32 to vector<2x128xf32>
    %617 = arith.addf %616, %615 : vector<2x128xf32>
    %618 = arith.divf %616, %617 : vector<2x128xf32>
    %619 = arith.mulf %610, %581 : vector<2x128xf32>
    %620 = arith.mulf %604, %612 : vector<2x128xf32>
    %621 = arith.addf %619, %620 : vector<2x128xf32>
    %622 = math.tanh %621 : vector<2x128xf32>
    %623 = arith.mulf %618, %622 : vector<2x128xf32>
    %624 = vector.broadcast %4 : vector<1x128xf32> to vector<2x128xf32>
    %625 = arith.mulf %623, %624 : vector<2x128xf32>
    %cst_75 = arith.constant dense<0.000000e+00> : vector<2xf32>
    %626 = vector.multi_reduction <add>, %625, %cst_75 [1] : vector<2x128xf32> to vector<2xf32>
    %627 = vector.shape_cast %626 : vector<2xf32> to vector<2x1xf32>
    %628 = vector.extract_strided_slice %5 {offsets = [14, 0], sizes = [1, 4], strides = [1, 1]} : vector<16x4xf32> to vector<1x4xf32>
    %629 = vector.broadcast %627 : vector<2x1xf32> to vector<2x4xf32>
    %630 = vector.broadcast %628 : vector<1x4xf32> to vector<2x4xf32>
    %631 = arith.mulf %629, %630 : vector<2x4xf32>
    %632 = arith.addf %592, %631 : vector<2x4xf32>
    %633 = vector.extract_strided_slice %29 {offsets = [0, 15, 0], sizes = [2, 1, 512], strides = [1, 1, 1]} : vector<2x16x512xf32> to vector<2x1x512xf32>
    %634 = vector.shape_cast %633 : vector<2x1x512xf32> to vector<2x512xf32>
    %635 = vector.broadcast %627 : vector<2x1xf32> to vector<2x512xf32>
    %636 = vector.broadcast %3 : vector<1x512xf32> to vector<2x512xf32>
    %637 = arith.mulf %635, %636 : vector<2x512xf32>
    %638 = arith.addf %634, %637 : vector<2x512xf32>
    %639 = vector.extract_strided_slice %638 {offsets = [0, 0], sizes = [2, 128], strides = [1, 1]} : vector<2x512xf32> to vector<2x128xf32>
    %640 = arith.negf %639 : vector<2x128xf32>
    %641 = math.exp %640 : vector<2x128xf32>
    %cst_76 = arith.constant 1.000000e+00 : f32
    %642 = vector.broadcast %cst_76 : f32 to vector<2x128xf32>
    %643 = arith.addf %642, %641 : vector<2x128xf32>
    %644 = arith.divf %642, %643 : vector<2x128xf32>
    %645 = vector.extract_strided_slice %638 {offsets = [0, 128], sizes = [2, 128], strides = [1, 1]} : vector<2x512xf32> to vector<2x128xf32>
    %646 = arith.negf %645 : vector<2x128xf32>
    %647 = math.exp %646 : vector<2x128xf32>
    %cst_77 = arith.constant 1.000000e+00 : f32
    %648 = vector.broadcast %cst_77 : f32 to vector<2x128xf32>
    %649 = arith.addf %648, %647 : vector<2x128xf32>
    %650 = arith.divf %648, %649 : vector<2x128xf32>
    %651 = vector.extract_strided_slice %638 {offsets = [0, 256], sizes = [2, 128], strides = [1, 1]} : vector<2x512xf32> to vector<2x128xf32>
    %652 = math.tanh %651 : vector<2x128xf32>
    %653 = vector.extract_strided_slice %638 {offsets = [0, 384], sizes = [2, 128], strides = [1, 1]} : vector<2x512xf32> to vector<2x128xf32>
    %654 = arith.negf %653 : vector<2x128xf32>
    %655 = math.exp %654 : vector<2x128xf32>
    %cst_78 = arith.constant 1.000000e+00 : f32
    %656 = vector.broadcast %cst_78 : f32 to vector<2x128xf32>
    %657 = arith.addf %656, %655 : vector<2x128xf32>
    %658 = arith.divf %656, %657 : vector<2x128xf32>
    %659 = arith.mulf %650, %621 : vector<2x128xf32>
    %660 = arith.mulf %644, %652 : vector<2x128xf32>
    %661 = arith.addf %659, %660 : vector<2x128xf32>
    %662 = math.tanh %661 : vector<2x128xf32>
    %663 = arith.mulf %658, %662 : vector<2x128xf32>
    %664 = vector.broadcast %4 : vector<1x128xf32> to vector<2x128xf32>
    %665 = arith.mulf %663, %664 : vector<2x128xf32>
    %cst_79 = arith.constant dense<0.000000e+00> : vector<2xf32>
    %666 = vector.multi_reduction <add>, %665, %cst_79 [1] : vector<2x128xf32> to vector<2xf32>
    %667 = vector.shape_cast %666 : vector<2xf32> to vector<2x1xf32>
    %668 = vector.extract_strided_slice %5 {offsets = [15, 0], sizes = [1, 4], strides = [1, 1]} : vector<16x4xf32> to vector<1x4xf32>
    %669 = vector.broadcast %667 : vector<2x1xf32> to vector<2x4xf32>
    %670 = vector.broadcast %668 : vector<1x4xf32> to vector<2x4xf32>
    %671 = arith.mulf %669, %670 : vector<2x4xf32>
    %672 = arith.addf %632, %671 : vector<2x4xf32>
    %673 = vector.broadcast %6 : vector<1x4xf32> to vector<2x4xf32>
    %674 = arith.addf %672, %673 : vector<2x4xf32>
    %cst_80 = arith.constant dense<0xFF800000> : vector<2xf32>
    %675 = vector.multi_reduction <maximumf>, %674, %cst_80 [1] : vector<2x4xf32> to vector<2xf32>
    %676 = vector.shape_cast %675 : vector<2xf32> to vector<2x1xf32>
    %677 = vector.broadcast %676 : vector<2x1xf32> to vector<2x4xf32>
    %678 = arith.subf %674, %677 : vector<2x4xf32>
    %679 = math.exp %678 : vector<2x4xf32>
    %cst_81 = arith.constant dense<0.000000e+00> : vector<2xf32>
    %680 = vector.multi_reduction <add>, %679, %cst_81 [1] : vector<2x4xf32> to vector<2xf32>
    %681 = vector.shape_cast %680 : vector<2xf32> to vector<2x1xf32>
    %682 = vector.broadcast %681 : vector<2x1xf32> to vector<2x4xf32>
    %683 = arith.divf %679, %682 : vector<2x4xf32>
    %c0_82 = arith.constant 0 : index
    %c0_83 = arith.constant 0 : index
    %684 = vector.load %arg7[%c0_82, %c0_83] : memref<2x4xf32, #tpu.memory_space<vmem>>, vector<2x4xf32>
    tpu.vector_store %arg7[%c0_82, %c0_83], %683 {strides = array<i32>} : memref<2x4xf32, #tpu.memory_space<vmem>>, vector<2x4xf32>,
    return
  }
}

</mosaic_0001>

<bundles_post_ra>
// kernel: cnn_lstm_forward.1
= control target key start
LH: loop header
LB: loop body
LE: loop exit
PB: predicated region body
PF: predicated region fallthrough
CT: control target
= control target key end

     0   :  { %v3523_v2 = vmov 0   ;;  %s3512_s0 = inlined_call_operand.vmem [shape: f32[2,16,3], index: 0, kind: input, shape index: {}]   ;;  %s3513_s1 = inlined_call_operand.vmem [shape: f32[3,512], index: 1, kind: input, shape index: {}]   ;;  %s3514_s2 = inlined_call_operand.vmem [shape: f32[1,512], index: 2, kind: input, shape index: {}]   ;;  %s3515_s3 = inlined_call_operand.vmem [shape: f32[1,512], index: 3, kind: input, shape index: {}]   ;;  %s3516_s4 = inlined_call_operand.vmem [shape: f32[1,128], index: 4, kind: input, shape index: {}]   ;;  %s3517_s5 = inlined_call_operand.vmem [shape: f32[16,4], index: 5, kind: input, shape index: {}]   ;;  %s3518_s6 = inlined_call_operand.vmem [shape: f32[1,4], index: 6, kind: input, shape index: {}]   ;;  %s3519_s7 = inlined_call_operand.hbm [shape: f32[2,4], index: 7, kind: output, shape index: {}]  }
   0x1   :  { %v29_v0 = vld [vmem:[%s3512_s0 + $0x10] sm:$0xff]  ;;  %v27_v1 = vld [vmem:[%s3512_s0] sm:$0xff]  ;;  %2108 = vset.pattern.permute.xlu1 %v3523_v2  ;;  %2106 = vset.pattern.permute.xlu0 %v3523_v2 }
   0x2   :  { %51 = vperm.xlu0 %2106, %v29_v0   ;;  %41 = vperm.xlu1 %2108, %v27_v1  }
   0x3   :  { %12 = vsyncpa [#allocation3], 0  ;;  %v3522_v3 = vmov 1   ;;  %v3520_v4 = vmov 2   ;;  %v61_v5 = vlaneseq  ;;  %v31_v11 = vld [vmem:[%s3513_s1] sm:$0x77] }
   0x4   :  { %v32_v12 = vld [vmem:[%s3513_s1 + $0x8] sm:$0x77]  ;;  %v2745_v15 = vld [vmem:[%s3515_s3] sm:$0xf]  ;;  %vm410_vm0 = vcmask 1041409   ;;  %vm413_vm1 = vcmask 1041408  }
   0x5   :  { %v2716_v6 = vshrl.u32 %v61_v5, 7  ;;  %v2783_v36 = vld [vmem:[%s3514_s2] sm:$0xf]  ;;  %vm510_vm2 = vcmask 1042434   ;;  %vm513_vm3 = vcmask 1042433   ;;  %vm613_vm4 = vcmask 1043459  }
   0x6   :  { %2107 = vset.pattern.permute.xlu0 %v3522_v3  ;;  %2109 = vset.pattern.permute.xlu1 %v3522_v3  ;;  %vm616_vm5 = vcmask 1043458   ;;  %vm716_vm6 = vcmask 1044484   ;;  %vm719_vm7 = vcmask 1044483   ;;  %vm819_vm8 = vcmask 1045509   ;;  %s2661_s23 = smov [#allocation2]  }
   0x7   :  { %122 = vperm.xlu0 %2107, %v29_v0   ;;  %114 = vperm.xlu1 %2109, %v27_v1   ;;  %v2719_v7 = vsub.s32 1, %v2716_v6  ;;  %v2722_v8 = vsub.s32 5, %v2716_v6  ;;  %v2725_v9 = vsub.s32 0, %v2716_v6  ;;  %v2728_v10 = vsub.s32 4, %v2716_v6 }
   0x8   :  { %v2737_v13 = vsub.s32 2, %v2716_v6  ;;  %v2740_v14 = vsub.s32 6, %v2716_v6  ;;  %v2769_v32 = vsub.s32 3, %v2716_v6  ;;  %vm822_vm9 = vcmask 1045508  }
   0x9   :  { %v132_v16 = vrot.slane %v31_v11, %v2719_v7  ;;  %v136_v17 = vrot.slane %v31_v11, %v2722_v8  ;;  %v64_v18 = vrot.slane %v31_v11, %v2725_v9  ;;  %v68_v19 = vrot.slane %v31_v11, %v2728_v10 }
   0xa   :  { %v72_v20 = vrot.slane %v32_v12, %v2725_v9  ;;  %v76_v23 = vrot.slane %v32_v12, %v2728_v10  ;;  %v140_v24 = vrot.slane %v32_v12, %v2719_v7  ;;  %v144_v25 = vrot.slane %v32_v12, %v2722_v8 }
   0xb   :  { %2111 = vset.pattern.permute.xlu0 %v3520_v4  ;;  %2110 = vset.pattern.permute.xlu1 %v3520_v4  ;;  %v2757_v26 = vrot.slane %v2745_v15, %v2725_v9  ;;  %v216_v27 = vrot.slane %v31_v11, %v2737_v13  ;;  %v220_v28 = vrot.slane %v31_v11, %v2740_v14  ;;  %vm922_vm10 = vcmask 1046534  }
   0xc   :  { %198 = vperm.xlu0 %2111, %v27_v1   ;;  %206 = vperm.xlu1 %2110, %v29_v0   ;;  %v224_v29 = vrot.slane %v32_v12, %v2737_v13  ;;  %v2763_v30 = vrot.slane %v132_v16, %v2719_v7  ;;  %v2766_v31 = vrot.slane %v136_v17, %v2719_v7  ;;  %vm925_vm11 = vcmask 1046533  }
   0xd   :  { %v2772_v33 = vrot.slane %v64_v18, %v2725_v9  ;;  %v2775_v34 = vrot.slane %v68_v19, %v2725_v9  ;;  %v2778_v35 = vrot.slane %v72_v20, %v2725_v9  ;;  %v228_v37 = vrot.slane %v32_v12, %v2740_v14 }
   0xe   :  { %v2787_v38 = vrot.slane %v76_v23, %v2725_v9  ;;  %v2790_v39 = vrot.slane %v140_v24, %v2719_v7  ;;  %v2793_v40 = vrot.slane %v144_v25, %v2719_v7  ;;  %v2797_v41 = vrot.slane %v2745_v15, %v2719_v7 }
   0xf   :  { %v2800_v44 = vrot.slane %v216_v27, %v2737_v13  ;;  %v2803_v45 = vrot.slane %v220_v28, %v2737_v13  ;;  %v2806_v46 = vrot.slane %v224_v29, %v2737_v13  ;;  %v339_v47 = vmul.f32 0.0, %v2757_v26 }
  0x10   :  { %2113 = vset.pattern.permute.xlu1 %v3522_v3  ;;  %2112 = vset.pattern.permute.xlu0 %v3523_v2  ;;  %v2813_v50 = vrot.slane %v2783_v36, %v2725_v9  ;;  %v2817_v51 = vrot.slane %v2783_v36, %v2719_v7  ;;  %v2822_v54 = vrot.slane %v228_v37, %v2737_v13  ;;  %v340_v59 = vmul.f32 0.0, %v2797_v41 }
  0x11   :  { %v2826_v55 = vrot.slane %v2783_v36, %v2769_v32  ;;  %v2832_v58 = vrot.slane %v2745_v15, %v2769_v32  ;;  %vm1025_vm12 = vcmask 1047559   ;;  %vm1028_vm13 = vcmask 1047558  }
  0x12   :  { %vm1133_vm14 = vcmask 1040384   ;;  %vm1977_vm15 = vcmask 25600  }
  0x7d   :  { %v42_v21 = vpop.permute.xlu1 %41  ;;  %v52_v22 = vpop.permute.xlu0 %51 }
  0x7e   :  { %v97_v56 = vmul.f32 %v2772_v33, %v42_v21  ;;  %v98_v57 = vmul.f32 %v2775_v34, %v42_v21  ;;  %v99_v60 = vmul.f32 %v2778_v35, %v42_v21  ;;  %v100_v61 = vmul.f32 %v2787_v38, %v42_v21 }
  0x7f   :  { %v105_v62 = vmul.f32 %v2772_v33, %v52_v22  ;;  %v106_v63 = vmul.f32 %v2775_v34, %v52_v22  ;;  %v107_v21 = vmul.f32 %v2778_v35, %v52_v22  ;;  %v108_v27 = vmul.f32 %v2787_v38, %v52_v22 }
  0x82   :  { %v123_v42 = vpop.permute.xlu0 %122  ;;  %v115_v43 = vpop.permute.xlu1 %114 }
  0x83   :  { %v165_v48 = vmul.f32 %v2763_v30, %v115_v43  ;;  %v166_v49 = vmul.f32 %v2766_v31, %v115_v43  ;;  %v173_v52 = vmul.f32 %v2763_v30, %v123_v42  ;;  %v174_v53 = vmul.f32 %v2766_v31, %v123_v42 }
  0x84   :  { %v168_v23 = vmul.f32 %v2793_v40, %v115_v43  ;;  %v176_v28 = vmul.f32 %v2793_v40, %v123_v42 }
  0x85   :  { %v181_v5 = vadd.f32 %v165_v48, %v97_v56  ;;  %v182_v11 = vadd.f32 %v166_v49, %v98_v57  ;;  %v189_v17 = vadd.f32 %v173_v52, %v105_v62  ;;  %v190_v18 = vadd.f32 %v174_v53, %v106_v63 }
  0x86   :  { %v167_v48 = vmul.f32 %v2790_v39, %v115_v43  ;;  %v175_v56 = vmul.f32 %v2790_v39, %v123_v42  ;;  %v184_v63 = vadd.f32 %v168_v23, %v100_v61 }
  0x87   :  { %v199_v0 = vpop.permute.xlu0 %198  ;;  %v207_v1 = vpop.permute.xlu1 %206 }
  0x88   :  { %v249_v12 = vmul.f32 %v2800_v44, %v199_v0  ;;  %v250_v16 = vmul.f32 %v2803_v45, %v199_v0  ;;  %v257_v19 = vmul.f32 %v2800_v44, %v207_v1  ;;  %v258_v20 = vmul.f32 %v2803_v45, %v207_v1 }
  0x89   :  { %v252_v49 = vmul.f32 %v2822_v54, %v199_v0  ;;  %v260_v57 = vmul.f32 %v2822_v54, %v207_v1  ;;  %v251_v43 = vmul.f32 %v2806_v46, %v199_v0  ;;  %v2871_v0 = vrot.slane %v2783_v36, %v2737_v13 }
  0x8a   :  { %v265_v24 = vadd.f32 %v249_v12, %v181_v5  ;;  %v266_v25 = vadd.f32 %v250_v16, %v182_v11  ;;  %v273_v29 = vadd.f32 %v257_v19, %v189_v17  ;;  %v274_v37 = vadd.f32 %v258_v20, %v190_v18 }
  0x8b   :  { %v192_v12 = vadd.f32 %v176_v28, %v108_v27  ;;  %v259_v16 = vmul.f32 %v2806_v46, %v207_v1  ;;  %v183_v18 = vadd.f32 %v167_v48, %v99_v60  ;;  %v268_v19 = vadd.f32 %v252_v49, %v184_v63 }
  0x8c   :  { %v2850_v52 = vadd.f32 %v2813_v50, %v265_v24  ;;  %v2853_v53 = vadd.f32 %v2817_v51, %v266_v25  ;;  %v2858_v22 = vadd.f32 %v2813_v50, %v273_v29  ;;  %v2861_v62 = vadd.f32 %v2817_v51, %v274_v37 }
  0x8d   :  { %v191_v25 = vadd.f32 %v175_v56, %v107_v21  ;;  %v276_v29 = vadd.f32 %v260_v57, %v192_v12  ;;  %v2875_v27 = vrot.slane %v2745_v15, %v2737_v13  ;;  %v267_v1 = vadd.f32 %v251_v43, %v183_v18 }
  0x8e   :  { %v343_v5 = vadd.f32 %v339_v47, %v2850_v52  ;;  %v344_v11 = vadd.f32 %v340_v59, %v2853_v53  ;;  %v347_v42 = vadd.f32 %v339_v47, %v2858_v22  ;;  %v348_v17 = vadd.f32 %v340_v59, %v2861_v62 }
  0x8f   :  { %v275_v47 = vadd.f32 %v259_v16, %v191_v25  ;;  %v2878_v59 = vadd.f32 %v2826_v55, %v268_v19  ;;  %v342_v60 = vmul.f32 0.0, %v2832_v58  ;;  %v2882_v21 = vadd.f32 %v2826_v55, %v276_v29 }
  0x90   :  { %v2004_v20 = vmul.f32 -1.442695, %v343_v5  ;;  %v2006_v24 = vmul.f32 -1.442695, %v344_v11  ;;  %v2005_v61 = vmul.f32 -1.442695, %v347_v42  ;;  %v2885_v36 = vadd.f32 %v2871_v0, %v267_v1 }
  0x91   :  { %v2007_v23 = vmul.f32 -1.442695, %v348_v17  ;;  %v341_v15 = vmul.f32 0.0, %v2875_v27  ;;  %v2889_v28 = vadd.f32 %v2871_v0, %v275_v47  ;;  %v346_v37 = vadd.f32 %v342_v60, %v2878_v59 }
  0x92   :  { %2118 = vpow2.f32 %v2004_v20  ;;  %v350_v48 = vadd.f32 %v342_v60, %v2882_v21 }
  0x93   :  { %2120 = vpow2.f32 %v2005_v61  ;;  %v345_v49 = vadd.f32 %v341_v15, %v2885_v36  ;;  %v349_v56 = vadd.f32 %v341_v15, %v2889_v28  ;;  %v2008_v57 = vmul.f32 -1.442695, %v346_v37 }
  0x94   :  { %2122 = vpow2.f32 %v2006_v24  ;;  %v2009_v63 = vmul.f32 -1.442695, %v350_v48 }
  0x95   :  { %2124 = vpow2.f32 %v2007_v23 }
  0x96   :  { %2126 = vtanh.f32 %v345_v49 }
  0x97   :  { %2128 = vtanh.f32 %v349_v56 }
  0x98   :  { %2130 = vpow2.f32 %v2008_v57 }
  0x99   :  { %2132 = vpow2.f32 %v2009_v63 }
  0x9f   :  { %v2119_v43 = vpop.eup %2118 }
  0xa0   :  { %v2121_v5 = vpop.eup %2120  ;;  %v357_v11 = vadd.f32 1.0, %v2119_v43 }
  0xa1   :  { %v2123_v12 = vpop.eup %2122  ;;  %v358_v16 = vadd.f32 1.0, %v2121_v5 }
  0xa2   :  { %v2125_v42 = vpop.eup %2124  ;;  %2134 = vrcp.f32 %v357_v11  ;;  %v369_v17 = vadd.f32 1.0, %v2123_v12  ;;  %v2904_v12 = vld [vmem:[%s3516_s4] ss:$0 sm:$0xff] }
  0xa3   :  { %2136 = vrcp.f32 %v358_v16  ;;  %v370_v18 = vadd.f32 1.0, %v2125_v42  ;;  %v2127_v19 = vpop.eup %2126 }
  0xa4   :  { %2138 = vrcp.f32 %v369_v17  ;;  %v2129_v20 = vpop.eup %2128 }
  0xa5   :  { %2140 = vrcp.f32 %v370_v18  ;;  %v2131_v24 = vpop.eup %2130 }
  0xa6   :  { %v2133_v25 = vpop.eup %2132  ;;  %v383_v23 = vadd.f32 1.0, %v2131_v24 }
  0xa7   :  { %v384_v60 = vadd.f32 1.0, %v2133_v25 }
  0xa8   :  { %2142 = vrcp.f32 %v383_v23 }
  0xa9   :  { %2144 = vrcp.f32 %v384_v60 }
  0xaf   :  { %v2135_v29 = vpop.eup %2134 }
  0xb0   :  { %v2137_v61 = vpop.eup %2136  ;;  %v391_v1 = vmul.f32 %v2135_v29, %v2127_v19 }
  0xb1   :  { %v2139_v47 = vpop.eup %2138  ;;  %v392_v15 = vmul.f32 %v2137_v61, %v2129_v20 }
  0xb2   :  { %v2141_v37 = vpop.eup %2140  ;;  %v389_v48 = vmul.f32 0.0, %v2139_v47 }
  0xb3   :  { %v390_v49 = vmul.f32 0.0, %v2141_v37 }
  0xb4   :  { %v2895_v56 = vadd.f32 %v391_v1, %v389_v48 }
  0xb5   :  { %v2897_v57 = vadd.f32 %v392_v15, %v390_v49  ;;  %v2143_v63 = vpop.eup %2142 }
  0xb6   :  { %2146 = vtanh.f32 %v2895_v56  ;;  %v2145_v43 = vpop.eup %2144 }
  0xb7   :  { %2148 = vtanh.f32 %v2897_v57 }
  0xc3   :  { %v2147_v5 = vpop.eup %2146 }
  0xc4   :  { %v2149_v11 = vpop.eup %2148  ;;  %v397_v16 = vmul.f32 %v2147_v5, %v2143_v63 }
  0xc5   :  { %v398_v42 = vmul.f32 %v2149_v11, %v2145_v43 }
  0xc6   :  { %v405_v18 = vmul.f32 %v2904_v12, %v397_v16 }
  0xc7   :  { %v406_v17 = vmul.f32 %v2904_v12, %v398_v42 }
  0xc9   :  { %v409_v19 = vrot.slane %v406_v17, 7 }
  0xcb   :  { %v411_v20 = vsel %vm410_vm0, %v409_v19, %v405_v18 }
  0xcc   :  { %v414_v24 = vsel %vm413_vm1, %v411_v20, 0.0 }
  0xcd   :  { %415 = vadd.xlane.f32.xlu1 %v414_v24 }
 0x156   :  { %v2910_v25 = vpop.xlane.xlu1 %415 }
 0x157   :  { %v423_v29 = vmul.f32 %v2910_v25, %v2757_v26  ;;  %v424_v61 = vmul.f32 %v2910_v25, %v2797_v41  ;;  %v426_v49 = vmul.f32 %v2910_v25, %v2832_v58  ;;  %v425_v11 = vmul.f32 %v2910_v25, %v2875_v27 }
 0x159   :  { %v431_v23 = vrot.slane %v423_v29, 7  ;;  %v432_v1 = vrot.slane %v424_v61, 7  ;;  %v447_v47 = vadd.f32 %v423_v29, %v2858_v22  ;;  %v448_v60 = vadd.f32 %v424_v61, %v2861_v62 }
 0x15a   :  { %v434_v16 = vrot.slane %v426_v49, 7  ;;  %v433_v42 = vrot.slane %v425_v11, 7  ;;  %v450_v17 = vadd.f32 %v426_v49, %v2882_v21  ;;  %v449_v19 = vadd.f32 %v425_v11, %v2889_v28 }
 0x15b   :  { %v443_v15 = vadd.f32 %v431_v23, %v2850_v52  ;;  %v444_v37 = vadd.f32 %v432_v1, %v2853_v53  ;;  %v2012_v48 = vmul.f32 -1.442695, %v447_v47  ;;  %v2014_v63 = vmul.f32 -1.442695, %v448_v60 }
 0x15c   :  { %v446_v18 = vadd.f32 %v434_v16, %v2878_v59  ;;  %v445_v20 = vadd.f32 %v433_v42, %v2885_v36  ;;  %v2016_v24 = vmul.f32 -1.442695, %v450_v17  ;;  %v492_v16 = vrot.slane %v2897_v57, 7 }
 0x15d   :  { %v2011_v43 = vmul.f32 -1.442695, %v443_v15  ;;  %2150 = vpow2.f32 %v2012_v48  ;;  %v2013_v5 = vmul.f32 -1.442695, %v444_v37 }
 0x15e   :  { %2152 = vpow2.f32 %v2014_v63  ;;  %v2015_v29 = vmul.f32 -1.442695, %v446_v18 }
 0x15f   :  { %2154 = vpow2.f32 %v2011_v43 }
 0x160   :  { %2156 = vpow2.f32 %v2013_v5 }
 0x161   :  { %2158 = vtanh.f32 %v449_v19 }
 0x162   :  { %2160 = vtanh.f32 %v445_v20  ;;  %v491_v20 = vrot.slane %v2895_v56, 7 }
 0x163   :  { %2162 = vpow2.f32 %v2016_v24 }
 0x164   :  { %2164 = vpow2.f32 %v2015_v29 }
 0x16a   :  { %v2151_v61 = vpop.eup %2150 }
 0x16b   :  { %v2153_v23 = vpop.eup %2152  ;;  %v458_v1 = vadd.f32 1.0, %v2151_v61 }
 0x16c   :  { %v2155_v47 = vpop.eup %2154  ;;  %v470_v60 = vadd.f32 1.0, %v2153_v23 }
 0x16d   :  { %v2157_v15 = vpop.eup %2156  ;;  %v457_v37 = vadd.f32 1.0, %v2155_v47  ;;  %2166 = vrcp.f32 %v458_v1 }
 0x16e   :  { %v469_v48 = vadd.f32 1.0, %v2157_v15  ;;  %2168 = vrcp.f32 %v470_v60  ;;  %v2159_v49 = vpop.eup %2158 }
 0x16f   :  { %2170 = vrcp.f32 %v457_v37  ;;  %v2161_v63 = vpop.eup %2160 }
 0x170   :  { %2172 = vrcp.f32 %v469_v48  ;;  %v2163_v43 = vpop.eup %2162 }
 0x171   :  { %v2165_v5 = vpop.eup %2164  ;;  %v484_v17 = vadd.f32 1.0, %v2163_v43 }
 0x172   :  { %v483_v61 = vadd.f32 1.0, %v2165_v5 }
 0x173   :  { %2174 = vrcp.f32 %v484_v17 }
 0x17a   :  { %v2167_v11 = vpop.eup %2166 }
 0x17b   :  { %v2169_v42 = vpop.eup %2168  ;;  %v498_v18 = vmul.f32 %v2167_v11, %v2159_v49 }
 0x17c   :  { %v2171_v19 = vpop.eup %2170  ;;  %v496_v24 = vmul.f32 %v2169_v42, %v492_v16 }
 0x17d   :  { %v2173_v29 = vpop.eup %2172  ;;  %v497_v23 = vmul.f32 %v2171_v19, %v2161_v63 }
 0x17e   :  { %v495_v1 = vmul.f32 %v2173_v29, %v491_v20  ;;  %v2930_v47 = vadd.f32 %v498_v18, %v496_v24 }
 0x180   :  { %v2932_v60 = vadd.f32 %v497_v23, %v495_v1  ;;  %2176 = vtanh.f32 %v2930_v47  ;;  %v2175_v57 = vpop.eup %2174 }
 0x181   :  { %2178 = vrcp.f32 %v483_v61 }
 0x182   :  { %2180 = vtanh.f32 %v2932_v60 }
 0x18d   :  { %v2177_v15 = vpop.eup %2176 }
 0x18e   :  { %v2179_v37 = vpop.eup %2178  ;;  %v504_v48 = vmul.f32 %v2177_v15, %v2175_v57 }
 0x18f   :  { %v2181_v56 = vpop.eup %2180 }
 0x190   :  { %v503_v49 = vmul.f32 %v2181_v56, %v2179_v37  ;;  %v506_v43 = vmul.f32 %v2904_v12, %v504_v48 }
 0x192   :  { %v505_v63 = vmul.f32 %v2904_v12, %v503_v49  ;;  %v509_v5 = vrot.slane %v506_v43, 7 }
 0x194   :  { %v511_v11 = vsel %vm510_vm2, %v509_v5, %v505_v63 }
 0x195   :  { %v514_v16 = vsel %vm513_vm3, %v511_v11, 0.0 }
 0x196   :  { %515 = vadd.xlane.f32.xlu0 %v514_v16 }
 0x21f   :  { %v2940_v42 = vpop.xlane.xlu0 %515 }
 0x220   :  { %v526_v17 = vmul.f32 %v2940_v42, %v2757_v26  ;;  %v527_v18 = vmul.f32 %v2940_v42, %v2797_v41  ;;  %v529_v1 = vmul.f32 %v2940_v42, %v2832_v58  ;;  %v528_v56 = vmul.f32 %v2940_v42, %v2875_v27 }
 0x222   :  { %v534_v19 = vrot.slane %v526_v17, 7  ;;  %v535_v20 = vrot.slane %v527_v18, 7  ;;  %v550_v24 = vadd.f32 %v526_v17, %v2858_v22  ;;  %v551_v29 = vadd.f32 %v527_v18, %v2861_v62 }
 0x223   :  { %v537_v49 = vrot.slane %v529_v1, 7  ;;  %v536_v43 = vrot.slane %v528_v56, 7  ;;  %v553_v5 = vadd.f32 %v529_v1, %v2882_v21  ;;  %v552_v16 = vadd.f32 %v528_v56, %v2889_v28 }
 0x224   :  { %v546_v61 = vadd.f32 %v534_v19, %v2850_v52  ;;  %v547_v23 = vadd.f32 %v535_v20, %v2853_v53  ;;  %v2018_v57 = vmul.f32 -1.442695, %v550_v24  ;;  %v2020_v48 = vmul.f32 -1.442695, %v551_v29 }
 0x225   :  { %v549_v63 = vadd.f32 %v537_v49, %v2878_v59  ;;  %v548_v11 = vadd.f32 %v536_v43, %v2885_v36  ;;  %v2022_v18 = vmul.f32 -1.442695, %v553_v5 }
 0x226   :  { %v2017_v15 = vmul.f32 -1.442695, %v546_v61  ;;  %v2019_v37 = vmul.f32 -1.442695, %v547_v23  ;;  %2182 = vpow2.f32 %v2018_v57 }
 0x227   :  { %v2021_v17 = vmul.f32 -1.442695, %v549_v63  ;;  %v594_v63 = vrot.slane %v2932_v60, 7 }
 0x228   :  { %2184 = vpow2.f32 %v2017_v15 }
 0x229   :  { %2186 = vpow2.f32 %v2019_v37 }
 0x22a   :  { %2188 = vpow2.f32 %v2020_v48 }
 0x22b   :  { %2190 = vtanh.f32 %v548_v11 }
 0x22c   :  { %2192 = vtanh.f32 %v552_v16  ;;  %v595_v16 = vrot.slane %v2930_v47, 7 }
 0x22d   :  { %2194 = vpow2.f32 %v2021_v17 }
 0x22e   :  { %2196 = vpow2.f32 %v2022_v18 }
 0x233   :  { %v2183_v19 = vpop.eup %2182 }
 0x234   :  { %v561_v24 = vadd.f32 1.0, %v2183_v19 }
 0x235   :  { %v2185_v20 = vpop.eup %2184 }
 0x236   :  { %v2187_v29 = vpop.eup %2186  ;;  %v560_v61 = vadd.f32 1.0, %v2185_v20  ;;  %2198 = vrcp.f32 %v561_v24 }
 0x237   :  { %v2189_v23 = vpop.eup %2188  ;;  %v572_v57 = vadd.f32 1.0, %v2187_v29 }
 0x238   :  { %2200 = vrcp.f32 %v560_v61  ;;  %v573_v1 = vadd.f32 1.0, %v2189_v23  ;;  %v2191_v15 = vpop.eup %2190 }
 0x239   :  { %2202 = vrcp.f32 %v572_v57  ;;  %v2193_v37 = vpop.eup %2192 }
 0x23a   :  { %2204 = vrcp.f32 %v573_v1  ;;  %v2195_v48 = vpop.eup %2194 }
 0x23b   :  { %v2197_v56 = vpop.eup %2196  ;;  %v586_v5 = vadd.f32 1.0, %v2195_v48 }
 0x23c   :  { %v587_v17 = vadd.f32 1.0, %v2197_v56 }
 0x23d   :  { %2206 = vrcp.f32 %v586_v5 }
 0x23e   :  { %2208 = vrcp.f32 %v587_v17 }
 0x243   :  { %v2199_v49 = vpop.eup %2198 }
 0x244   :  { %v601_v18 = vmul.f32 %v2199_v49, %v2193_v37 }
 0x245   :  { %v2201_v43 = vpop.eup %2200 }
 0x246   :  { %v2203_v11 = vpop.eup %2202  ;;  %v600_v19 = vmul.f32 %v2201_v43, %v2191_v15 }
 0x247   :  { %v2205_v20 = vpop.eup %2204  ;;  %v598_v24 = vmul.f32 %v2203_v11, %v594_v63 }
 0x248   :  { %v599_v29 = vmul.f32 %v2205_v20, %v595_v16 }
 0x249   :  { %v2960_v61 = vadd.f32 %v600_v19, %v598_v24 }
 0x24a   :  { %v2962_v23 = vadd.f32 %v601_v18, %v599_v29  ;;  %v2207_v60 = vpop.eup %2206 }
 0x24b   :  { %2210 = vtanh.f32 %v2960_v61  ;;  %v2209_v57 = vpop.eup %2208 }
 0x24c   :  { %2212 = vtanh.f32 %v2962_v23 }
 0x258   :  { %v2211_v1 = vpop.eup %2210 }
 0x259   :  { %v2213_v47 = vpop.eup %2212  ;;  %v606_v48 = vmul.f32 %v2211_v1, %v2207_v60 }
 0x25a   :  { %v607_v37 = vmul.f32 %v2213_v47, %v2209_v57 }
 0x25b   :  { %v608_v15 = vmul.f32 %v2904_v12, %v606_v48 }
 0x25c   :  { %v609_v56 = vmul.f32 %v2904_v12, %v607_v37 }
 0x25e   :  { %v612_v49 = vrot.slane %v609_v56, 7 }
 0x260   :  { %v614_v43 = vsel %vm613_vm4, %v612_v49, %v608_v15 }
 0x261   :  { %v617_v63 = vsel %vm616_vm5, %v614_v43, 0.0 }
 0x262   :  { %618 = vadd.xlane.f32.xlu1 %v617_v63 }
 0x2eb   :  { %v2970_v5 = vpop.xlane.xlu1 %618 }
 0x2ec   :  { %v629_v11 = vmul.f32 %v2970_v5, %v2757_v26  ;;  %v630_v16 = vmul.f32 %v2970_v5, %v2797_v41  ;;  %v632_v60 = vmul.f32 %v2970_v5, %v2832_v58  ;;  %v631_v37 = vmul.f32 %v2970_v5, %v2875_v27 }
 0x2ee   :  { %v637_v17 = vrot.slane %v629_v11, 7  ;;  %v638_v18 = vrot.slane %v630_v16, 7  ;;  %v653_v19 = vadd.f32 %v629_v11, %v2858_v22  ;;  %v654_v20 = vadd.f32 %v630_v16, %v2861_v62 }
 0x2ef   :  { %v640_v15 = vrot.slane %v632_v60, 7  ;;  %v639_v56 = vrot.slane %v631_v37, 7  ;;  %v656_v43 = vadd.f32 %v632_v60, %v2882_v21  ;;  %v655_v11 = vadd.f32 %v631_v37, %v2889_v28 }
 0x2f0   :  { %v649_v24 = vadd.f32 %v637_v17, %v2850_v52  ;;  %v650_v29 = vadd.f32 %v638_v18, %v2853_v53  ;;  %v2024_v57 = vmul.f32 -1.442695, %v653_v19  ;;  %v2026_v48 = vmul.f32 -1.442695, %v654_v20 }
 0x2f1   :  { %v652_v49 = vadd.f32 %v640_v15, %v2878_v59  ;;  %v651_v63 = vadd.f32 %v639_v56, %v2885_v36  ;;  %v2028_v17 = vmul.f32 -1.442695, %v656_v43  ;;  %v697_v43 = vrot.slane %v2960_v61, 7 }
 0x2f2   :  { %v2023_v1 = vmul.f32 -1.442695, %v649_v24  ;;  %v2025_v47 = vmul.f32 -1.442695, %v650_v29  ;;  %2214 = vpow2.f32 %v2024_v57 }
 0x2f3   :  { %v2027_v16 = vmul.f32 -1.442695, %v652_v49 }
 0x2f4   :  { %2216 = vpow2.f32 %v2023_v1 }
 0x2f5   :  { %2218 = vpow2.f32 %v2025_v47 }
 0x2f6   :  { %2220 = vpow2.f32 %v2026_v48 }
 0x2f7   :  { %2222 = vtanh.f32 %v651_v63 }
 0x2f8   :  { %2224 = vtanh.f32 %v655_v11 }
 0x2f9   :  { %2226 = vpow2.f32 %v2027_v16  ;;  %v698_v16 = vrot.slane %v2962_v23, 7 }
 0x2fa   :  { %2228 = vpow2.f32 %v2028_v17 }
 0x2ff   :  { %v2215_v18 = vpop.eup %2214 }
 0x300   :  { %v664_v20 = vadd.f32 1.0, %v2215_v18 }
 0x301   :  { %v2217_v19 = vpop.eup %2216 }
 0x302   :  { %v2219_v24 = vpop.eup %2218  ;;  %v663_v29 = vadd.f32 1.0, %v2217_v19  ;;  %2230 = vrcp.f32 %v664_v20 }
 0x303   :  { %v2221_v57 = vpop.eup %2220  ;;  %v675_v1 = vadd.f32 1.0, %v2219_v24 }
 0x304   :  { %2232 = vrcp.f32 %v663_v29  ;;  %v676_v60 = vadd.f32 1.0, %v2221_v57  ;;  %v2223_v47 = vpop.eup %2222 }
 0x305   :  { %2234 = vrcp.f32 %v675_v1  ;;  %v2225_v48 = vpop.eup %2224 }
 0x306   :  { %2236 = vrcp.f32 %v676_v60  ;;  %v2227_v37 = vpop.eup %2226 }
 0x307   :  { %v2229_v15 = vpop.eup %2228  ;;  %v689_v63 = vadd.f32 1.0, %v2227_v37 }
 0x308   :  { %v690_v17 = vadd.f32 1.0, %v2229_v15 }
 0x309   :  { %2238 = vrcp.f32 %v689_v63 }
 0x30a   :  { %2240 = vrcp.f32 %v690_v17 }
 0x30f   :  { %v2231_v56 = vpop.eup %2230 }
 0x310   :  { %v704_v18 = vmul.f32 %v2231_v56, %v2225_v48 }
 0x311   :  { %v2233_v49 = vpop.eup %2232 }
 0x312   :  { %v2235_v11 = vpop.eup %2234  ;;  %v703_v19 = vmul.f32 %v2233_v49, %v2223_v47 }
 0x313   :  { %v2237_v20 = vpop.eup %2236  ;;  %v701_v24 = vmul.f32 %v2235_v11, %v697_v43 }
 0x314   :  { %v702_v29 = vmul.f32 %v2237_v20, %v698_v16 }
 0x315   :  { %v2990_v57 = vadd.f32 %v703_v19, %v701_v24 }
 0x316   :  { %v2992_v1 = vadd.f32 %v704_v18, %v702_v29  ;;  %v2239_v61 = vpop.eup %2238 }
 0x317   :  { %2242 = vtanh.f32 %v2990_v57  ;;  %v2241_v60 = vpop.eup %2240 }
 0x318   :  { %2244 = vtanh.f32 %v2992_v1 }
 0x324   :  { %v2243_v37 = vpop.eup %2242 }
 0x325   :  { %v2245_v23 = vpop.eup %2244  ;;  %v709_v15 = vmul.f32 %v2243_v37, %v2239_v61 }
 0x326   :  { %v710_v48 = vmul.f32 %v2245_v23, %v2241_v60 }
 0x327   :  { %v711_v47 = vmul.f32 %v2904_v12, %v709_v15 }
 0x328   :  { %v712_v56 = vmul.f32 %v2904_v12, %v710_v48 }
 0x32a   :  { %v715_v49 = vrot.slane %v712_v56, 7 }
 0x32c   :  { %v717_v43 = vsel %vm716_vm6, %v715_v49, %v711_v47 }
 0x32d   :  { %v720_v63 = vsel %vm719_vm7, %v717_v43, 0.0 }
 0x32e   :  { %721 = vadd.xlane.f32.xlu0 %v720_v63 }
 0x3b7   :  { %v3000_v11 = vpop.xlane.xlu0 %721 }
 0x3b8   :  { %v732_v16 = vmul.f32 %v3000_v11, %v2757_v26  ;;  %v733_v17 = vmul.f32 %v3000_v11, %v2797_v41  ;;  %v735_v60 = vmul.f32 %v3000_v11, %v2832_v58  ;;  %v734_v47 = vmul.f32 %v3000_v11, %v2875_v27 }
 0x3ba   :  { %v740_v18 = vrot.slane %v732_v16, 7  ;;  %v741_v19 = vrot.slane %v733_v17, 7  ;;  %v756_v20 = vadd.f32 %v732_v16, %v2858_v22  ;;  %v757_v24 = vadd.f32 %v733_v17, %v2861_v62 }
 0x3bb   :  { %v743_v56 = vrot.slane %v735_v60, 7  ;;  %v742_v49 = vrot.slane %v734_v47, 7  ;;  %v759_v63 = vadd.f32 %v735_v60, %v2882_v21  ;;  %v758_v17 = vadd.f32 %v734_v47, %v2889_v28 }
 0x3bc   :  { %v752_v29 = vadd.f32 %v740_v18, %v2850_v52  ;;  %v753_v61 = vadd.f32 %v741_v19, %v2853_v53  ;;  %v2030_v37 = vmul.f32 -1.442695, %v756_v20  ;;  %v2032_v48 = vmul.f32 -1.442695, %v757_v24 }
 0x3bd   :  { %v755_v43 = vadd.f32 %v743_v56, %v2878_v59  ;;  %v754_v16 = vadd.f32 %v742_v49, %v2885_v36  ;;  %v2034_v19 = vmul.f32 -1.442695, %v759_v63 }
 0x3be   :  { %v2029_v23 = vmul.f32 -1.442695, %v752_v29  ;;  %v2031_v15 = vmul.f32 -1.442695, %v753_v61  ;;  %2246 = vpow2.f32 %v2030_v37 }
 0x3bf   :  { %v2033_v18 = vmul.f32 -1.442695, %v755_v43 }
 0x3c0   :  { %2248 = vpow2.f32 %v2029_v23 }
 0x3c1   :  { %2250 = vpow2.f32 %v2031_v15 }
 0x3c2   :  { %2252 = vpow2.f32 %v2032_v48 }
 0x3c3   :  { %2254 = vtanh.f32 %v754_v16  ;;  %v800_v16 = vrot.slane %v2990_v57, 7 }
 0x3c4   :  { %2256 = vtanh.f32 %v758_v17 }
 0x3c5   :  { %2258 = vpow2.f32 %v2033_v18 }
 0x3c6   :  { %2260 = vpow2.f32 %v2034_v19 }
 0x3cb   :  { %v2247_v20 = vpop.eup %2246 }
 0x3cc   :  { %v767_v29 = vadd.f32 1.0, %v2247_v20  ;;  %v801_v20 = vrot.slane %v2992_v1, 7 }
 0x3cd   :  { %v2249_v24 = vpop.eup %2248 }
 0x3ce   :  { %v2251_v61 = vpop.eup %2250  ;;  %v766_v37 = vadd.f32 1.0, %v2249_v24  ;;  %2262 = vrcp.f32 %v767_v29 }
 0x3cf   :  { %v2253_v23 = vpop.eup %2252  ;;  %v778_v15 = vadd.f32 1.0, %v2251_v61 }
 0x3d0   :  { %2264 = vrcp.f32 %v766_v37  ;;  %v779_v60 = vadd.f32 1.0, %v2253_v23  ;;  %v2255_v48 = vpop.eup %2254 }
 0x3d1   :  { %2266 = vrcp.f32 %v778_v15  ;;  %v2257_v47 = vpop.eup %2256 }
 0x3d2   :  { %2268 = vrcp.f32 %v779_v60  ;;  %v2259_v56 = vpop.eup %2258 }
 0x3d3   :  { %v2261_v49 = vpop.eup %2260  ;;  %v792_v17 = vadd.f32 1.0, %v2259_v56 }
 0x3d4   :  { %v793_v19 = vadd.f32 1.0, %v2261_v49 }
 0x3d5   :  { %2270 = vrcp.f32 %v792_v17 }
 0x3d6   :  { %2272 = vrcp.f32 %v793_v19 }
 0x3db   :  { %v2263_v43 = vpop.eup %2262 }
 0x3dc   :  { %v807_v24 = vmul.f32 %v2263_v43, %v2257_v47 }
 0x3dd   :  { %v2265_v63 = vpop.eup %2264 }
 0x3de   :  { %v2267_v18 = vpop.eup %2266  ;;  %v806_v29 = vmul.f32 %v2265_v63, %v2255_v48 }
 0x3df   :  { %v2269_v61 = vpop.eup %2268  ;;  %v804_v37 = vmul.f32 %v2267_v18, %v800_v16 }
 0x3e0   :  { %v805_v23 = vmul.f32 %v2269_v61, %v801_v20 }
 0x3e1   :  { %v3020_v15 = vadd.f32 %v806_v29, %v804_v37 }
 0x3e2   :  { %v3022_v60 = vadd.f32 %v807_v24, %v805_v23  ;;  %v2271_v57 = vpop.eup %2270 }
 0x3e3   :  { %2274 = vtanh.f32 %v3020_v15  ;;  %v2273_v56 = vpop.eup %2272 }
 0x3e4   :  { %2276 = vtanh.f32 %v3022_v60 }
 0x3f0   :  { %v2275_v4 = vpop.eup %2274 }
 0x3f1   :  { %v2277_v1 = vpop.eup %2276  ;;  %v812_v49 = vmul.f32 %v2275_v4, %v2271_v57 }
 0x3f2   :  { %v813_v47 = vmul.f32 %v2277_v1, %v2273_v56 }
 0x3f3   :  { %v814_v48 = vmul.f32 %v2904_v12, %v812_v49 }
 0x3f4   :  { %v815_v43 = vmul.f32 %v2904_v12, %v813_v47 }
 0x3f6   :  { %v818_v63 = vrot.slane %v815_v43, 7 }
 0x3f8   :  { %v820_v16 = vsel %vm819_vm8, %v818_v63, %v814_v48 }
 0x3f9   :  { %v823_v17 = vsel %vm822_vm9, %v820_v16, 0.0 }
 0x3fa   :  { %824 = vadd.xlane.f32.xlu1 %v823_v17 }
 0x483   :  { %v3030_v18 = vpop.xlane.xlu1 %824 }
 0x484   :  { %v835_v20 = vmul.f32 %v3030_v18, %v2757_v26  ;;  %v836_v4 = vmul.f32 %v3030_v18, %v2797_v41  ;;  %v838_v57 = vmul.f32 %v3030_v18, %v2832_v58  ;;  %v837_v48 = vmul.f32 %v3030_v18, %v2875_v27 }
 0x486   :  { %v843_v19 = vrot.slane %v835_v20, 7  ;;  %v844_v24 = vrot.slane %v836_v4, 7  ;;  %v859_v29 = vadd.f32 %v835_v20, %v2858_v22  ;;  %v860_v61 = vadd.f32 %v836_v4, %v2861_v62 }
 0x487   :  { %v846_v43 = vrot.slane %v838_v57, 7  ;;  %v845_v63 = vrot.slane %v837_v48, 7  ;;  %v862_v17 = vadd.f32 %v838_v57, %v2882_v21  ;;  %v861_v4 = vadd.f32 %v837_v48, %v2889_v28 }
 0x488   :  { %v855_v37 = vadd.f32 %v843_v19, %v2850_v52  ;;  %v856_v23 = vadd.f32 %v844_v24, %v2853_v53  ;;  %v2036_v56 = vmul.f32 -1.442695, %v859_v29  ;;  %v2038_v47 = vmul.f32 -1.442695, %v860_v61 }
 0x489   :  { %v858_v16 = vadd.f32 %v846_v43, %v2878_v59  ;;  %v857_v20 = vadd.f32 %v845_v63, %v2885_v36  ;;  %v2040_v24 = vmul.f32 -1.442695, %v862_v17 }
 0x48a   :  { %v2035_v1 = vmul.f32 -1.442695, %v855_v37  ;;  %v2037_v49 = vmul.f32 -1.442695, %v856_v23  ;;  %2278 = vpow2.f32 %v2036_v56 }
 0x48b   :  { %v2039_v19 = vmul.f32 -1.442695, %v858_v16 }
 0x48c   :  { %2280 = vpow2.f32 %v2035_v1 }
 0x48d   :  { %2282 = vpow2.f32 %v2037_v49 }
 0x48e   :  { %2284 = vpow2.f32 %v2038_v47 }
 0x48f   :  { %2286 = vtanh.f32 %v857_v20  ;;  %v903_v20 = vrot.slane %v3020_v15, 7 }
 0x490   :  { %2288 = vtanh.f32 %v861_v4 }
 0x491   :  { %2290 = vpow2.f32 %v2039_v19 }
 0x492   :  { %2292 = vpow2.f32 %v2040_v24 }
 0x497   :  { %v2279_v29 = vpop.eup %2278 }
 0x498   :  { %v870_v37 = vadd.f32 1.0, %v2279_v29  ;;  %v904_v29 = vrot.slane %v3022_v60, 7 }
 0x499   :  { %v2281_v61 = vpop.eup %2280 }
 0x49a   :  { %v2283_v23 = vpop.eup %2282  ;;  %v869_v56 = vadd.f32 1.0, %v2281_v61  ;;  %2294 = vrcp.f32 %v870_v37 }
 0x49b   :  { %v2285_v1 = vpop.eup %2284  ;;  %v881_v49 = vadd.f32 1.0, %v2283_v23 }
 0x49c   :  { %2296 = vrcp.f32 %v869_v56  ;;  %v882_v57 = vadd.f32 1.0, %v2285_v1  ;;  %v2287_v47 = vpop.eup %2286 }
 0x49d   :  { %2298 = vrcp.f32 %v881_v49  ;;  %v2289_v48 = vpop.eup %2288 }
 0x49e   :  { %2300 = vrcp.f32 %v882_v57  ;;  %v2291_v43 = vpop.eup %2290 }
 0x49f   :  { %v2293_v63 = vpop.eup %2292  ;;  %v895_v4 = vadd.f32 1.0, %v2291_v43 }
 0x4a0   :  { %v896_v24 = vadd.f32 1.0, %v2293_v63 }
 0x4a1   :  { %2302 = vrcp.f32 %v895_v4 }
 0x4a2   :  { %2304 = vrcp.f32 %v896_v24 }
 0x4a7   :  { %v2295_v16 = vpop.eup %2294 }
 0x4a8   :  { %v910_v61 = vmul.f32 %v2295_v16, %v2289_v48 }
 0x4a9   :  { %v2297_v17 = vpop.eup %2296 }
 0x4aa   :  { %v2299_v19 = vpop.eup %2298  ;;  %v909_v37 = vmul.f32 %v2297_v17, %v2287_v47 }
 0x4ab   :  { %v2301_v23 = vpop.eup %2300  ;;  %v907_v56 = vmul.f32 %v2299_v19, %v903_v20 }
 0x4ac   :  { %v908_v1 = vmul.f32 %v2301_v23, %v904_v29 }
 0x4ad   :  { %v3050_v49 = vadd.f32 %v909_v37, %v907_v56 }
 0x4ae   :  { %v3052_v57 = vadd.f32 %v910_v61, %v908_v1  ;;  %v2303_v15 = vpop.eup %2302 }
 0x4af   :  { %2306 = vtanh.f32 %v3050_v49  ;;  %v2305_v43 = vpop.eup %2304 }
 0x4b0   :  { %2308 = vtanh.f32 %v3052_v57 }
 0x4bc   :  { %v2307_v3 = vpop.eup %2306 }
 0x4bd   :  { %v2309_v60 = vpop.eup %2308  ;;  %v915_v63 = vmul.f32 %v2307_v3, %v2303_v15 }
 0x4be   :  { %v916_v48 = vmul.f32 %v2309_v60, %v2305_v43 }
 0x4bf   :  { %v917_v47 = vmul.f32 %v2904_v12, %v915_v63 }
 0x4c0   :  { %v918_v16 = vmul.f32 %v2904_v12, %v916_v48 }
 0x4c2   :  { %v921_v17 = vrot.slane %v918_v16, 7 }
 0x4c4   :  { %v923_v20 = vsel %vm922_vm10, %v921_v17, %v917_v47 }
 0x4c5   :  { %v926_v4 = vsel %vm925_vm11, %v923_v20, 0.0 }
 0x4c6   :  { %927 = vadd.xlane.f32.xlu0 %v926_v4 }
 0x54f   :  { %v3060_v19 = vpop.xlane.xlu0 %927 }
 0x550   :  { %v938_v29 = vmul.f32 %v3060_v19, %v2757_v26  ;;  %v939_v3 = vmul.f32 %v3060_v19, %v2797_v41  ;;  %v941_v15 = vmul.f32 %v3060_v19, %v2832_v58  ;;  %v940_v47 = vmul.f32 %v3060_v19, %v2875_v27 }
 0x552   :  { %v946_v24 = vrot.slane %v938_v29, 7  ;;  %v947_v61 = vrot.slane %v939_v3, 7  ;;  %v962_v37 = vadd.f32 %v938_v29, %v2858_v22  ;;  %v963_v23 = vadd.f32 %v939_v3, %v2861_v62 }
 0x553   :  { %v949_v16 = vrot.slane %v941_v15, 7  ;;  %v948_v17 = vrot.slane %v940_v47, 7  ;;  %v965_v4 = vadd.f32 %v941_v15, %v2882_v21  ;;  %v964_v3 = vadd.f32 %v940_v47, %v2889_v28 }
 0x554   :  { %v958_v56 = vadd.f32 %v946_v24, %v2850_v52  ;;  %v959_v1 = vadd.f32 %v947_v61, %v2853_v53  ;;  %v2042_v43 = vmul.f32 -1.442695, %v962_v37  ;;  %v2044_v48 = vmul.f32 -1.442695, %v963_v23 }
 0x555   :  { %v961_v20 = vadd.f32 %v949_v16, %v2878_v59  ;;  %v960_v29 = vadd.f32 %v948_v17, %v2885_v36  ;;  %v2046_v61 = vmul.f32 -1.442695, %v965_v4 }
 0x556   :  { %v2041_v60 = vmul.f32 -1.442695, %v958_v56  ;;  %v2043_v63 = vmul.f32 -1.442695, %v959_v1  ;;  %2310 = vpow2.f32 %v2042_v43 }
 0x557   :  { %v2045_v24 = vmul.f32 -1.442695, %v961_v20 }
 0x558   :  { %2312 = vpow2.f32 %v2041_v60 }
 0x559   :  { %2314 = vpow2.f32 %v2043_v63 }
 0x55a   :  { %2316 = vpow2.f32 %v2044_v48 }
 0x55b   :  { %2318 = vtanh.f32 %v960_v29  ;;  %v1006_v29 = vrot.slane %v3050_v49, 7 }
 0x55c   :  { %2320 = vtanh.f32 %v964_v3 }
 0x55d   :  { %2322 = vpow2.f32 %v2045_v24 }
 0x55e   :  { %2324 = vpow2.f32 %v2046_v61 }
 0x563   :  { %v2311_v37 = vpop.eup %2310 }
 0x564   :  { %v973_v56 = vadd.f32 1.0, %v2311_v37  ;;  %v1007_v37 = vrot.slane %v3052_v57, 7 }
 0x565   :  { %v2313_v23 = vpop.eup %2312 }
 0x566   :  { %v2315_v1 = vpop.eup %2314  ;;  %v972_v43 = vadd.f32 1.0, %v2313_v23  ;;  %2326 = vrcp.f32 %v973_v56 }
 0x567   :  { %v2317_v60 = vpop.eup %2316  ;;  %v984_v63 = vadd.f32 1.0, %v2315_v1 }
 0x568   :  { %2328 = vrcp.f32 %v972_v43  ;;  %v985_v15 = vadd.f32 1.0, %v2317_v60  ;;  %v2319_v48 = vpop.eup %2318 }
 0x569   :  { %2330 = vrcp.f32 %v984_v63  ;;  %v2321_v47 = vpop.eup %2320 }
 0x56a   :  { %2332 = vrcp.f32 %v985_v15  ;;  %v2323_v16 = vpop.eup %2322 }
 0x56b   :  { %v2325_v17 = vpop.eup %2324  ;;  %v998_v3 = vadd.f32 1.0, %v2323_v16 }
 0x56c   :  { %v999_v61 = vadd.f32 1.0, %v2325_v17 }
 0x56d   :  { %2334 = vrcp.f32 %v998_v3 }
 0x56e   :  { %2336 = vrcp.f32 %v999_v61  ;;  %v3526_v61 = vmov 2  }
 0x573   :  { %v2327_v20 = vpop.eup %2326 }
 0x574   :  { %v1013_v23 = vmul.f32 %v2327_v20, %v2321_v47 }
 0x575   :  { %v2329_v4 = vpop.eup %2328 }
 0x576   :  { %v2331_v24 = vpop.eup %2330  ;;  %v1012_v56 = vmul.f32 %v2329_v4, %v2319_v48 }
 0x577   :  { %v2333_v1 = vpop.eup %2332  ;;  %v1010_v43 = vmul.f32 %v2331_v24, %v1006_v29  ;;  %v3093_v24 = vld [vmem:[%s3512_s0 + $0x18] sm:$0xff] }
 0x578   :  { %v1011_v60 = vmul.f32 %v2333_v1, %v1007_v37  ;;  %v3525_v37 = vmov 1  }
 0x579   :  { %v3080_v63 = vadd.f32 %v1012_v56, %v1010_v43 }
 0x57a   :  { %v3082_v15 = vadd.f32 %v1013_v23, %v1011_v60  ;;  %v2335_v49 = vpop.eup %2334 }
 0x57b   :  { %2338 = vtanh.f32 %v3080_v63  ;;  %v2337_v16 = vpop.eup %2336 }
 0x57c   :  { %2340 = vtanh.f32 %v3082_v15 }
 0x588   :  { %v2339_v2 = vpop.eup %2338 }
 0x589   :  { %v2341_v57 = vpop.eup %2340  ;;  %v1018_v17 = vmul.f32 %v2339_v2, %v2335_v49  ;;  %v3524_v2 = vmov 0  }
 0x58a   :  { %v1019_v47 = vmul.f32 %v2341_v57, %v2337_v16 }
 0x58b   :  { %v1020_v48 = vmul.f32 %v2904_v12, %v1018_v17 }
 0x58c   :  { %v1021_v20 = vmul.f32 %v2904_v12, %v1019_v47  ;;  %v3100_v12 = vld [vmem:[%s3512_s0 + $0x8] sm:$0xff] }
 0x58e   :  { %v1024_v4 = vrot.slane %v1021_v20, 7 }
 0x590   :  { %v1026_v29 = vsel %vm1025_vm12, %v1024_v4, %v1020_v48 }
 0x591   :  { %v1029_v3 = vsel %vm1028_vm13, %v1026_v29, 0.0 }
 0x592   :  { %1030 = vadd.xlane.f32.xlu1 %v1029_v3 }
 0x5a3   :  { %126 = vperm.xlu1 %2113, %v3093_v24  }
 0x5a7   :  { %2114 = vset.pattern.permute.xlu1 %v3524_v2 }
 0x5a8   :  { %46 = vperm.xlu1 %2114, %v3100_v12  }
 0x5ac   :  { %2115 = vset.pattern.permute.xlu1 %v3525_v37 }
 0x5ad   :  { %118 = vperm.xlu1 %2115, %v3100_v12  }
 0x5b1   :  { %2116 = vset.pattern.permute.xlu1 %v3526_v61 }
 0x5b2   :  { %210 = vperm.xlu1 %2116, %v3093_v24  }
 0x61b   :  { %v3107_v23 = vpop.xlane.xlu1 %1030 }
 0x61c   :  { %v1041_v56 = vmul.f32 %v3107_v23, %v2757_v26  ;;  %v1042_v1 = vmul.f32 %v3107_v23, %v2797_v41  ;;  %v1044_v47 = vmul.f32 %v3107_v23, %v2832_v58  ;;  %v1043_v3 = vmul.f32 %v3107_v23, %v2875_v27 }
 0x61e   :  { %v1049_v43 = vrot.slane %v1041_v56, 7  ;;  %v1050_v60 = vrot.slane %v1042_v1, 7  ;;  %v1065_v49 = vadd.f32 %v1041_v56, %v2858_v22  ;;  %v1066_v16 = vadd.f32 %v1042_v1, %v2861_v62 }
 0x61f   :  { %v1052_v2 = vrot.slane %v1044_v47, 7  ;;  %v1051_v22 = vrot.slane %v1043_v3, 7  ;;  %v1067_v37 = vadd.f32 %v1043_v3, %v2889_v28  ;;  %v1109_v3 = vrot.slane %v3080_v63, 7 }
 0x620   :  { %v1061_v57 = vadd.f32 %v1049_v43, %v2850_v52  ;;  %v1062_v17 = vadd.f32 %v1050_v60, %v2853_v53  ;;  %v2048_v48 = vmul.f32 -1.442695, %v1065_v49  ;;  %v2050_v29 = vmul.f32 -1.442695, %v1066_v16 }
 0x621   :  { %v1064_v52 = vadd.f32 %v1052_v2, %v2878_v59  ;;  %v1068_v53 = vadd.f32 %v1044_v47, %v2882_v21  ;;  %v1063_v62 = vadd.f32 %v1051_v22, %v2885_v36 }
 0x622   :  { %v2047_v20 = vmul.f32 -1.442695, %v1061_v57  ;;  %v2049_v4 = vmul.f32 -1.442695, %v1062_v17  ;;  %2342 = vpow2.f32 %v2048_v48 }
 0x623   :  { %v2051_v56 = vmul.f32 -1.442695, %v1064_v52  ;;  %v2052_v1 = vmul.f32 -1.442695, %v1068_v53  ;;  %v1110_v52 = vrot.slane %v3082_v15, 7 }
 0x624   :  { %2344 = vpow2.f32 %v2047_v20 }
 0x625   :  { %2346 = vpow2.f32 %v2049_v4 }
 0x626   :  { %2348 = vpow2.f32 %v2050_v29 }
 0x627   :  { %2350 = vtanh.f32 %v1063_v62 }
 0x628   :  { %2352 = vtanh.f32 %v1067_v37 }
 0x629   :  { %2354 = vpow2.f32 %v2051_v56 }
 0x62a   :  { %2356 = vpow2.f32 %v2052_v1 }
 0x62f   :  { %v2343_v43 = vpop.eup %2342 }
 0x630   :  { %v1076_v49 = vadd.f32 1.0, %v2343_v43 }
 0x631   :  { %v2345_v60 = vpop.eup %2344 }
 0x632   :  { %v2347_v16 = vpop.eup %2346  ;;  %v1075_v57 = vadd.f32 1.0, %v2345_v60  ;;  %2358 = vrcp.f32 %v1076_v49 }
 0x633   :  { %v2349_v17 = vpop.eup %2348  ;;  %v1087_v59 = vadd.f32 1.0, %v2347_v16 }
 0x634   :  { %2360 = vrcp.f32 %v1075_v57  ;;  %v1088_v21 = vadd.f32 1.0, %v2349_v17  ;;  %v2351_v36 = vpop.eup %2350 }
 0x635   :  { %2362 = vrcp.f32 %v1087_v59  ;;  %v2353_v28 = vpop.eup %2352  ;;  %v3136_v59 = vld [vmem:[%s3516_s4] ss:$0 sm:$0xff] }
 0x636   :  { %2364 = vrcp.f32 %v1088_v21  ;;  %v2355_v47 = vpop.eup %2354 }
 0x637   :  { %v2357_v48 = vpop.eup %2356  ;;  %v1101_v29 = vadd.f32 1.0, %v2355_v47 }
 0x638   :  { %v1102_v22 = vadd.f32 1.0, %v2357_v48 }
 0x639   :  { %2366 = vrcp.f32 %v1101_v29  ;;  %v3149_v29 = vpop.permute.xlu1 %126 }
 0x63a   :  { %2368 = vrcp.f32 %v1102_v22 }
 0x63f   :  { %v2359_v20 = vpop.eup %2358 }
 0x640   :  { %v1116_v53 = vmul.f32 %v2359_v20, %v2353_v28  ;;  %v36_v20 = vld [vmem:[%s3517_s5] sm:$0xff] }
 0x641   :  { %v2361_v4 = vpop.eup %2360  ;;  %v726_v22 = vrot.slane %v36_v20, %v2769_v32 }
 0x642   :  { %v2363_v2 = vpop.eup %2362  ;;  %v1115_v62 = vmul.f32 %v2361_v4, %v2351_v36  ;;  %v520_v4 = vrot.slane %v36_v20, %v2719_v7 }
 0x643   :  { %v2365_v37 = vpop.eup %2364  ;;  %v1113_v56 = vmul.f32 %v2363_v2, %v1109_v3  ;;  %v623_v3 = vrot.slane %v36_v20, %v2737_v13 }
 0x644   :  { %v1114_v1 = vmul.f32 %v2365_v37, %v1110_v52  ;;  %v521_v2 = vmul.f32 %v520_v4, %v2940_v42  ;;  %v47_v52 = vpop.permute.xlu1 %46  ;;  %v932_v37 = vrot.slane %v36_v20, %v2722_v8  ;;  %v1035_v42 = vrot.slane %v36_v20, %v2740_v14 }
 0x645   :  { %v3127_v43 = vadd.f32 %v1115_v62, %v1113_v56  ;;  %v727_v62 = vmul.f32 %v726_v22, %v3000_v11  ;;  %v102_v4 = vmul.f32 %v2775_v34, %v47_v52 }
 0x646   :  { %v3129_v60 = vadd.f32 %v1116_v53, %v1114_v1  ;;  %v2367_v63 = vpop.eup %2366  ;;  %v523_v53 = vrot.slane %v521_v2, 1 }
 0x647   :  { %2370 = vtanh.f32 %v3127_v43  ;;  %v2369_v49 = vpop.eup %2368 }
 0x648   :  { %2372 = vtanh.f32 %v3129_v60 }
 0x654   :  { %v2371_v16 = vpop.eup %2370 }
 0x655   :  { %v2373_v57 = vpop.eup %2372  ;;  %v1121_v15 = vmul.f32 %v2371_v16, %v2367_v63  ;;  %v729_v16 = vrot.slane %v727_v62, 3  ;;  %v178_v62 = vmul.f32 %v2766_v31, %v3149_v29 }
 0x656   :  { %v1122_v17 = vmul.f32 %v2373_v57, %v2369_v49  ;;  %v933_v57 = vmul.f32 %v932_v37, %v3060_v19  ;;  %v104_v19 = vmul.f32 %v2787_v38, %v47_v52  ;;  %v180_v37 = vmul.f32 %v2793_v40, %v3149_v29 }
 0x657   :  { %v1123_v21 = vmul.f32 %v3136_v59, %v1121_v15 }
 0x658   :  { %v1124_v36 = vmul.f32 %v3136_v59, %v1122_v17  ;;  %v935_v11 = vrot.slane %v933_v57, 5 }
 0x659   :  { %v1130_v28 = vsel %vm1025_vm12, %v1123_v21, 0.0  ;;  %v1036_v21 = vmul.f32 %v1035_v42, %v3107_v23 }
 0x65a   :  { %v1127_v47 = vrot.slane %v1124_v36, 7  ;;  %1131 = vadd.xlane.f32.xlu0 %v1130_v28 }
 0x65c   :  { %v1134_v48 = vsel %vm1133_vm14, %v1127_v47, 0.0 }
 0x65d   :  { %1135 = vadd.xlane.f32.xlu1 %v1134_v48 }
 0x66e   :  { %202 = vperm.xlu1 %2116, %v3100_v12   ;;  %v420_v12 = vrot.slane %v36_v20, %v2725_v9 }
 0x670   :  { %56 = vperm.xlu0 %2112, %v3093_v24   ;;  %v624_v24 = vmul.f32 %v623_v3, %v2970_v5  ;;  %v421_v56 = vmul.f32 %v420_v12, %v2910_v25  ;;  %v119_v5 = vpop.permute.xlu1 %118  ;;  %v1038_v25 = vrot.slane %v1036_v21, 6  ;;  %v1139_v3 = vsub.s32 7, %v2716_v6 }
 0x671   :  { %v169_v2 = vmul.f32 %v2763_v30, %v119_v5  ;;  %v170_v22 = vmul.f32 %v2766_v31, %v119_v5  ;;  %v172_v23 = vmul.f32 %v2793_v40, %v119_v5 }
 0x672   :  { %v626_v1 = vrot.slane %v624_v24, 2  ;;  %v525_v49 = vadd.f32 %v523_v53, %v421_v56  ;;  %v177_v53 = vmul.f32 %v2763_v30, %v3149_v29  ;;  %v103_v56 = vmul.f32 %v2778_v35, %v47_v52 }
 0x674   :  { %2117 = vset.pattern.permute.xlu0 %v3526_v61  ;;  %v829_v61 = vrot.slane %v36_v20, %v2728_v10  ;;  %v628_v15 = vadd.f32 %v626_v1, %v525_v49  ;;  %v3164_v28 = vpop.permute.xlu1 %210  ;;  %v171_v1 = vmul.f32 %v2790_v39, %v119_v5  ;;  %v186_v49 = vadd.f32 %v170_v22, %v102_v4 }
 0x675   :  { %v261_v31 = vmul.f32 %v2800_v44, %v3164_v28 }
 0x676   :  { %v830_v63 = vmul.f32 %v829_v61, %v3030_v18  ;;  %v731_v36 = vadd.f32 %v729_v16, %v628_v15  ;;  %v101_v18 = vmul.f32 %v2772_v33, %v47_v52  ;;  %v188_v16 = vadd.f32 %v172_v23, %v104_v19 }
 0x678   :  { %v832_v17 = vrot.slane %v830_v63, 4  ;;  %v1140_v63 = vrot.slane %v36_v20, %v1139_v3  ;;  %v185_v42 = vadd.f32 %v169_v2, %v101_v18  ;;  %v262_v20 = vmul.f32 %v2803_v45, %v3164_v28 }
 0x67a   :  { %v834_v47 = vadd.f32 %v832_v17, %v731_v36 }
 0x67c   :  { %v937_v48 = vadd.f32 %v935_v11, %v834_v47 }
 0x67e   :  { %v3177_v61 = vadd.f32 %v1038_v25, %v937_v48 }
 0x6e3   :  { %v3175_v24 = vpop.xlane.xlu0 %1131 }
 0x6e4   :  { %v1150_v57 = vmul.f32 %v3175_v24, %v2757_v26  ;;  %v1151_v40 = vmul.f32 %v3175_v24, %v2797_v41  ;;  %v1141_v25 = vmul.f32 %v1140_v63, %v3175_v24 }
 0x6e6   :  { %v3173_v12 = vpop.xlane.xlu1 %1135  ;;  %v1166_v18 = vrot.slane %v1150_v57, 7  ;;  %v1167_v2 = vrot.slane %v1151_v40, 7 }
 0x6e7   :  { %v1142_v48 = vmul.f32 %v1140_v63, %v3173_v12 }
 0x6ea   :  { %v203_v30 = vpop.permute.xlu1 %202 }
 0x6eb   :  { %v253_v52 = vmul.f32 %v2800_v44, %v203_v30  ;;  %v254_v5 = vmul.f32 %v2803_v45, %v203_v30  ;;  %v57_v15 = vpop.permute.xlu0 %56  ;;  %v264_v44 = vmul.f32 %v2822_v54, %v3164_v28  ;;  %v256_v45 = vmul.f32 %v2822_v54, %v203_v30 }
 0x6ec   :  { %v109_v17 = vmul.f32 %v2772_v33, %v57_v15  ;;  %v110_v21 = vmul.f32 %v2775_v34, %v57_v15  ;;  %v112_v36 = vmul.f32 %v2787_v38, %v57_v15  ;;  %v1154_v38 = vmul.f32 %v3173_v12, %v2757_v26 }
 0x6ed   :  { %v269_v11 = vadd.f32 %v253_v52, %v185_v42  ;;  %v270_v47 = vadd.f32 %v254_v5, %v186_v49  ;;  %v1146_v49 = vrot.slane %v1142_v48, 7  ;;  %v1155_v54 = vmul.f32 %v3173_v12, %v2797_v41 }
 0x6ee   :  { %v193_v4 = vadd.f32 %v177_v53, %v109_v17  ;;  %v194_v19 = vadd.f32 %v178_v62, %v110_v21  ;;  %v196_v22 = vadd.f32 %v180_v37, %v112_v36  ;;  %v1145_v62 = vrot.slane %v1141_v25, 7 }
 0x6ef   :  { %v3208_v33 = vadd.f32 %v2813_v50, %v269_v11  ;;  %v3211_v34 = vadd.f32 %v2817_v51, %v270_v47  ;;  %v255_v57 = vmul.f32 %v2806_v46, %v203_v30  ;;  %v272_v37 = vadd.f32 %v256_v45, %v188_v16 }
 0x6f0   :  { %v277_v23 = vadd.f32 %v261_v31, %v193_v4  ;;  %v278_v63 = vadd.f32 %v262_v20, %v194_v19  ;;  %v111_v20 = vmul.f32 %v2778_v35, %v57_v15  ;;  %v187_v17 = vadd.f32 %v171_v1, %v103_v56 }
 0x6f1   :  { %v1178_v42 = vadd.f32 %v1166_v18, %v3208_v33  ;;  %v1179_v53 = vadd.f32 %v1167_v2, %v3211_v34  ;;  %v280_v21 = vadd.f32 %v264_v44, %v196_v22  ;;  %v179_v30 = vmul.f32 %v2790_v39, %v3149_v29 }
 0x6f2   :  { %v3221_v40 = vadd.f32 %v2813_v50, %v277_v23  ;;  %v3224_v52 = vadd.f32 %v2817_v51, %v278_v63  ;;  %v1153_v50 = vmul.f32 %v3175_v24, %v2832_v58  ;;  %v1147_v51 = vsel %vm1133_vm14, %v1145_v62, %v1146_v49 }
 0x6f3   :  { %v2053_v31 = vmul.f32 -1.442695, %v1178_v42  ;;  %v2055_v5 = vmul.f32 -1.442695, %v1179_v53  ;;  %v271_v16 = vadd.f32 %v255_v57, %v187_v17  ;;  %v3235_v35 = vadd.f32 %v2826_v55, %v272_v37 }
 0x6f4   :  { %v1182_v36 = vadd.f32 %v1154_v38, %v3221_v40  ;;  %v1183_v11 = vadd.f32 %v1155_v54, %v3224_v52  ;;  %v195_v56 = vadd.f32 %v179_v30, %v111_v20  ;;  %v3238_v1 = vadd.f32 %v1147_v51, %v3177_v61 }
 0x6f5   :  { %2374 = vpow2.f32 %v2053_v31  ;;  %v1152_v39 = vmul.f32 %v3175_v24, %v2875_v27  ;;  %v3243_v29 = vadd.f32 %v2826_v55, %v280_v21  ;;  %v263_v15 = vmul.f32 %v2806_v46, %v3164_v28 }
 0x6f6   :  { %2376 = vpow2.f32 %v2055_v5  ;;  %v2054_v47 = vmul.f32 -1.442695, %v1182_v36  ;;  %v2056_v25 = vmul.f32 -1.442695, %v1183_v11  ;;  %v1169_v48 = vrot.slane %v1153_v50, 7 }
 0x6f7   :  { %v1157_v44 = vmul.f32 %v3173_v12, %v2832_v58  ;;  %v3250_v18 = vadd.f32 %v2871_v0, %v271_v16  ;;  %v279_v61 = vadd.f32 %v263_v15, %v195_v56  ;;  %v1168_v19 = vrot.slane %v1152_v39, 7 }
 0x6f8   :  { %2378 = vpow2.f32 %v2054_v47  ;;  %v1181_v4 = vadd.f32 %v1169_v48, %v3235_v35  ;;  %v1156_v45 = vmul.f32 %v3173_v12, %v2875_v27  ;;  %v1226_v31 = vrot.slane %v3127_v43, 7 }
 0x6f9   :  { %2380 = vpow2.f32 %v2056_v25  ;;  %v1185_v24 = vadd.f32 %v1157_v44, %v3243_v29  ;;  %v1180_v55 = vadd.f32 %v1168_v19, %v3250_v18  ;;  %v3256_v2 = vadd.f32 %v2871_v0, %v279_v61 }
 0x6fa   :  { %v2057_v46 = vmul.f32 -1.442695, %v1181_v4  ;;  %v1227_v30 = vrot.slane %v3129_v60, 7 }
 0x6fb   :  { %v2058_v28 = vmul.f32 -1.442695, %v1185_v24  ;;  %2382 = vtanh.f32 %v1180_v55  ;;  %v1184_v23 = vadd.f32 %v1156_v45, %v3256_v2 }
 0x6fc   :  { %2384 = vpow2.f32 %v2057_v46 }
 0x6fd   :  { %2386 = vpow2.f32 %v2058_v28 }
 0x702   :  { %v2375_v38 = vpop.eup %2374 }
 0x703   :  { %v2377_v22 = vpop.eup %2376  ;;  %v1192_v63 = vadd.f32 1.0, %v2375_v38 }
 0x704   :  { %v1204_v42 = vadd.f32 1.0, %v2377_v22 }
 0x705   :  { %v2379_v53 = vpop.eup %2378  ;;  %2388 = vrcp.f32 %v1192_v63 }
 0x706   :  { %v2381_v62 = vpop.eup %2380  ;;  %v1193_v49 = vadd.f32 1.0, %v2379_v53  ;;  %2390 = vrcp.f32 %v1204_v42 }
 0x707   :  { %v1205_v0 = vadd.f32 1.0, %v2381_v62  ;;  %2392 = vtanh.f32 %v1184_v23 }
 0x708   :  { %2394 = vrcp.f32 %v1193_v49  ;;  %v2383_v54 = vpop.eup %2382 }
 0x709   :  { %2396 = vrcp.f32 %v1205_v0  ;;  %v2385_v12 = vpop.eup %2384 }
 0x70a   :  { %v2387_v57 = vpop.eup %2386  ;;  %v1218_v21 = vadd.f32 1.0, %v2385_v12 }
 0x70b   :  { %v1219_v51 = vadd.f32 1.0, %v2387_v57 }
 0x70c   :  { %2398 = vrcp.f32 %v1218_v21 }
 0x712   :  { %v2389_v37 = vpop.eup %2388 }
 0x713   :  { %v2391_v5 = vpop.eup %2390  ;;  %v1232_v20 = vmul.f32 %v2389_v37, %v2383_v54 }
 0x714   :  { %v2393_v17 = vpop.eup %2392  ;;  %v1230_v36 = vmul.f32 %v2391_v5, %v1226_v31 }
 0x715   :  { %v2395_v11 = vpop.eup %2394 }
 0x716   :  { %v2397_v50 = vpop.eup %2396  ;;  %v1233_v16 = vmul.f32 %v2395_v11, %v2393_v17  ;;  %v3263_v47 = vadd.f32 %v1232_v20, %v1230_v36 }
 0x717   :  { %v1231_v25 = vmul.f32 %v2397_v50, %v1227_v30 }
 0x718   :  { %2400 = vtanh.f32 %v3263_v47 }
 0x719   :  { %v3265_v56 = vadd.f32 %v1233_v16, %v1231_v25  ;;  %2402 = vrcp.f32 %v1219_v51  ;;  %v2399_v43 = vpop.eup %2398 }
 0x71b   :  { %2404 = vtanh.f32 %v3265_v56 }
 0x725   :  { %v2401_v39 = vpop.eup %2400 }
 0x726   :  { %v2403_v15 = vpop.eup %2402  ;;  %v1238_v44 = vmul.f32 %v2401_v39, %v2399_v43 }
 0x728   :  { %v2405_v48 = vpop.eup %2404  ;;  %v1240_v4 = vmul.f32 %v3136_v59, %v1238_v44 }
 0x729   :  { %v1239_v60 = vmul.f32 %v2405_v48, %v2403_v15 }
 0x72b   :  { %v1241_v61 = vmul.f32 %v3136_v59, %v1239_v60 }
 0x72d   :  { %v1244_v19 = vrot.slane %v1241_v61, 7 }
 0x72f   :  { %v1245_v24 = vsel %vm410_vm0, %v1244_v19, %v1240_v4  ;;  %v1325_v19 = vrot.slane %v3265_v56, 7 }
 0x730   :  { %v1247_v55 = vsel %vm413_vm1, %v1245_v24, 0.0 }
 0x731   :  { %1248 = vadd.xlane.f32.xlu1 %v1247_v55 }
 0x7ba   :  { %v3273_v46 = vpop.xlane.xlu1 %1248 }
 0x7bb   :  { %v1256_v28 = vmul.f32 %v3273_v46, %v2757_v26  ;;  %v1257_v45 = vmul.f32 %v3273_v46, %v2797_v41  ;;  %v1259_v49 = vmul.f32 %v3273_v46, %v2832_v58  ;;  %v1258_v57 = vmul.f32 %v3273_v46, %v2875_v27 }
 0x7bd   :  { %v1264_v38 = vrot.slane %v1256_v28, 7  ;;  %v1265_v22 = vrot.slane %v1257_v45, 7  ;;  %v1280_v23 = vadd.f32 %v1256_v28, %v3221_v40  ;;  %v1281_v63 = vadd.f32 %v1257_v45, %v3224_v52 }
 0x7be   :  { %v1267_v37 = vrot.slane %v1259_v49, 7  ;;  %v1266_v31 = vrot.slane %v1258_v57, 7  ;;  %v1283_v5 = vadd.f32 %v1259_v49, %v3243_v29  ;;  %v1282_v17 = vadd.f32 %v1258_v57, %v3256_v2 }
 0x7bf   :  { %v1276_v42 = vadd.f32 %v1264_v38, %v3208_v33  ;;  %v1277_v53 = vadd.f32 %v1265_v22, %v3211_v34  ;;  %v2060_v62 = vmul.f32 -1.442695, %v1280_v23  ;;  %v2062_v0 = vmul.f32 -1.442695, %v1281_v63 }
 0x7c0   :  { %v1279_v20 = vadd.f32 %v1267_v37, %v3235_v35  ;;  %v1278_v21 = vadd.f32 %v1266_v31, %v3250_v18  ;;  %v2064_v36 = vmul.f32 -1.442695, %v1283_v5  ;;  %v1324_v38 = vrot.slane %v3263_v47, 7 }
 0x7c1   :  { %v2059_v54 = vmul.f32 -1.442695, %v1276_v42  ;;  %2406 = vpow2.f32 %v2060_v62  ;;  %v2061_v12 = vmul.f32 -1.442695, %v1277_v53 }
 0x7c2   :  { %2408 = vpow2.f32 %v2062_v0  ;;  %v2063_v11 = vmul.f32 -1.442695, %v1279_v20 }
 0x7c3   :  { %2410 = vpow2.f32 %v2059_v54 }
 0x7c4   :  { %2412 = vpow2.f32 %v2061_v12 }
 0x7c5   :  { %2414 = vtanh.f32 %v1282_v17 }
 0x7c6   :  { %2416 = vtanh.f32 %v1278_v21 }
 0x7c7   :  { %2418 = vpow2.f32 %v2064_v36 }
 0x7c8   :  { %2420 = vpow2.f32 %v2063_v11 }
 0x7ce   :  { %v2407_v30 = vpop.eup %2406 }
 0x7cf   :  { %v2409_v50 = vpop.eup %2408  ;;  %v1291_v51 = vadd.f32 1.0, %v2407_v30 }
 0x7d0   :  { %v2411_v16 = vpop.eup %2410  ;;  %v1303_v25 = vadd.f32 1.0, %v2409_v50 }
 0x7d1   :  { %v2413_v43 = vpop.eup %2412  ;;  %v1290_v39 = vadd.f32 1.0, %v2411_v16  ;;  %2422 = vrcp.f32 %v1291_v51 }
 0x7d2   :  { %v1302_v15 = vadd.f32 1.0, %v2413_v43  ;;  %2424 = vrcp.f32 %v1303_v25  ;;  %v2415_v48 = vpop.eup %2414 }
 0x7d3   :  { %2426 = vrcp.f32 %v1290_v39  ;;  %v2417_v44 = vpop.eup %2416 }
 0x7d4   :  { %2428 = vrcp.f32 %v1302_v15  ;;  %v2419_v60 = vpop.eup %2418 }
 0x7d5   :  { %v2421_v61 = vpop.eup %2420  ;;  %v1317_v55 = vadd.f32 1.0, %v2419_v60 }
 0x7d6   :  { %v1316_v63 = vadd.f32 1.0, %v2421_v61 }
 0x7d7   :  { %2430 = vrcp.f32 %v1317_v55 }
 0x7de   :  { %v2423_v4 = vpop.eup %2422 }
 0x7df   :  { %v2425_v24 = vpop.eup %2424  ;;  %v1331_v28 = vmul.f32 %v2423_v4, %v2415_v48 }
 0x7e0   :  { %v2427_v45 = vpop.eup %2426  ;;  %v1329_v22 = vmul.f32 %v2425_v24, %v1325_v19 }
 0x7e1   :  { %v2429_v23 = vpop.eup %2428  ;;  %v1330_v42 = vmul.f32 %v2427_v45, %v2417_v44 }
 0x7e2   :  { %v1328_v53 = vmul.f32 %v2429_v23, %v1324_v38  ;;  %v3293_v62 = vadd.f32 %v1331_v28, %v1329_v22 }
 0x7e4   :  { %v3295_v49 = vadd.f32 %v1330_v42, %v1328_v53  ;;  %2432 = vtanh.f32 %v3293_v62  ;;  %v2431_v56 = vpop.eup %2430 }
 0x7e5   :  { %2434 = vrcp.f32 %v1316_v63 }
 0x7e6   :  { %2436 = vtanh.f32 %v3295_v49 }
 0x7f1   :  { %v2433_v0 = vpop.eup %2432 }
 0x7f2   :  { %v2435_v54 = vpop.eup %2434  ;;  %v1337_v12 = vmul.f32 %v2433_v0, %v2431_v56 }
 0x7f3   :  { %v2437_v47 = vpop.eup %2436 }
 0x7f4   :  { %v1336_v57 = vmul.f32 %v2437_v47, %v2435_v54  ;;  %v1339_v37 = vmul.f32 %v3136_v59, %v1337_v12 }
 0x7f6   :  { %v1338_v31 = vmul.f32 %v3136_v59, %v1336_v57  ;;  %v1342_v5 = vrot.slane %v1339_v37, 7 }
 0x7f8   :  { %v1343_v20 = vsel %vm510_vm2, %v1342_v5, %v1338_v31 }
 0x7f9   :  { %v1345_v17 = vsel %vm513_vm3, %v1343_v20, 0.0 }
 0x7fa   :  { %1346 = vadd.xlane.f32.xlu0 %v1345_v17  ;;  %v1425_v17 = vrot.slane %v3295_v49, 7 }
 0x883   :  { %v3303_v21 = vpop.xlane.xlu0 %1346 }
 0x884   :  { %v1357_v36 = vmul.f32 %v3303_v21, %v2757_v26  ;;  %v1358_v11 = vmul.f32 %v3303_v21, %v2797_v41  ;;  %v1360_v39 = vmul.f32 %v3303_v21, %v2832_v58  ;;  %v1359_v61 = vmul.f32 %v3303_v21, %v2875_v27 }
 0x886   :  { %v1365_v30 = vrot.slane %v1357_v36, 7  ;;  %v1366_v50 = vrot.slane %v1358_v11, 7  ;;  %v1381_v51 = vadd.f32 %v1357_v36, %v3221_v40  ;;  %v1382_v16 = vadd.f32 %v1358_v11, %v3224_v52 }
 0x887   :  { %v1368_v4 = vrot.slane %v1360_v39, 7  ;;  %v1367_v19 = vrot.slane %v1359_v61, 7  ;;  %v1384_v55 = vadd.f32 %v1360_v39, %v3243_v29  ;;  %v1383_v28 = vadd.f32 %v1359_v61, %v3256_v2 }
 0x888   :  { %v1377_v25 = vadd.f32 %v1365_v30, %v3208_v33  ;;  %v1378_v43 = vadd.f32 %v1366_v50, %v3211_v34  ;;  %v2066_v15 = vmul.f32 -1.442695, %v1381_v51  ;;  %v2068_v60 = vmul.f32 -1.442695, %v1382_v16 }
 0x889   :  { %v1380_v24 = vadd.f32 %v1368_v4, %v3235_v35  ;;  %v1379_v45 = vadd.f32 %v1367_v19, %v3250_v18  ;;  %v2070_v22 = vmul.f32 -1.442695, %v1384_v55  ;;  %v1426_v30 = vrot.slane %v3293_v62, 7 }
 0x88a   :  { %v2065_v48 = vmul.f32 -1.442695, %v1377_v25  ;;  %v2067_v44 = vmul.f32 -1.442695, %v1378_v43  ;;  %2438 = vpow2.f32 %v2066_v15 }
 0x88b   :  { %v2069_v38 = vmul.f32 -1.442695, %v1380_v24 }
 0x88c   :  { %2440 = vpow2.f32 %v2065_v48 }
 0x88d   :  { %2442 = vpow2.f32 %v2067_v44 }
 0x88e   :  { %2444 = vpow2.f32 %v2068_v60 }
 0x88f   :  { %2446 = vtanh.f32 %v1383_v28 }
 0x890   :  { %2448 = vtanh.f32 %v1379_v45 }
 0x891   :  { %2450 = vpow2.f32 %v2069_v38 }
 0x892   :  { %2452 = vpow2.f32 %v2070_v22 }
 0x897   :  { %v2439_v23 = vpop.eup %2438 }
 0x898   :  { %v1392_v42 = vadd.f32 1.0, %v2439_v23 }
 0x899   :  { %v2441_v63 = vpop.eup %2440 }
 0x89a   :  { %v2443_v53 = vpop.eup %2442  ;;  %v1391_v56 = vadd.f32 1.0, %v2441_v63  ;;  %2454 = vrcp.f32 %v1392_v42 }
 0x89b   :  { %v2445_v0 = vpop.eup %2444  ;;  %v1403_v54 = vadd.f32 1.0, %v2443_v53 }
 0x89c   :  { %2456 = vrcp.f32 %v1391_v56  ;;  %v1404_v12 = vadd.f32 1.0, %v2445_v0  ;;  %v2447_v47 = vpop.eup %2446 }
 0x89d   :  { %2458 = vrcp.f32 %v1403_v54  ;;  %v2449_v57 = vpop.eup %2448 }
 0x89e   :  { %2460 = vrcp.f32 %v1404_v12  ;;  %v2451_v37 = vpop.eup %2450 }
 0x89f   :  { %v2453_v31 = vpop.eup %2452  ;;  %v1417_v36 = vadd.f32 1.0, %v2451_v37 }
 0x8a0   :  { %v1418_v50 = vadd.f32 1.0, %v2453_v31 }
 0x8a1   :  { %2462 = vrcp.f32 %v1417_v36 }
 0x8a2   :  { %2464 = vrcp.f32 %v1418_v50 }
 0x8a7   :  { %v2455_v5 = vpop.eup %2454 }
 0x8a8   :  { %v1432_v51 = vmul.f32 %v2455_v5, %v2447_v47 }
 0x8a9   :  { %v2457_v20 = vpop.eup %2456 }
 0x8aa   :  { %v2459_v11 = vpop.eup %2458  ;;  %v1431_v16 = vmul.f32 %v2457_v20, %v2449_v57 }
 0x8ab   :  { %v2461_v25 = vpop.eup %2460  ;;  %v1429_v43 = vmul.f32 %v2459_v11, %v1425_v17 }
 0x8ac   :  { %v1430_v39 = vmul.f32 %v2461_v25, %v1426_v30 }
 0x8ad   :  { %v3323_v15 = vadd.f32 %v1431_v16, %v1429_v43 }
 0x8ae   :  { %v3325_v48 = vadd.f32 %v1432_v51, %v1430_v39  ;;  %v2463_v49 = vpop.eup %2462 }
 0x8af   :  { %2466 = vtanh.f32 %v3323_v15  ;;  %v2465_v44 = vpop.eup %2464 }
 0x8b0   :  { %2468 = vtanh.f32 %v3325_v48 }
 0x8bc   :  { %v2467_v60 = vpop.eup %2466 }
 0x8bd   :  { %v2469_v62 = vpop.eup %2468  ;;  %v1437_v61 = vmul.f32 %v2467_v60, %v2463_v49 }
 0x8be   :  { %v1438_v4 = vmul.f32 %v2469_v62, %v2465_v44 }
 0x8bf   :  { %v1439_v19 = vmul.f32 %v3136_v59, %v1437_v61 }
 0x8c0   :  { %v1440_v24 = vmul.f32 %v3136_v59, %v1438_v4 }
 0x8c2   :  { %v1443_v55 = vrot.slane %v1440_v24, 7 }
 0x8c4   :  { %v1444_v28 = vsel %vm613_vm4, %v1443_v55, %v1439_v19 }
 0x8c5   :  { %v1446_v45 = vsel %vm616_vm5, %v1444_v28, 0.0 }
 0x8c6   :  { %1447 = vadd.xlane.f32.xlu1 %v1446_v45 }
 0x94f   :  { %v3333_v38 = vpop.xlane.xlu1 %1447 }
 0x950   :  { %v1458_v22 = vmul.f32 %v3333_v38, %v2757_v26  ;;  %v1459_v23 = vmul.f32 %v3333_v38, %v2797_v41  ;;  %v1461_v12 = vmul.f32 %v3333_v38, %v2832_v58  ;;  %v1460_v5 = vmul.f32 %v3333_v38, %v2875_v27 }
 0x952   :  { %v1466_v63 = vrot.slane %v1458_v22, 7  ;;  %v1467_v42 = vrot.slane %v1459_v23, 7  ;;  %v1482_v53 = vadd.f32 %v1458_v22, %v3221_v40  ;;  %v1483_v56 = vadd.f32 %v1459_v23, %v3224_v52 }
 0x953   :  { %v1469_v20 = vrot.slane %v1461_v12, 7  ;;  %v1468_v17 = vrot.slane %v1460_v5, 7  ;;  %v1485_v11 = vadd.f32 %v1461_v12, %v3243_v29  ;;  %v1484_v30 = vadd.f32 %v1460_v5, %v3256_v2 }
 0x954   :  { %v1478_v0 = vadd.f32 %v1466_v63, %v3208_v33  ;;  %v1479_v54 = vadd.f32 %v1467_v42, %v3211_v34  ;;  %v2072_v47 = vmul.f32 -1.442695, %v1482_v53  ;;  %v2074_v31 = vmul.f32 -1.442695, %v1483_v56 }
 0x955   :  { %v1481_v36 = vadd.f32 %v1469_v20, %v3235_v35  ;;  %v1480_v50 = vadd.f32 %v1468_v17, %v3250_v18  ;;  %v2076_v16 = vmul.f32 -1.442695, %v1485_v11  ;;  %v1526_v22 = vrot.slane %v3323_v15, 7 }
 0x956   :  { %v2071_v57 = vmul.f32 -1.442695, %v1478_v0  ;;  %v2073_v37 = vmul.f32 -1.442695, %v1479_v54  ;;  %2470 = vpow2.f32 %v2072_v47  ;;  %v1527_v42 = vrot.slane %v3325_v48, 7 }
 0x957   :  { %v2075_v51 = vmul.f32 -1.442695, %v1481_v36 }
 0x958   :  { %2472 = vpow2.f32 %v2071_v57 }
 0x959   :  { %2474 = vpow2.f32 %v2073_v37 }
 0x95a   :  { %2476 = vpow2.f32 %v2074_v31 }
 0x95b   :  { %2478 = vtanh.f32 %v1484_v30 }
 0x95c   :  { %2480 = vtanh.f32 %v1480_v50 }
 0x95d   :  { %2482 = vpow2.f32 %v2075_v51 }
 0x95e   :  { %2484 = vpow2.f32 %v2076_v16 }
 0x963   :  { %v2471_v25 = vpop.eup %2470 }
 0x964   :  { %v1493_v39 = vadd.f32 1.0, %v2471_v25 }
 0x965   :  { %v2473_v43 = vpop.eup %2472 }
 0x966   :  { %v2475_v49 = vpop.eup %2474  ;;  %v1492_v44 = vadd.f32 1.0, %v2473_v43  ;;  %2486 = vrcp.f32 %v1493_v39 }
 0x967   :  { %v2477_v60 = vpop.eup %2476  ;;  %v1504_v62 = vadd.f32 1.0, %v2475_v49 }
 0x968   :  { %2488 = vrcp.f32 %v1492_v44  ;;  %v1505_v61 = vadd.f32 1.0, %v2477_v60  ;;  %v2479_v4 = vpop.eup %2478 }
 0x969   :  { %2490 = vrcp.f32 %v1504_v62  ;;  %v2481_v19 = vpop.eup %2480 }
 0x96a   :  { %2492 = vrcp.f32 %v1505_v61  ;;  %v2483_v24 = vpop.eup %2482 }
 0x96b   :  { %v2485_v55 = vpop.eup %2484  ;;  %v1518_v23 = vadd.f32 1.0, %v2483_v24 }
 0x96c   :  { %v1519_v53 = vadd.f32 1.0, %v2485_v55 }
 0x96d   :  { %2494 = vrcp.f32 %v1518_v23 }
 0x96e   :  { %2496 = vrcp.f32 %v1519_v53 }
 0x973   :  { %v2487_v28 = vpop.eup %2486 }
 0x974   :  { %v1533_v56 = vmul.f32 %v2487_v28, %v2479_v4 }
 0x975   :  { %v2489_v45 = vpop.eup %2488 }
 0x976   :  { %v2491_v63 = vpop.eup %2490  ;;  %v1532_v0 = vmul.f32 %v2489_v45, %v2481_v19 }
 0x977   :  { %v2493_v54 = vpop.eup %2492  ;;  %v1530_v12 = vmul.f32 %v2491_v63, %v1526_v22 }
 0x978   :  { %v1531_v47 = vmul.f32 %v2493_v54, %v1527_v42 }
 0x979   :  { %v3353_v57 = vadd.f32 %v1532_v0, %v1530_v12 }
 0x97a   :  { %v3355_v37 = vadd.f32 %v1533_v56, %v1531_v47  ;;  %v2495_v15 = vpop.eup %2494 }
 0x97b   :  { %2498 = vtanh.f32 %v3353_v57  ;;  %v2497_v31 = vpop.eup %2496 }
 0x97c   :  { %2500 = vtanh.f32 %v3355_v37 }
 0x988   :  { %v2499_v5 = vpop.eup %2498 }
 0x989   :  { %v2501_v48 = vpop.eup %2500  ;;  %v1538_v20 = vmul.f32 %v2499_v5, %v2495_v15 }
 0x98a   :  { %v1539_v17 = vmul.f32 %v2501_v48, %v2497_v31 }
 0x98b   :  { %v1540_v36 = vmul.f32 %v3136_v59, %v1538_v20 }
 0x98c   :  { %v1541_v11 = vmul.f32 %v3136_v59, %v1539_v17 }
 0x98e   :  { %v1544_v30 = vrot.slane %v1541_v11, 7 }
 0x990   :  { %v1545_v50 = vsel %vm716_vm6, %v1544_v30, %v1540_v36 }
 0x991   :  { %v1547_v51 = vsel %vm719_vm7, %v1545_v50, 0.0 }
 0x992   :  { %1548 = vadd.xlane.f32.xlu1 %v1547_v51 }
 0xa1b   :  { %v3363_v16 = vpop.xlane.xlu1 %1548 }
 0xa1c   :  { %v1559_v25 = vmul.f32 %v3363_v16, %v2757_v26  ;;  %v1560_v43 = vmul.f32 %v3363_v16, %v2797_v41  ;;  %v1562_v4 = vmul.f32 %v3363_v16, %v2832_v58  ;;  %v1561_v45 = vmul.f32 %v3363_v16, %v2875_v27 }
 0xa1e   :  { %v1567_v39 = vrot.slane %v1559_v25, 7  ;;  %v1568_v49 = vrot.slane %v1560_v43, 7  ;;  %v1583_v44 = vadd.f32 %v1559_v25, %v3221_v40  ;;  %v1584_v60 = vadd.f32 %v1560_v43, %v3224_v52 }
 0xa1f   :  { %v1570_v22 = vrot.slane %v1562_v4, 7  ;;  %v1569_v23 = vrot.slane %v1561_v45, 7  ;;  %v1586_v42 = vadd.f32 %v1562_v4, %v3243_v29  ;;  %v1585_v53 = vadd.f32 %v1561_v45, %v3256_v2 }
 0xa20   :  { %v1579_v62 = vadd.f32 %v1567_v39, %v3208_v33  ;;  %v1580_v61 = vadd.f32 %v1568_v49, %v3211_v34  ;;  %v2078_v19 = vmul.f32 -1.442695, %v1583_v44  ;;  %v2080_v28 = vmul.f32 -1.442695, %v1584_v60 }
 0xa21   :  { %v1582_v63 = vadd.f32 %v1570_v22, %v3235_v35  ;;  %v1581_v56 = vadd.f32 %v1569_v23, %v3250_v18  ;;  %v2082_v54 = vmul.f32 -1.442695, %v1586_v42  ;;  %v1627_v43 = vrot.slane %v3353_v57, 7 }
 0xa22   :  { %v2077_v24 = vmul.f32 -1.442695, %v1579_v62  ;;  %v2079_v55 = vmul.f32 -1.442695, %v1580_v61  ;;  %2502 = vpow2.f32 %v2078_v19  ;;  %v1628_v44 = vrot.slane %v3355_v37, 7 }
 0xa23   :  { %v2081_v0 = vmul.f32 -1.442695, %v1582_v63 }
 0xa24   :  { %2504 = vpow2.f32 %v2077_v24 }
 0xa25   :  { %2506 = vpow2.f32 %v2079_v55 }
 0xa26   :  { %2508 = vpow2.f32 %v2080_v28 }
 0xa27   :  { %2510 = vtanh.f32 %v1585_v53 }
 0xa28   :  { %2512 = vtanh.f32 %v1581_v56 }
 0xa29   :  { %2514 = vpow2.f32 %v2081_v0 }
 0xa2a   :  { %2516 = vpow2.f32 %v2082_v54 }
 0xa2f   :  { %v2503_v12 = vpop.eup %2502 }
 0xa30   :  { %v1594_v15 = vadd.f32 1.0, %v2503_v12 }
 0xa31   :  { %v2505_v47 = vpop.eup %2504 }
 0xa32   :  { %v2507_v31 = vpop.eup %2506  ;;  %v1593_v5 = vadd.f32 1.0, %v2505_v47  ;;  %2518 = vrcp.f32 %v1594_v15 }
 0xa33   :  { %v2509_v48 = vpop.eup %2508  ;;  %v1605_v20 = vadd.f32 1.0, %v2507_v31 }
 0xa34   :  { %2520 = vrcp.f32 %v1593_v5  ;;  %v1606_v17 = vadd.f32 1.0, %v2509_v48  ;;  %v2511_v36 = vpop.eup %2510 }
 0xa35   :  { %2522 = vrcp.f32 %v1605_v20  ;;  %v2513_v11 = vpop.eup %2512 }
 0xa36   :  { %2524 = vrcp.f32 %v1606_v17  ;;  %v2515_v30 = vpop.eup %2514 }
 0xa37   :  { %v2517_v50 = vpop.eup %2516  ;;  %v1619_v39 = vadd.f32 1.0, %v2515_v30 }
 0xa38   :  { %v1620_v60 = vadd.f32 1.0, %v2517_v50 }
 0xa39   :  { %2526 = vrcp.f32 %v1619_v39 }
 0xa3a   :  { %2528 = vrcp.f32 %v1620_v60 }
 0xa3f   :  { %v2519_v51 = vpop.eup %2518 }
 0xa40   :  { %v1634_v62 = vmul.f32 %v2519_v51, %v2511_v36 }
 0xa41   :  { %v2521_v25 = vpop.eup %2520 }
 0xa42   :  { %v2523_v49 = vpop.eup %2522  ;;  %v1633_v61 = vmul.f32 %v2521_v25, %v2513_v11 }
 0xa43   :  { %v2525_v4 = vpop.eup %2524  ;;  %v1631_v19 = vmul.f32 %v2523_v49, %v1627_v43 }
 0xa44   :  { %v1632_v24 = vmul.f32 %v2525_v4, %v1628_v44 }
 0xa45   :  { %v3383_v55 = vadd.f32 %v1633_v61, %v1631_v19 }
 0xa46   :  { %v3385_v28 = vadd.f32 %v1634_v62, %v1632_v24  ;;  %v2527_v57 = vpop.eup %2526 }
 0xa47   :  { %2530 = vtanh.f32 %v3383_v55  ;;  %v2529_v45 = vpop.eup %2528 }
 0xa48   :  { %2532 = vtanh.f32 %v3385_v28 }
 0xa54   :  { %v2531_v22 = vpop.eup %2530 }
 0xa55   :  { %v2533_v37 = vpop.eup %2532  ;;  %v1639_v23 = vmul.f32 %v2531_v22, %v2527_v57 }
 0xa56   :  { %v1640_v63 = vmul.f32 %v2533_v37, %v2529_v45 }
 0xa57   :  { %v1641_v42 = vmul.f32 %v3136_v59, %v1639_v23 }
 0xa58   :  { %v1642_v53 = vmul.f32 %v3136_v59, %v1640_v63 }
 0xa5a   :  { %v1645_v56 = vrot.slane %v1642_v53, 7 }
 0xa5c   :  { %v1646_v0 = vsel %vm819_vm8, %v1645_v56, %v1641_v42 }
 0xa5d   :  { %v1648_v54 = vsel %vm822_vm9, %v1646_v0, 0.0 }
 0xa5e   :  { %1649 = vadd.xlane.f32.xlu0 %v1648_v54 }
 0xae7   :  { %v3393_v12 = vpop.xlane.xlu0 %1649 }
 0xae8   :  { %v1660_v47 = vmul.f32 %v3393_v12, %v2757_v26  ;;  %v1661_v15 = vmul.f32 %v3393_v12, %v2797_v41  ;;  %v1663_v36 = vmul.f32 %v3393_v12, %v2832_v58  ;;  %v1662_v25 = vmul.f32 %v3393_v12, %v2875_v27 }
 0xaea   :  { %v1668_v31 = vrot.slane %v1660_v47, 7  ;;  %v1669_v5 = vrot.slane %v1661_v15, 7  ;;  %v1684_v48 = vadd.f32 %v1660_v47, %v3221_v40  ;;  %v1685_v59 = vadd.f32 %v1661_v15, %v3224_v52 }
 0xaeb   :  { %v1671_v43 = vrot.slane %v1663_v36, 7  ;;  %v1670_v39 = vrot.slane %v1662_v25, 7  ;;  %v1687_v44 = vadd.f32 %v1663_v36, %v3243_v29  ;;  %v1686_v60 = vadd.f32 %v1662_v25, %v3256_v2 }
 0xaec   :  { %v1680_v20 = vadd.f32 %v1668_v31, %v3208_v33  ;;  %v1681_v17 = vadd.f32 %v1669_v5, %v3211_v34  ;;  %v2084_v11 = vmul.f32 -1.442695, %v1684_v48  ;;  %v2086_v51 = vmul.f32 -1.442695, %v1685_v59 }
 0xaed   :  { %v1683_v49 = vadd.f32 %v1671_v43, %v3235_v35  ;;  %v1682_v62 = vadd.f32 %v1670_v39, %v3250_v18  ;;  %v2088_v4 = vmul.f32 -1.442695, %v1687_v44  ;;  %v1728_v15 = vrot.slane %v3383_v55, 7  ;;  %v3422_v44 = vld [vmem:[%s3516_s4] ss:$0 sm:$0xff] }
 0xaee   :  { %v2083_v30 = vmul.f32 -1.442695, %v1680_v20  ;;  %v2085_v50 = vmul.f32 -1.442695, %v1681_v17  ;;  %2534 = vpow2.f32 %v2084_v11  ;;  %v1729_v48 = vrot.slane %v3385_v28, 7 }
 0xaef   :  { %v2087_v61 = vmul.f32 -1.442695, %v1683_v49 }
 0xaf0   :  { %2536 = vpow2.f32 %v2083_v30 }
 0xaf1   :  { %2538 = vpow2.f32 %v2085_v50 }
 0xaf2   :  { %2540 = vpow2.f32 %v2086_v51 }
 0xaf3   :  { %2542 = vtanh.f32 %v1686_v60 }
 0xaf4   :  { %2544 = vtanh.f32 %v1682_v62 }
 0xaf5   :  { %2546 = vpow2.f32 %v2087_v61 }
 0xaf6   :  { %2548 = vpow2.f32 %v2088_v4 }
 0xafb   :  { %v2535_v19 = vpop.eup %2534 }
 0xafc   :  { %v1695_v57 = vadd.f32 1.0, %v2535_v19 }
 0xafd   :  { %v2537_v24 = vpop.eup %2536 }
 0xafe   :  { %v2539_v45 = vpop.eup %2538  ;;  %v1694_v22 = vadd.f32 1.0, %v2537_v24  ;;  %2550 = vrcp.f32 %v1695_v57 }
 0xaff   :  { %v2541_v37 = vpop.eup %2540  ;;  %v1706_v23 = vadd.f32 1.0, %v2539_v45 }
 0xb00   :  { %2552 = vrcp.f32 %v1694_v22  ;;  %v1707_v63 = vadd.f32 1.0, %v2541_v37  ;;  %v2543_v42 = vpop.eup %2542 }
 0xb01   :  { %2554 = vrcp.f32 %v1706_v23  ;;  %v2545_v53 = vpop.eup %2544 }
 0xb02   :  { %2556 = vrcp.f32 %v1707_v63  ;;  %v2547_v56 = vpop.eup %2546 }
 0xb03   :  { %v2549_v0 = vpop.eup %2548  ;;  %v1720_v31 = vadd.f32 1.0, %v2547_v56 }
 0xb04   :  { %v1721_v59 = vadd.f32 1.0, %v2549_v0 }
 0xb05   :  { %2558 = vrcp.f32 %v1720_v31 }
 0xb06   :  { %2560 = vrcp.f32 %v1721_v59 }
 0xb0b   :  { %v2551_v54 = vpop.eup %2550 }
 0xb0c   :  { %v1735_v20 = vmul.f32 %v2551_v54, %v2543_v42 }
 0xb0d   :  { %v2553_v47 = vpop.eup %2552 }
 0xb0e   :  { %v2555_v5 = vpop.eup %2554  ;;  %v1734_v17 = vmul.f32 %v2553_v47, %v2545_v53 }
 0xb0f   :  { %v2557_v36 = vpop.eup %2556  ;;  %v1732_v11 = vmul.f32 %v2555_v5, %v1728_v15 }
 0xb10   :  { %v1733_v30 = vmul.f32 %v2557_v36, %v1729_v48 }
 0xb11   :  { %v3413_v50 = vadd.f32 %v1734_v17, %v1732_v11 }
 0xb12   :  { %v3415_v51 = vadd.f32 %v1735_v20, %v1733_v30  ;;  %v2559_v55 = vpop.eup %2558 }
 0xb13   :  { %2562 = vtanh.f32 %v3413_v50  ;;  %v2561_v25 = vpop.eup %2560 }
 0xb14   :  { %2564 = vtanh.f32 %v3415_v51 }
 0xb20   :  { %v2563_v43 = vpop.eup %2562 }
 0xb21   :  { %v2565_v28 = vpop.eup %2564  ;;  %v1740_v39 = vmul.f32 %v2563_v43, %v2559_v55 }
 0xb22   :  { %v1741_v49 = vmul.f32 %v2565_v28, %v2561_v25 }
 0xb23   :  { %v1742_v60 = vmul.f32 %v3422_v44, %v1740_v39 }
 0xb24   :  { %v1743_v62 = vmul.f32 %v3422_v44, %v1741_v49 }
 0xb26   :  { %v1746_v61 = vrot.slane %v1743_v62, 7 }
 0xb28   :  { %v1747_v4 = vsel %vm922_vm10, %v1746_v61, %v1742_v60 }
 0xb29   :  { %v1749_v19 = vsel %vm925_vm11, %v1747_v4, 0.0 }
 0xb2a   :  { %1750 = vadd.xlane.f32.xlu1 %v1749_v19 }
 0xbb3   :  { %v3428_v24 = vpop.xlane.xlu1 %1750 }
 0xbb4   :  { %v1761_v57 = vmul.f32 %v3428_v24, %v2757_v26  ;;  %v1762_v45 = vmul.f32 %v3428_v24, %v2797_v41  ;;  %v1764_v56 = vmul.f32 %v3428_v24, %v2832_v58  ;;  %v1763_v31 = vmul.f32 %v3428_v24, %v2875_v27 }
 0xbb6   :  { %v1769_v22 = vrot.slane %v1761_v57, 7  ;;  %v1770_v37 = vrot.slane %v1762_v45, 7  ;;  %v1785_v23 = vadd.f32 %v1761_v57, %v3221_v40  ;;  %v1786_v63 = vadd.f32 %v1762_v45, %v3224_v52 }
 0xbb7   :  { %v1772_v5 = vrot.slane %v1764_v56, 7  ;;  %v1771_v48 = vrot.slane %v1763_v31, 7  ;;  %v1788_v20 = vadd.f32 %v1764_v56, %v3243_v29  ;;  %v1787_v17 = vadd.f32 %v1763_v31, %v3256_v2 }
 0xbb8   :  { %v1781_v42 = vadd.f32 %v1769_v22, %v3208_v33  ;;  %v1782_v53 = vadd.f32 %v1770_v37, %v3211_v34  ;;  %v2090_v0 = vmul.f32 -1.442695, %v1785_v23  ;;  %v2092_v15 = vmul.f32 -1.442695, %v1786_v63 }
 0xbb9   :  { %v1784_v59 = vadd.f32 %v1772_v5, %v3235_v35  ;;  %v1783_v36 = vadd.f32 %v1771_v48, %v3250_v18  ;;  %v2094_v30 = vmul.f32 -1.442695, %v1788_v20  ;;  %v1829_v37 = vrot.slane %v3413_v50, 7 }
 0xbba   :  { %v2089_v54 = vmul.f32 -1.442695, %v1781_v42  ;;  %v2091_v47 = vmul.f32 -1.442695, %v1782_v53  ;;  %2566 = vpow2.f32 %v2090_v0  ;;  %v1830_v42 = vrot.slane %v3415_v51, 7 }
 0xbbb   :  { %v2093_v11 = vmul.f32 -1.442695, %v1784_v59 }
 0xbbc   :  { %2568 = vpow2.f32 %v2089_v54 }
 0xbbd   :  { %2570 = vpow2.f32 %v2091_v47 }
 0xbbe   :  { %2572 = vpow2.f32 %v2092_v15 }
 0xbbf   :  { %2574 = vtanh.f32 %v1787_v17 }
 0xbc0   :  { %2576 = vtanh.f32 %v1783_v36 }
 0xbc1   :  { %2578 = vpow2.f32 %v2093_v11 }
 0xbc2   :  { %2580 = vpow2.f32 %v2094_v30 }
 0xbc7   :  { %v2567_v55 = vpop.eup %2566 }
 0xbc8   :  { %v1796_v43 = vadd.f32 1.0, %v2567_v55 }
 0xbc9   :  { %v2569_v25 = vpop.eup %2568 }
 0xbca   :  { %v2571_v28 = vpop.eup %2570  ;;  %v1795_v39 = vadd.f32 1.0, %v2569_v25  ;;  %2582 = vrcp.f32 %v1796_v43 }
 0xbcb   :  { %v2573_v49 = vpop.eup %2572  ;;  %v1807_v60 = vadd.f32 1.0, %v2571_v28 }
 0xbcc   :  { %2584 = vrcp.f32 %v1795_v39  ;;  %v1808_v62 = vadd.f32 1.0, %v2573_v49  ;;  %v2575_v61 = vpop.eup %2574 }
 0xbcd   :  { %2586 = vrcp.f32 %v1807_v60  ;;  %v2577_v4 = vpop.eup %2576 }
 0xbce   :  { %2588 = vrcp.f32 %v1808_v62  ;;  %v2579_v19 = vpop.eup %2578 }
 0xbcf   :  { %v2581_v57 = vpop.eup %2580  ;;  %v1821_v23 = vadd.f32 1.0, %v2579_v19 }
 0xbd0   :  { %v1822_v53 = vadd.f32 1.0, %v2581_v57 }
 0xbd1   :  { %2590 = vrcp.f32 %v1821_v23 }
 0xbd2   :  { %2592 = vrcp.f32 %v1822_v53 }
 0xbd7   :  { %v2583_v45 = vpop.eup %2582 }
 0xbd8   :  { %v1836_v56 = vmul.f32 %v2583_v45, %v2575_v61 }
 0xbd9   :  { %v2585_v22 = vpop.eup %2584 }
 0xbda   :  { %v2587_v63 = vpop.eup %2586  ;;  %v1835_v0 = vmul.f32 %v2585_v22, %v2577_v4 }
 0xbdb   :  { %v2589_v54 = vpop.eup %2588  ;;  %v1833_v47 = vmul.f32 %v2587_v63, %v1829_v37 }
 0xbdc   :  { %v1834_v15 = vmul.f32 %v2589_v54, %v1830_v42 }
 0xbdd   :  { %v3448_v31 = vadd.f32 %v1835_v0, %v1833_v47 }
 0xbde   :  { %v3450_v5 = vadd.f32 %v1836_v56, %v1834_v15  ;;  %v2591_v50 = vpop.eup %2590 }
 0xbdf   :  { %2594 = vtanh.f32 %v3448_v31  ;;  %v2593_v48 = vpop.eup %2592 }
 0xbe0   :  { %2596 = vtanh.f32 %v3450_v5 }
 0xbec   :  { %v2595_v59 = vpop.eup %2594 }
 0xbed   :  { %v2597_v51 = vpop.eup %2596  ;;  %v1841_v20 = vmul.f32 %v2595_v59, %v2591_v50  ;;  %v1931_v59 = vrot.slane %v3450_v5, 7 }
 0xbee   :  { %v1842_v17 = vmul.f32 %v2597_v51, %v2593_v48 }
 0xbef   :  { %v1843_v36 = vmul.f32 %v3422_v44, %v1841_v20 }
 0xbf0   :  { %v1844_v11 = vmul.f32 %v3422_v44, %v1842_v17 }
 0xbf2   :  { %v1847_v30 = vrot.slane %v1844_v11, 7 }
 0xbf4   :  { %v1848_v55 = vsel %vm1025_vm12, %v1847_v30, %v1843_v36  ;;  %v1930_v30 = vrot.slane %v3448_v31, 7 }
 0xbf5   :  { %v1850_v25 = vsel %vm1028_vm13, %v1848_v55, 0.0 }
 0xbf6   :  { %1851 = vadd.xlane.f32.xlu0 %v1850_v25 }
 0xc7f   :  { %v3458_v43 = vpop.xlane.xlu0 %1851 }
 0xc80   :  { %v1862_v28 = vmul.f32 %v3458_v43, %v2757_v26  ;;  %v1863_v39 = vmul.f32 %v3458_v43, %v2797_v41  ;;  %v1865_v45 = vmul.f32 %v3458_v43, %v2832_v58  ;;  %v1864_v41 = vmul.f32 %v3458_v43, %v2875_v27 }
 0xc82   :  { %v1870_v49 = vrot.slane %v1862_v28, 7  ;;  %v1871_v60 = vrot.slane %v1863_v39, 7  ;;  %v1886_v62 = vadd.f32 %v1862_v28, %v3221_v40  ;;  %v1887_v61 = vadd.f32 %v1863_v39, %v3224_v52 }
 0xc83   :  { %v1873_v40 = vrot.slane %v1865_v45, 7  ;;  %v1872_v52 = vrot.slane %v1864_v41, 7  ;;  %v1888_v23 = vadd.f32 %v1864_v41, %v3256_v2  ;;  %v37_v41 = vld [vmem:[%s3517_s5 + $0x8] sm:$0xff] }
 0xc84   :  { %v1882_v4 = vadd.f32 %v1870_v49, %v3208_v33  ;;  %v1883_v19 = vadd.f32 %v1871_v60, %v3211_v34  ;;  %v2096_v57 = vmul.f32 -1.442695, %v1886_v62  ;;  %v2098_v22 = vmul.f32 -1.442695, %v1887_v61 }
 0xc85   :  { %v1889_v33 = vadd.f32 %v1865_v45, %v3243_v29  ;;  %v1885_v34 = vadd.f32 %v1873_v40, %v3235_v35  ;;  %v1884_v58 = vadd.f32 %v1872_v52, %v3250_v18  ;;  %v1351_v40 = vrot.slane %v37_v41, %v2719_v7 }
 0xc86   :  { %v2095_v37 = vmul.f32 -1.442695, %v1882_v4  ;;  %2598 = vpow2.f32 %v2096_v57  ;;  %v2097_v26 = vmul.f32 -1.442695, %v1883_v19  ;;  %v1253_v52 = vrot.slane %v37_v41, %v2725_v9 }
 0xc87   :  { %2600 = vpow2.f32 %v2098_v22  ;;  %v2100_v63 = vmul.f32 -1.442695, %v1889_v33  ;;  %v2099_v42 = vmul.f32 -1.442695, %v1885_v34  ;;  %v1452_v33 = vrot.slane %v37_v41, %v2737_v13 }
 0xc88   :  { %2602 = vpow2.f32 %v2095_v37  ;;  %v1352_v34 = vmul.f32 %v1351_v40, %v3303_v21  ;;  %v1856_v13 = vrot.slane %v37_v41, %v2740_v14 }
 0xc89   :  { %2604 = vpow2.f32 %v2097_v26 }
 0xc8a   :  { %2606 = vtanh.f32 %v1888_v23  ;;  %v1254_v23 = vmul.f32 %v1253_v52, %v3273_v46 }
 0xc8b   :  { %2608 = vtanh.f32 %v1884_v58  ;;  %v1453_v58 = vmul.f32 %v1452_v33, %v3333_v38  ;;  %v1857_v38 = vmul.f32 %v1856_v13, %v3458_v43  ;;  %v2101_v43 = vld [vmem:[%s3518_s6] ss:$0 sm:$0xff]  ;;  %s1996_s6 = sshll.u32 %s2661_s23, 4  ;;  %s1997_s6 = int_to_ptr.vmem [resolvable:$true] %s1996_s6 }
 0xc8c   :  { %2610 = vpow2.f32 %v2100_v63  ;;  %v1654_v63 = vrot.slane %v37_v41, %v2728_v10  ;;  %v1255_v21 = vadd.f32 %v1254_v23, %v3238_v1  ;;  %s2636_s24 = scalar_lea.vmem %s1997_s6, 32  ;;  %p2641_p1 = scmp.lt.s32.totalorder %s1997_s6, %s1997_s6 }
 0xc8d   :  { %2612 = vpow2.f32 %v2099_v42  ;;  %v1354_v42 = vrot.slane %v1352_v34, 1  ;;  %v1455_v7 = vrot.slane %v1453_v58, 2  ;;  %p2637_p0 = scmp.ne.s32.totalorder %s1997_s6, %s2636_s24  ;;  %p2642_p2 = scmp.lt.s32.totalorder %s2636_s24, %s2636_s24 }
 0xc8e   :  { %v1655_v9 = vmul.f32 %v1654_v63, %v3393_v12 }
 0xc8f   :  { %v1356_v46 = vadd.f32 %v1354_v42, %v1255_v21  ;;  %p2643_p3 = por %p2642_p2, %p2641_p1 }
 0xc91   :  { %v1457_v10 = vadd.f32 %v1455_v7, %v1356_v46  ;;  %p2644_p4 = pnand %p2643_p3, %p2637_p0 }
 0xc93   :  { %v2599_v53 = vpop.eup %2598 }
 0xc94   :  { %v2601_v56 = vpop.eup %2600  ;;  %v1897_v27 = vadd.f32 1.0, %v2599_v53 }
 0xc95   :  { %v2603_v0 = vpop.eup %2602  ;;  %v1909_v54 = vadd.f32 1.0, %v2601_v56  ;;  %v1755_v56 = vrot.slane %v37_v41, %v2722_v8 }
 0xc96   :  { %v2605_v47 = vpop.eup %2604  ;;  %v1896_v15 = vadd.f32 1.0, %v2603_v0  ;;  %2614 = vrcp.f32 %v1897_v27  ;;  %v1657_v0 = vrot.slane %v1655_v9, 4 }
 0xc97   :  { %v1908_v29 = vadd.f32 1.0, %v2605_v47  ;;  %2616 = vrcp.f32 %v1909_v54  ;;  %v2607_v35 = vpop.eup %2606 }
 0xc98   :  { %2618 = vrcp.f32 %v1896_v15  ;;  %v2609_v18 = vpop.eup %2608 }
 0xc99   :  { %2620 = vrcp.f32 %v1908_v29  ;;  %v2611_v2 = vpop.eup %2610  ;;  %v1859_v29 = vrot.slane %v1857_v38, 6 }
 0xc9a   :  { %v2613_v50 = vpop.eup %2612  ;;  %v1923_v20 = vadd.f32 1.0, %v2611_v2 }
 0xc9b   :  { %v1922_v25 = vadd.f32 1.0, %v2613_v50 }
 0xc9c   :  { %2622 = vrcp.f32 %v1923_v20 }
 0xca3   :  { %v2615_v48 = vpop.eup %2614 }
 0xca4   :  { %v2617_v51 = vpop.eup %2616  ;;  %v1937_v17 = vmul.f32 %v2615_v48, %v2607_v35 }
 0xca5   :  { %v2619_v36 = vpop.eup %2618  ;;  %v1935_v11 = vmul.f32 %v2617_v51, %v1931_v59 }
 0xca6   :  { %v2621_v55 = vpop.eup %2620  ;;  %v1936_v28 = vmul.f32 %v2619_v36, %v2609_v18 }
 0xca7   :  { %v1939_v39 = vadd.f32 %v1937_v17, %v1935_v11  ;;  %v1934_v49 = vmul.f32 %v2621_v55, %v1930_v30 }
 0xca9   :  { %2624 = vtanh.f32 %v1939_v39  ;;  %v1938_v60 = vadd.f32 %v1936_v28, %v1934_v49  ;;  %v2623_v62 = vpop.eup %2622 }
 0xcaa   :  { %2626 = vrcp.f32 %v1922_v25 }
 0xcab   :  { %2628 = vtanh.f32 %v1938_v60 }
 0xcb6   :  { %v2625_v61 = vpop.eup %2624 }
 0xcb7   :  { %v2627_v5 = vpop.eup %2626  ;;  %v1943_v4 = vmul.f32 %v2625_v61, %v2623_v62 }
 0xcb8   :  { %v2629_v19 = vpop.eup %2628 }
 0xcb9   :  { %v1945_v57 = vmul.f32 %v3422_v44, %v1943_v4  ;;  %v1942_v45 = vmul.f32 %v2629_v19, %v2627_v5 }
 0xcbb   :  { %v1948_v22 = vrot.slane %v1945_v57, 7  ;;  %v1944_v31 = vmul.f32 %v3422_v44, %v1942_v45  ;;  %v1553_v44 = vrot.slane %v37_v41, %v2769_v32  ;;  %v1756_v32 = vmul.f32 %v1755_v56, %v3428_v24 }
 0xcbd   :  { %v1954_v37 = vsel %vm1133_vm14, %v1948_v22, 0.0  ;;  %v1951_v26 = vsel %vm1025_vm12, %v1944_v31, 0.0  ;;  %v1554_v53 = vmul.f32 %v1553_v44, %v3363_v16  ;;  %v1960_v16 = vrot.slane %v37_v41, %v1139_v3 }
 0xcbe   :  { %1955 = vadd.xlane.f32.xlu0 %v1954_v37  ;;  %1952 = vadd.xlane.f32.xlu1 %v1951_v26  ;;  %v1758_v54 = vrot.slane %v1756_v32, 5 }
 0xcbf   :  { %v1556_v27 = vrot.slane %v1554_v53, 3 }
 0xcc1   :  { %v1558_v8 = vadd.f32 %v1556_v27, %v1457_v10 }
 0xcc3   :  { %v1659_v12 = vadd.f32 %v1657_v0, %v1558_v8 }
 0xcc5   :  { %v1760_v1 = vadd.f32 %v1758_v54, %v1659_v12 }
 0xcc7   :  { %v1861_v24 = vadd.f32 %v1859_v29, %v1760_v1 }
 0xd47   :  { %v1956_v47 = vpop.xlane.xlu0 %1955  ;;  %v1953_v15 = vpop.xlane.xlu1 %1952 }
 0xd48   :  { %v1962_v14 = vmul.f32 %v1960_v16, %v1956_v47  ;;  %v1961_v35 = vmul.f32 %v1960_v16, %v1953_v15 }
 0xd4a   :  { %v1966_v18 = vrot.slane %v1962_v14, 7  ;;  %v1965_v2 = vrot.slane %v1961_v35, 7 }
 0xd4c   :  { %v1967_v50 = vsel %vm1133_vm14, %v1965_v2, %v1966_v18 }
 0xd4d   :  { %v1969_v6 = vadd.f32 %v1967_v50, %v1861_v24 }
 0xd4f   :  { %v1976_v3 = vadd.f32 %v2101_v43, %v1969_v6 }
 0xd51   :  { %v1978_v48 = vsel %vm1977_vm15, %v1976_v3, -inf }
 0xd52   :  { %1979 = vmax.xlane.f32.xlu1 %v1978_v48 }
 0xddb   :  { %v1980_v59 = vpop.xlane.xlu1 %1979 }
 0xddc   :  { %v1981_v51 = vsub.f32 %v1976_v3, %v1980_v59 }
 0xdde   :  { %v1982_v20 = vmul.f32 1.442695, %v1981_v51 }
 0xde0   :  { %2630 = vpow2.f32 %v1982_v20 }
 0xded   :  { %v2631_v17 = vpop.eup %2630 }
 0xdee   :  { %v1984_v36 = vsel %vm1977_vm15, %v2631_v17, 0.0 }
 0xdef   :  { %1985 = vadd.xlane.f32.xlu0 %v1984_v36 }
 0xe78   :  { %v1986_v11 = vpop.xlane.xlu0 %1985 }
 0xe79   :  { %2632 = vrcp.f32 %v1986_v11 }
 0xe86   :  { %v2633_v30 = vpop.eup %2632 }
 0xe87   :  { %v1988_v55 = vmul.f32 %v2633_v30, %v2631_v17 }
 0xe89   :  { %1989 = vst.msk [vmem:[#allocation2] sm:$0x3] %vm1977_vm15, %v1988_v55 }
 0xe8a   :  { %2647 = shalt.err (!%p2644_p4)
}
 0xe8b   :  { %1999 = dma.vmem_to_hbm [thread:$0]  %s1997_s6, 32, %s3519_s7, [#allocation3]  }
 0xe8c   :  { %2656 = dma.done.wait [#allocation3], 32  }
 0xe8d   :  { %2657 = vsyncadd [#allocation3], 4294967264 }
 0xe8e   :  { %2003 = vsyncpa [#allocation3], 1 }

</bundles_post_ra>
